<compile_context>
chip_gen: v7x
topology: tpu7x:2x2x1
jax: 0.10.0
libtpu: 0.0.40
codegen_flags: <defaults>
</compile_context>

<pallas_src>
import jax
import jax.numpy as jnp
import numpy as np
from jax.experimental import pallas as pl
from jax.experimental.pallas import tpu as pltpu

# Static network dimensions (forced by the module's view(1, 37260)).
KSZ = 7                      # conv kernel size
L_IN = 478                   # input length
C0, C1, C2 = 3, 18, 324      # real channel counts
NOUT = 5
L1C = L_IN - KSZ + 1         # 472 conv-1 output length
L1P = L1C // 2               # 236 pooled
L2C = L1P - KSZ + 1          # 230 conv-2 output length
L2P = L2C // 2               # 115 pooled
FLAT = C2 * L2P              # 37260

# Folded / padded dimensions used inside the kernel.
KC0 = KSZ * C0               # 21  layer-1 folded contraction width
KC1 = KSZ * C1               # 126 layer-2 folded contraction width
NPH = 120                    # rows per conv-1 output phase (472/4=118 -> 120)
C2P = 384                    # layer-2 channels padded 324 -> 384
NCHK = C2P // 128            # 3 lane chunks of layer-2 channels


# ------------------------------ fused kernel -------------------------------- #

def cnn_fused_kernel(x_ref, w1_ref, b1_ref, w2_ref, b2_ref, w3_ref, b3_ref,
                     o_ref, h1e_s, h1o_s):
    f32, bf16 = jnp.float32, jnp.bfloat16

    # ---- Layer 1: folded-tap matmul, one per pooled parity stream ----------
    # x_ref row m*120+q is the im2col row for conv position t = 4q + m, so
    # h1[2q] = max(phase0, phase1) and h1[2q+1] = max(phase2, phase3).
    # w1_ref replicates the 18 output channels at lane blocks 18j (ready for
    # the layer-2 tap fold); bias is added after the max (max(a+b,c+b)=max+b).
    y = jnp.dot(x_ref[0:2 * NPH, :], w1_ref[...], preferred_element_type=f32)
    h1e_s[...] = jnp.maximum(y[0:NPH], y[NPH:2 * NPH]) + b1_ref[...]
    y = jnp.dot(x_ref[2 * NPH:4 * NPH, :], w1_ref[...],
                preferred_element_type=f32)
    h1o_s[...] = jnp.maximum(y[0:NPH], y[NPH:2 * NPH]) + b1_ref[...]

    # ---- Layer-2 im2col: fold 7 taps x 18 ch into 126 contraction lanes ----
    lane = jax.lax.broadcasted_iota(jnp.int32, (L2P, 128), 1)

    def build_z(parity):
        # z[p, 18k + c] = h1[2p + parity + k, c]  (lane-masked add per tap;
        # channels are already replicated at every lane block by w1_ref).
        z = jnp.zeros((L2P, 128), f32)
        for k in range(KSZ):
            t = parity + k
            src_ref = h1e_s if t % 2 == 0 else h1o_s
            src = src_ref[t // 2:t // 2 + L2P, :]
            sel = (lane >= C1 * k) & (lane < C1 * (k + 1))
            z = z + jnp.where(sel, src, 0.0)
        return z.astype(bf16)

    ze = build_z(0)   # produces y2[2p]
    zo = build_z(1)   # produces y2[2p+1]

    # ---- Layer 2 + MaxPool + fused Linear partials, per 128-lane chunk -----
    partials = []
    for j in range(NCHK):
        w2j = w2_ref[j]                                        # (128,128) bf16
        y2e = jnp.dot(ze, w2j, preferred_element_type=f32)     # (115,128) f32
        y2o = jnp.dot(zo, w2j, preferred_element_type=f32)
        h2j = jnp.maximum(y2e, y2o) + b2_ref[j]                # (115,128) f32
        for n in range(NOUT):
            w3nj = w3_ref[n * NCHK + j].astype(f32)            # (115,128)
            p = jnp.sum(h2j * w3nj, axis=0, keepdims=True)     # (1,128)
            if j == 0:
                partials.append(p)
            else:
                partials[n] = partials[n] + p

    # ---- Linear finalize: lane-reduce the 5 partial rows, dense store ------
    rows = jnp.concatenate(partials + [jnp.zeros((8 - NOUT, 128), f32)], axis=0)
    out_col = jnp.sum(rows, axis=1, keepdims=True) + b3_ref[...]     # (8, 1)
    o_ref[...] = jnp.broadcast_to(out_col, (8, 128))                 # 1-vreg store


# ------------------------- one-time parameter prep -------------------------- #

def prepare_params(params):
    """One-time torch -> TPU weight re-layout/fold/cast (NOT per forward)."""
    w1, b1, w2, b2, w3, b3 = params
    f32, bf16 = jnp.float32, jnp.bfloat16

    # Conv1: fold taps into contraction rows (3k+c) and replicate the 18
    # output channels 7x along lanes (cols 18j+o).
    w1m = jnp.transpose(w1, (2, 1, 0)).reshape(KC0, C1)              # (21, 18)
    w1p = jnp.pad(jnp.tile(w1m, (1, KSZ)),
                  ((0, 128 - KC0), (0, 128 - KC1))).astype(bf16)     # (128,128)
    b1p = jnp.pad(jnp.tile(b1.reshape(1, C1), (1, KSZ)),
                  ((0, 0), (0, 128 - KC1))).astype(f32)              # (1,128)

    # Conv2: fold taps into contraction rows (18k+c); split the 384 output
    # lanes into 3 chunks of 128 for leading-int indexing in the kernel.
    w2m = jnp.transpose(w2, (2, 1, 0)).reshape(KC1, C2)              # (126,324)
    w2pad = jnp.pad(w2m, ((0, 128 - KC1), (0, C2P - C2)))            # (128,384)
    w2p = jnp.transpose(w2pad.reshape(128, NCHK, 128),
                        (1, 0, 2)).astype(bf16)                      # (3,128,128)
    b2p = jnp.pad(b2.reshape(1, C2),
                  ((0, 0), (0, C2P - C2))).reshape(NCHK, 1, 128).astype(f32)

    # Linear: torch flatten is channel-major (flat = c*115 + p); re-lay as
    # (n*chunk, time, channel%128) to match the kernel's h2 chunks exactly.
    w3r = jnp.transpose(w3.reshape(NOUT, C2, L2P), (0, 2, 1))        # (5,115,324)
    w3pad = jnp.pad(w3r, ((0, 0), (0, 0), (0, C2P - C2)))            # (5,115,384)
    w3p = (jnp.transpose(w3pad.reshape(NOUT, L2P, NCHK, 128), (0, 2, 1, 3))
              .reshape(NOUT * NCHK, L2P, 128).astype(bf16))          # (15,115,128)
    b3p = jnp.pad(b3.reshape(NOUT, 1), ((0, 8 - NOUT), (0, 0))).astype(f32)
    return (w1p, b1p, w2p, b2p, w3p, b3p)


# ------------------------------- forward ------------------------------------ #

_VMEM = pl.BlockSpec(memory_space=pltpu.MemorySpace.VMEM)


@jax.jit
def cnn_forward(x, prep):
    """x: (1, 3, 478) float32 NCL -> (1, 5) float32."""
    w1p, b1p, w2p, b2p, w3p, b3p = prep
    # im2col of the tiny input, built once in XLA (lane index = 3k + c), then
    # phase-reordered so the 4 conv-output phases are contiguous 120-row
    # blocks: row m*120 + q  <->  conv position t = 4q + m.
    x_tm = jnp.transpose(x[0], (1, 0))                               # (478, 3)
    x_pad = jnp.pad(x_tm, ((0, 4 * NPH + KSZ - 1 - L_IN), (0, 0)))   # (486, 3)
    x_im = jnp.concatenate([x_pad[k:k + 4 * NPH, :] for k in range(KSZ)],
                           axis=1)                                   # (480, 21)
    x_im = jnp.pad(x_im, ((0, 0), (0, 128 - KC0)))                   # (480, 128)
    x_ph = (x_im.reshape(NPH, 4, 128).transpose(1, 0, 2)
                .reshape(4 * NPH, 128).astype(jnp.bfloat16))

    o = pl.pallas_call(
        cnn_fused_kernel,
        out_shape=jax.ShapeDtypeStruct((8, 128), jnp.float32),
        in_specs=[_VMEM] * 7,
        out_specs=_VMEM,
        scratch_shapes=[pltpu.VMEM((NPH, 128), jnp.float32),   # h1 even rows
                        pltpu.VMEM((NPH, 128), jnp.float32)],  # h1 odd rows
        cost_estimate=pl.CostEstimate(flops=40_000_000, transcendentals=0,
                                      bytes_accessed=750_000),
    )(x_ph, w1p, b1p, w2p, b2p, w3p, b3p)

    # o[n, :] all hold output n (lanes broadcast); pick the 5 real outputs.
    return o[:NOUT, 0].reshape(1, NOUT)


# --------------------------- plain-JAX reference ----------------------------- #

def reference_forward(x, params):
    w1, b1, w2, b2, w3, b3 = params
    dn = ("NCH", "OIH", "NCH")
    hi = jax.lax.Precision.HIGHEST
    y = jax.lax.conv_general_dilated(x, w1, (1,), "VALID",
                                     dimension_numbers=dn, precision=hi)
    y = y + b1[None, :, None]
    y = jax.lax.reduce_window(y, jnp.float32(-np.inf), jax.lax.max,
                              (1, 1, 2), (1, 1, 2), "VALID")
    y = jax.lax.conv_general_dilated(y, w2, (1,), "VALID",
                                     dimension_numbers=dn, precision=hi)
    y = y + b2[None, :, None]
    y = jax.lax.reduce_window(y, jnp.float32(-np.inf), jax.lax.max,
                              (1, 1, 2), (1, 1, 2), "VALID")
    flat = y.reshape(1, FLAT)
    return jnp.dot(flat, w3.T, precision=hi) + b3[None, :]


# ----------------------------------- main ------------------------------------ #

if __name__ == "__main__":
    key = jax.random.PRNGKey(0)
    kx, k1, k2, k3, k4, k5, k6 = jax.random.split(key, 7)

    # Input shape implied by the forward pass (x.view(1, 37260)): (1, 3, 478).
    x = jax.random.normal(kx, (1, C0, L_IN), dtype=jnp.float32)

    def uinit(k, shape, fan_in):
        bound = 1.0 / float(np.sqrt(fan_in))
        return jax.random.uniform(k, shape, jnp.float32, -bound, bound)

    # Deterministic parameter init (PyTorch-default-like uniform bounds).
    w1 = uinit(k1, (C1, C0, KSZ), C0 * KSZ)
    b1 = uinit(k2, (C1,), C0 * KSZ)
    w2 = uinit(k3, (C2, C1, KSZ), C1 * KSZ)
    b2 = uinit(k4, (C2,), C1 * KSZ)
    w3 = uinit(k5, (NOUT, FLAT), FLAT)
    b3 = uinit(k6, (NOUT,), FLAT)
    params = (w1, b1, w2, b2, w3, b3)

    prep = prepare_params(params)     # one-time weight fold/re-layout/bf16 cast

    out = jax.block_until_ready(cnn_forward(x, prep))
    assert out.shape == (1, NOUT), out.shape

    ref = jax.block_until_ready(reference_forward(x, params))
    np.testing.assert_allclose(np.asarray(out), np.asarray(ref),
                               rtol=2e-2, atol=2e-2)

    print("KERNEL_OK")
</pallas_src>

<mosaic_0001>
module attributes {stable_mosaic.version = 11 : i64} {
  func.func @cnn_fused_kernel(%arg0: memref<480x128xbf16, #tpu.memory_space<vmem>>, %arg1: memref<128x128xbf16, #tpu.memory_space<vmem>>, %arg2: memref<1x128xf32, #tpu.memory_space<vmem>>, %arg3: memref<3x128x128xbf16, #tpu.memory_space<vmem>>, %arg4: memref<3x1x128xf32, #tpu.memory_space<vmem>>, %arg5: memref<15x115x128xbf16, #tpu.memory_space<vmem>>, %arg6: memref<8x1xf32, #tpu.memory_space<vmem>>, %arg7: memref<8x128xf32, #tpu.memory_space<vmem>>, %arg8: memref<120x128xf32, #tpu.memory_space<vmem>>, %arg9: memref<120x128xf32, #tpu.memory_space<vmem>>) attributes {dimension_semantics = [], scalar_prefetch = 0 : i64, scratch_operands = 2 : i64, tpu.core_type = #tpu.core_type<tc>} {
    %c0 = arith.constant 0 : index
    %c0_0 = arith.constant 0 : index
    %0 = vector.load %arg0[%c0, %c0_0] : memref<480x128xbf16, #tpu.memory_space<vmem>>, vector<240x128xbf16>
    %c0_1 = arith.constant 0 : index
    %c0_2 = arith.constant 0 : index
    %1 = vector.load %arg1[%c0_1, %c0_2] : memref<128x128xbf16, #tpu.memory_space<vmem>>, vector<128x128xbf16>
    %cst = arith.constant dense<0.000000e+00> : vector<240x128xf32>
    %2 = tpu.matmul %0, %1, %cst {dimension_numbers = #tpu.dot_dimension_numbers<[1], [0], [0], [1], [0, 0, 1, 1], [], []>} : vector<240x128xbf16>, vector<128x128xbf16>, vector<240x128xf32> -> vector<240x128xf32>
    %3 = vector.extract_strided_slice %2 {offsets = [0, 0], sizes = [120, 128], strides = [1, 1]} : vector<240x128xf32> to vector<120x128xf32>
    %4 = vector.extract_strided_slice %2 {offsets = [120, 0], sizes = [120, 128], strides = [1, 1]} : vector<240x128xf32> to vector<120x128xf32>
    %5 = arith.maximumf %3, %4 : vector<120x128xf32>
    %c0_3 = arith.constant 0 : index
    %c0_4 = arith.constant 0 : index
    %6 = vector.load %arg2[%c0_3, %c0_4] : memref<1x128xf32, #tpu.memory_space<vmem>>, vector<1x128xf32>
    %7 = vector.broadcast %6 : vector<1x128xf32> to vector<120x128xf32>
    %8 = arith.addf %5, %7 : vector<120x128xf32>
    %c0_5 = arith.constant 0 : index
    %c0_6 = arith.constant 0 : index
    %9 = vector.load %arg8[%c0_5, %c0_6] : memref<120x128xf32, #tpu.memory_space<vmem>>, vector<120x128xf32>
    tpu.vector_store %arg8[%c0_5, %c0_6], %8 {strides = array<i32>} : memref<120x128xf32, #tpu.memory_space<vmem>>, vector<120x128xf32>,
    %c240 = arith.constant 240 : index
    %c0_7 = arith.constant 0 : index
    %10 = vector.load %arg0[%c240, %c0_7] : memref<480x128xbf16, #tpu.memory_space<vmem>>, vector<240x128xbf16>
    %c0_8 = arith.constant 0 : index
    %c0_9 = arith.constant 0 : index
    %11 = vector.load %arg1[%c0_8, %c0_9] : memref<128x128xbf16, #tpu.memory_space<vmem>>, vector<128x128xbf16>
    %cst_10 = arith.constant dense<0.000000e+00> : vector<240x128xf32>
    %12 = tpu.matmul %10, %11, %cst_10 {dimension_numbers = #tpu.dot_dimension_numbers<[1], [0], [0], [1], [0, 0, 1, 1], [], []>} : vector<240x128xbf16>, vector<128x128xbf16>, vector<240x128xf32> -> vector<240x128xf32>
    %13 = vector.extract_strided_slice %12 {offsets = [0, 0], sizes = [120, 128], strides = [1, 1]} : vector<240x128xf32> to vector<120x128xf32>
    %14 = vector.extract_strided_slice %12 {offsets = [120, 0], sizes = [120, 128], strides = [1, 1]} : vector<240x128xf32> to vector<120x128xf32>
    %15 = arith.maximumf %13, %14 : vector<120x128xf32>
    %c0_11 = arith.constant 0 : index
    %c0_12 = arith.constant 0 : index
    %16 = vector.load %arg2[%c0_11, %c0_12] : memref<1x128xf32, #tpu.memory_space<vmem>>, vector<1x128xf32>
    %17 = vector.broadcast %16 : vector<1x128xf32> to vector<120x128xf32>
    %18 = arith.addf %15, %17 : vector<120x128xf32>
    %c0_13 = arith.constant 0 : index
    %c0_14 = arith.constant 0 : index
    %19 = vector.load %arg9[%c0_13, %c0_14] : memref<120x128xf32, #tpu.memory_space<vmem>>, vector<120x128xf32>
    tpu.vector_store %arg9[%c0_13, %c0_14], %18 {strides = array<i32>} : memref<120x128xf32, #tpu.memory_space<vmem>>, vector<120x128xf32>,
    %20 = tpu.iota {dimensions = array<i32: 1>} : vector<115x128xi32>
    %cst_15 = arith.constant 0.000000e+00 : f32
    %21 = vector.broadcast %cst_15 : f32 to vector<115x128xf32>
    %c0_16 = arith.constant 0 : index
    %c0_17 = arith.constant 0 : index
    %22 = vector.load %arg8[%c0_16, %c0_17] : memref<120x128xf32, #tpu.memory_space<vmem>>, vector<115x128xf32>
    %c0_i32 = arith.constant 0 : i32
    %23 = vector.broadcast %c0_i32 : i32 to vector<115x128xi32>
    %24 = arith.cmpi sge, %20, %23 : vector<115x128xi32>
    %c18_i32 = arith.constant 18 : i32
    %25 = vector.broadcast %c18_i32 : i32 to vector<115x128xi32>
    %26 = arith.cmpi slt, %20, %25 : vector<115x128xi32>
    %27 = arith.andi %24, %26 : vector<115x128xi1>
    %cst_18 = arith.constant 0.000000e+00 : f32
    %28 = vector.broadcast %cst_18 : f32 to vector<115x128xf32>
    %29 = arith.select %27, %22, %28 : vector<115x128xi1>, vector<115x128xf32>
    %30 = arith.addf %21, %29 : vector<115x128xf32>
    %c0_19 = arith.constant 0 : index
    %c0_20 = arith.constant 0 : index
    %31 = vector.load %arg9[%c0_19, %c0_20] : memref<120x128xf32, #tpu.memory_space<vmem>>, vector<115x128xf32>
    %c18_i32_21 = arith.constant 18 : i32
    %32 = vector.broadcast %c18_i32_21 : i32 to vector<115x128xi32>
    %33 = arith.cmpi sge, %20, %32 : vector<115x128xi32>
    %c36_i32 = arith.constant 36 : i32
    %34 = vector.broadcast %c36_i32 : i32 to vector<115x128xi32>
    %35 = arith.cmpi slt, %20, %34 : vector<115x128xi32>
    %36 = arith.andi %33, %35 : vector<115x128xi1>
    %cst_22 = arith.constant 0.000000e+00 : f32
    %37 = vector.broadcast %cst_22 : f32 to vector<115x128xf32>
    %38 = arith.select %36, %31, %37 : vector<115x128xi1>, vector<115x128xf32>
    %39 = arith.addf %30, %38 : vector<115x128xf32>
    %c1 = arith.constant 1 : index
    %c0_23 = arith.constant 0 : index
    %40 = vector.load %arg8[%c1, %c0_23] : memref<120x128xf32, #tpu.memory_space<vmem>>, vector<115x128xf32>
    %c36_i32_24 = arith.constant 36 : i32
    %41 = vector.broadcast %c36_i32_24 : i32 to vector<115x128xi32>
    %42 = arith.cmpi sge, %20, %41 : vector<115x128xi32>
    %c54_i32 = arith.constant 54 : i32
    %43 = vector.broadcast %c54_i32 : i32 to vector<115x128xi32>
    %44 = arith.cmpi slt, %20, %43 : vector<115x128xi32>
    %45 = arith.andi %42, %44 : vector<115x128xi1>
    %cst_25 = arith.constant 0.000000e+00 : f32
    %46 = vector.broadcast %cst_25 : f32 to vector<115x128xf32>
    %47 = arith.select %45, %40, %46 : vector<115x128xi1>, vector<115x128xf32>
    %48 = arith.addf %39, %47 : vector<115x128xf32>
    %c1_26 = arith.constant 1 : index
    %c0_27 = arith.constant 0 : index
    %49 = vector.load %arg9[%c1_26, %c0_27] : memref<120x128xf32, #tpu.memory_space<vmem>>, vector<115x128xf32>
    %c54_i32_28 = arith.constant 54 : i32
    %50 = vector.broadcast %c54_i32_28 : i32 to vector<115x128xi32>
    %51 = arith.cmpi sge, %20, %50 : vector<115x128xi32>
    %c72_i32 = arith.constant 72 : i32
    %52 = vector.broadcast %c72_i32 : i32 to vector<115x128xi32>
    %53 = arith.cmpi slt, %20, %52 : vector<115x128xi32>
    %54 = arith.andi %51, %53 : vector<115x128xi1>
    %cst_29 = arith.constant 0.000000e+00 : f32
    %55 = vector.broadcast %cst_29 : f32 to vector<115x128xf32>
    %56 = arith.select %54, %49, %55 : vector<115x128xi1>, vector<115x128xf32>
    %57 = arith.addf %48, %56 : vector<115x128xf32>
    %c2 = arith.constant 2 : index
    %c0_30 = arith.constant 0 : index
    %58 = vector.load %arg8[%c2, %c0_30] : memref<120x128xf32, #tpu.memory_space<vmem>>, vector<115x128xf32>
    %c72_i32_31 = arith.constant 72 : i32
    %59 = vector.broadcast %c72_i32_31 : i32 to vector<115x128xi32>
    %60 = arith.cmpi sge, %20, %59 : vector<115x128xi32>
    %c90_i32 = arith.constant 90 : i32
    %61 = vector.broadcast %c90_i32 : i32 to vector<115x128xi32>
    %62 = arith.cmpi slt, %20, %61 : vector<115x128xi32>
    %63 = arith.andi %60, %62 : vector<115x128xi1>
    %cst_32 = arith.constant 0.000000e+00 : f32
    %64 = vector.broadcast %cst_32 : f32 to vector<115x128xf32>
    %65 = arith.select %63, %58, %64 : vector<115x128xi1>, vector<115x128xf32>
    %66 = arith.addf %57, %65 : vector<115x128xf32>
    %c2_33 = arith.constant 2 : index
    %c0_34 = arith.constant 0 : index
    %67 = vector.load %arg9[%c2_33, %c0_34] : memref<120x128xf32, #tpu.memory_space<vmem>>, vector<115x128xf32>
    %c90_i32_35 = arith.constant 90 : i32
    %68 = vector.broadcast %c90_i32_35 : i32 to vector<115x128xi32>
    %69 = arith.cmpi sge, %20, %68 : vector<115x128xi32>
    %c108_i32 = arith.constant 108 : i32
    %70 = vector.broadcast %c108_i32 : i32 to vector<115x128xi32>
    %71 = arith.cmpi slt, %20, %70 : vector<115x128xi32>
    %72 = arith.andi %69, %71 : vector<115x128xi1>
    %cst_36 = arith.constant 0.000000e+00 : f32
    %73 = vector.broadcast %cst_36 : f32 to vector<115x128xf32>
    %74 = arith.select %72, %67, %73 : vector<115x128xi1>, vector<115x128xf32>
    %75 = arith.addf %66, %74 : vector<115x128xf32>
    %c3 = arith.constant 3 : index
    %c0_37 = arith.constant 0 : index
    %76 = vector.load %arg8[%c3, %c0_37] : memref<120x128xf32, #tpu.memory_space<vmem>>, vector<115x128xf32>
    %c108_i32_38 = arith.constant 108 : i32
    %77 = vector.broadcast %c108_i32_38 : i32 to vector<115x128xi32>
    %78 = arith.cmpi sge, %20, %77 : vector<115x128xi32>
    %c126_i32 = arith.constant 126 : i32
    %79 = vector.broadcast %c126_i32 : i32 to vector<115x128xi32>
    %80 = arith.cmpi slt, %20, %79 : vector<115x128xi32>
    %81 = arith.andi %78, %80 : vector<115x128xi1>
    %cst_39 = arith.constant 0.000000e+00 : f32
    %82 = vector.broadcast %cst_39 : f32 to vector<115x128xf32>
    %83 = arith.select %81, %76, %82 : vector<115x128xi1>, vector<115x128xf32>
    %84 = arith.addf %75, %83 : vector<115x128xf32>
    %85 = arith.truncf %84 : vector<115x128xf32> to vector<115x128xbf16>
    %cst_40 = arith.constant 0.000000e+00 : f32
    %86 = vector.broadcast %cst_40 : f32 to vector<115x128xf32>
    %c0_41 = arith.constant 0 : index
    %c0_42 = arith.constant 0 : index
    %87 = vector.load %arg9[%c0_41, %c0_42] : memref<120x128xf32, #tpu.memory_space<vmem>>, vector<115x128xf32>
    %c0_i32_43 = arith.constant 0 : i32
    %88 = vector.broadcast %c0_i32_43 : i32 to vector<115x128xi32>
    %89 = arith.cmpi sge, %20, %88 : vector<115x128xi32>
    %c18_i32_44 = arith.constant 18 : i32
    %90 = vector.broadcast %c18_i32_44 : i32 to vector<115x128xi32>
    %91 = arith.cmpi slt, %20, %90 : vector<115x128xi32>
    %92 = arith.andi %89, %91 : vector<115x128xi1>
    %cst_45 = arith.constant 0.000000e+00 : f32
    %93 = vector.broadcast %cst_45 : f32 to vector<115x128xf32>
    %94 = arith.select %92, %87, %93 : vector<115x128xi1>, vector<115x128xf32>
    %95 = arith.addf %86, %94 : vector<115x128xf32>
    %c1_46 = arith.constant 1 : index
    %c0_47 = arith.constant 0 : index
    %96 = vector.load %arg8[%c1_46, %c0_47] : memref<120x128xf32, #tpu.memory_space<vmem>>, vector<115x128xf32>
    %c18_i32_48 = arith.constant 18 : i32
    %97 = vector.broadcast %c18_i32_48 : i32 to vector<115x128xi32>
    %98 = arith.cmpi sge, %20, %97 : vector<115x128xi32>
    %c36_i32_49 = arith.constant 36 : i32
    %99 = vector.broadcast %c36_i32_49 : i32 to vector<115x128xi32>
    %100 = arith.cmpi slt, %20, %99 : vector<115x128xi32>
    %101 = arith.andi %98, %100 : vector<115x128xi1>
    %cst_50 = arith.constant 0.000000e+00 : f32
    %102 = vector.broadcast %cst_50 : f32 to vector<115x128xf32>
    %103 = arith.select %101, %96, %102 : vector<115x128xi1>, vector<115x128xf32>
    %104 = arith.addf %95, %103 : vector<115x128xf32>
    %c1_51 = arith.constant 1 : index
    %c0_52 = arith.constant 0 : index
    %105 = vector.load %arg9[%c1_51, %c0_52] : memref<120x128xf32, #tpu.memory_space<vmem>>, vector<115x128xf32>
    %c36_i32_53 = arith.constant 36 : i32
    %106 = vector.broadcast %c36_i32_53 : i32 to vector<115x128xi32>
    %107 = arith.cmpi sge, %20, %106 : vector<115x128xi32>
    %c54_i32_54 = arith.constant 54 : i32
    %108 = vector.broadcast %c54_i32_54 : i32 to vector<115x128xi32>
    %109 = arith.cmpi slt, %20, %108 : vector<115x128xi32>
    %110 = arith.andi %107, %109 : vector<115x128xi1>
    %cst_55 = arith.constant 0.000000e+00 : f32
    %111 = vector.broadcast %cst_55 : f32 to vector<115x128xf32>
    %112 = arith.select %110, %105, %111 : vector<115x128xi1>, vector<115x128xf32>
    %113 = arith.addf %104, %112 : vector<115x128xf32>
    %c2_56 = arith.constant 2 : index
    %c0_57 = arith.constant 0 : index
    %114 = vector.load %arg8[%c2_56, %c0_57] : memref<120x128xf32, #tpu.memory_space<vmem>>, vector<115x128xf32>
    %c54_i32_58 = arith.constant 54 : i32
    %115 = vector.broadcast %c54_i32_58 : i32 to vector<115x128xi32>
    %116 = arith.cmpi sge, %20, %115 : vector<115x128xi32>
    %c72_i32_59 = arith.constant 72 : i32
    %117 = vector.broadcast %c72_i32_59 : i32 to vector<115x128xi32>
    %118 = arith.cmpi slt, %20, %117 : vector<115x128xi32>
    %119 = arith.andi %116, %118 : vector<115x128xi1>
    %cst_60 = arith.constant 0.000000e+00 : f32
    %120 = vector.broadcast %cst_60 : f32 to vector<115x128xf32>
    %121 = arith.select %119, %114, %120 : vector<115x128xi1>, vector<115x128xf32>
    %122 = arith.addf %113, %121 : vector<115x128xf32>
    %c2_61 = arith.constant 2 : index
    %c0_62 = arith.constant 0 : index
    %123 = vector.load %arg9[%c2_61, %c0_62] : memref<120x128xf32, #tpu.memory_space<vmem>>, vector<115x128xf32>
    %c72_i32_63 = arith.constant 72 : i32
    %124 = vector.broadcast %c72_i32_63 : i32 to vector<115x128xi32>
    %125 = arith.cmpi sge, %20, %124 : vector<115x128xi32>
    %c90_i32_64 = arith.constant 90 : i32
    %126 = vector.broadcast %c90_i32_64 : i32 to vector<115x128xi32>
    %127 = arith.cmpi slt, %20, %126 : vector<115x128xi32>
    %128 = arith.andi %125, %127 : vector<115x128xi1>
    %cst_65 = arith.constant 0.000000e+00 : f32
    %129 = vector.broadcast %cst_65 : f32 to vector<115x128xf32>
    %130 = arith.select %128, %123, %129 : vector<115x128xi1>, vector<115x128xf32>
    %131 = arith.addf %122, %130 : vector<115x128xf32>
    %c3_66 = arith.constant 3 : index
    %c0_67 = arith.constant 0 : index
    %132 = vector.load %arg8[%c3_66, %c0_67] : memref<120x128xf32, #tpu.memory_space<vmem>>, vector<115x128xf32>
    %c90_i32_68 = arith.constant 90 : i32
    %133 = vector.broadcast %c90_i32_68 : i32 to vector<115x128xi32>
    %134 = arith.cmpi sge, %20, %133 : vector<115x128xi32>
    %c108_i32_69 = arith.constant 108 : i32
    %135 = vector.broadcast %c108_i32_69 : i32 to vector<115x128xi32>
    %136 = arith.cmpi slt, %20, %135 : vector<115x128xi32>
    %137 = arith.andi %134, %136 : vector<115x128xi1>
    %cst_70 = arith.constant 0.000000e+00 : f32
    %138 = vector.broadcast %cst_70 : f32 to vector<115x128xf32>
    %139 = arith.select %137, %132, %138 : vector<115x128xi1>, vector<115x128xf32>
    %140 = arith.addf %131, %139 : vector<115x128xf32>
    %c3_71 = arith.constant 3 : index
    %c0_72 = arith.constant 0 : index
    %141 = vector.load %arg9[%c3_71, %c0_72] : memref<120x128xf32, #tpu.memory_space<vmem>>, vector<115x128xf32>
    %c108_i32_73 = arith.constant 108 : i32
    %142 = vector.broadcast %c108_i32_73 : i32 to vector<115x128xi32>
    %143 = arith.cmpi sge, %20, %142 : vector<115x128xi32>
    %c126_i32_74 = arith.constant 126 : i32
    %144 = vector.broadcast %c126_i32_74 : i32 to vector<115x128xi32>
    %145 = arith.cmpi slt, %20, %144 : vector<115x128xi32>
    %146 = arith.andi %143, %145 : vector<115x128xi1>
    %cst_75 = arith.constant 0.000000e+00 : f32
    %147 = vector.broadcast %cst_75 : f32 to vector<115x128xf32>
    %148 = arith.select %146, %141, %147 : vector<115x128xi1>, vector<115x128xf32>
    %149 = arith.addf %140, %148 : vector<115x128xf32>
    %150 = arith.truncf %149 : vector<115x128xf32> to vector<115x128xbf16>
    %c0_76 = arith.constant 0 : index
    %c0_77 = arith.constant 0 : index
    %c0_78 = arith.constant 0 : index
    %151 = vector.load %arg3[%c0_76, %c0_77, %c0_78] : memref<3x128x128xbf16, #tpu.memory_space<vmem>>, vector<1x128x128xbf16>
    %152 = vector.shape_cast %151 : vector<1x128x128xbf16> to vector<128x128xbf16>
    %cst_79 = arith.constant dense<0.000000e+00> : vector<115x128xf32>
    %153 = tpu.matmul %85, %152, %cst_79 {dimension_numbers = #tpu.dot_dimension_numbers<[1], [0], [0], [1], [0, 0, 1, 1], [], []>} : vector<115x128xbf16>, vector<128x128xbf16>, vector<115x128xf32> -> vector<115x128xf32>
    %cst_80 = arith.constant dense<0.000000e+00> : vector<115x128xf32>
    %154 = tpu.matmul %150, %152, %cst_80 {dimension_numbers = #tpu.dot_dimension_numbers<[1], [0], [0], [1], [0, 0, 1, 1], [], []>} : vector<115x128xbf16>, vector<128x128xbf16>, vector<115x128xf32> -> vector<115x128xf32>
    %155 = arith.maximumf %153, %154 : vector<115x128xf32>
    %c0_81 = arith.constant 0 : index
    %c0_82 = arith.constant 0 : index
    %c0_83 = arith.constant 0 : index
    %156 = vector.load %arg4[%c0_81, %c0_82, %c0_83] : memref<3x1x128xf32, #tpu.memory_space<vmem>>, vector<1x1x128xf32>
    %157 = vector.shape_cast %156 : vector<1x1x128xf32> to vector<1x128xf32>
    %158 = vector.broadcast %157 : vector<1x128xf32> to vector<115x128xf32>
    %159 = arith.addf %155, %158 : vector<115x128xf32>
    %c0_84 = arith.constant 0 : index
    %c0_85 = arith.constant 0 : index
    %c0_86 = arith.constant 0 : index
    %160 = vector.load %arg5[%c0_84, %c0_85, %c0_86] : memref<15x115x128xbf16, #tpu.memory_space<vmem>>, vector<1x115x128xbf16>
    %161 = vector.shape_cast %160 : vector<1x115x128xbf16> to vector<115x128xbf16>
    %162 = arith.extf %161 : vector<115x128xbf16> to vector<115x128xf32>
    %163 = arith.mulf %159, %162 : vector<115x128xf32>
    %cst_87 = arith.constant dense<0.000000e+00> : vector<128xf32>
    %164 = vector.multi_reduction <add>, %163, %cst_87 [0] : vector<115x128xf32> to vector<128xf32>
    %165 = vector.shape_cast %164 : vector<128xf32> to vector<1x128xf32>
    %c3_88 = arith.constant 3 : index
    %c0_89 = arith.constant 0 : index
    %c0_90 = arith.constant 0 : index
    %166 = vector.load %arg5[%c3_88, %c0_89, %c0_90] : memref<15x115x128xbf16, #tpu.memory_space<vmem>>, vector<1x115x128xbf16>
    %167 = vector.shape_cast %166 : vector<1x115x128xbf16> to vector<115x128xbf16>
    %168 = arith.extf %167 : vector<115x128xbf16> to vector<115x128xf32>
    %169 = arith.mulf %159, %168 : vector<115x128xf32>
    %cst_91 = arith.constant dense<0.000000e+00> : vector<128xf32>
    %170 = vector.multi_reduction <add>, %169, %cst_91 [0] : vector<115x128xf32> to vector<128xf32>
    %171 = vector.shape_cast %170 : vector<128xf32> to vector<1x128xf32>
    %c6 = arith.constant 6 : index
    %c0_92 = arith.constant 0 : index
    %c0_93 = arith.constant 0 : index
    %172 = vector.load %arg5[%c6, %c0_92, %c0_93] : memref<15x115x128xbf16, #tpu.memory_space<vmem>>, vector<1x115x128xbf16>
    %173 = vector.shape_cast %172 : vector<1x115x128xbf16> to vector<115x128xbf16>
    %174 = arith.extf %173 : vector<115x128xbf16> to vector<115x128xf32>
    %175 = arith.mulf %159, %174 : vector<115x128xf32>
    %cst_94 = arith.constant dense<0.000000e+00> : vector<128xf32>
    %176 = vector.multi_reduction <add>, %175, %cst_94 [0] : vector<115x128xf32> to vector<128xf32>
    %177 = vector.shape_cast %176 : vector<128xf32> to vector<1x128xf32>
    %c9 = arith.constant 9 : index
    %c0_95 = arith.constant 0 : index
    %c0_96 = arith.constant 0 : index
    %178 = vector.load %arg5[%c9, %c0_95, %c0_96] : memref<15x115x128xbf16, #tpu.memory_space<vmem>>, vector<1x115x128xbf16>
    %179 = vector.shape_cast %178 : vector<1x115x128xbf16> to vector<115x128xbf16>
    %180 = arith.extf %179 : vector<115x128xbf16> to vector<115x128xf32>
    %181 = arith.mulf %159, %180 : vector<115x128xf32>
    %cst_97 = arith.constant dense<0.000000e+00> : vector<128xf32>
    %182 = vector.multi_reduction <add>, %181, %cst_97 [0] : vector<115x128xf32> to vector<128xf32>
    %183 = vector.shape_cast %182 : vector<128xf32> to vector<1x128xf32>
    %c12 = arith.constant 12 : index
    %c0_98 = arith.constant 0 : index
    %c0_99 = arith.constant 0 : index
    %184 = vector.load %arg5[%c12, %c0_98, %c0_99] : memref<15x115x128xbf16, #tpu.memory_space<vmem>>, vector<1x115x128xbf16>
    %185 = vector.shape_cast %184 : vector<1x115x128xbf16> to vector<115x128xbf16>
    %186 = arith.extf %185 : vector<115x128xbf16> to vector<115x128xf32>
    %187 = arith.mulf %159, %186 : vector<115x128xf32>
    %cst_100 = arith.constant dense<0.000000e+00> : vector<128xf32>
    %188 = vector.multi_reduction <add>, %187, %cst_100 [0] : vector<115x128xf32> to vector<128xf32>
    %189 = vector.shape_cast %188 : vector<128xf32> to vector<1x128xf32>
    %c1_101 = arith.constant 1 : index
    %c0_102 = arith.constant 0 : index
    %c0_103 = arith.constant 0 : index
    %190 = vector.load %arg3[%c1_101, %c0_102, %c0_103] : memref<3x128x128xbf16, #tpu.memory_space<vmem>>, vector<1x128x128xbf16>
    %191 = vector.shape_cast %190 : vector<1x128x128xbf16> to vector<128x128xbf16>
    %cst_104 = arith.constant dense<0.000000e+00> : vector<115x128xf32>
    %192 = tpu.matmul %85, %191, %cst_104 {dimension_numbers = #tpu.dot_dimension_numbers<[1], [0], [0], [1], [0, 0, 1, 1], [], []>} : vector<115x128xbf16>, vector<128x128xbf16>, vector<115x128xf32> -> vector<115x128xf32>
    %cst_105 = arith.constant dense<0.000000e+00> : vector<115x128xf32>
    %193 = tpu.matmul %150, %191, %cst_105 {dimension_numbers = #tpu.dot_dimension_numbers<[1], [0], [0], [1], [0, 0, 1, 1], [], []>} : vector<115x128xbf16>, vector<128x128xbf16>, vector<115x128xf32> -> vector<115x128xf32>
    %194 = arith.maximumf %192, %193 : vector<115x128xf32>
    %c1_106 = arith.constant 1 : index
    %c0_107 = arith.constant 0 : index
    %c0_108 = arith.constant 0 : index
    %195 = vector.load %arg4[%c1_106, %c0_107, %c0_108] : memref<3x1x128xf32, #tpu.memory_space<vmem>>, vector<1x1x128xf32>
    %196 = vector.shape_cast %195 : vector<1x1x128xf32> to vector<1x128xf32>
    %197 = vector.broadcast %196 : vector<1x128xf32> to vector<115x128xf32>
    %198 = arith.addf %194, %197 : vector<115x128xf32>
    %c1_109 = arith.constant 1 : index
    %c0_110 = arith.constant 0 : index
    %c0_111 = arith.constant 0 : index
    %199 = vector.load %arg5[%c1_109, %c0_110, %c0_111] : memref<15x115x128xbf16, #tpu.memory_space<vmem>>, vector<1x115x128xbf16>
    %200 = vector.shape_cast %199 : vector<1x115x128xbf16> to vector<115x128xbf16>
    %201 = arith.extf %200 : vector<115x128xbf16> to vector<115x128xf32>
    %202 = arith.mulf %198, %201 : vector<115x128xf32>
    %cst_112 = arith.constant dense<0.000000e+00> : vector<128xf32>
    %203 = vector.multi_reduction <add>, %202, %cst_112 [0] : vector<115x128xf32> to vector<128xf32>
    %204 = vector.shape_cast %203 : vector<128xf32> to vector<1x128xf32>
    %205 = arith.addf %165, %204 : vector<1x128xf32>
    %c4 = arith.constant 4 : index
    %c0_113 = arith.constant 0 : index
    %c0_114 = arith.constant 0 : index
    %206 = vector.load %arg5[%c4, %c0_113, %c0_114] : memref<15x115x128xbf16, #tpu.memory_space<vmem>>, vector<1x115x128xbf16>
    %207 = vector.shape_cast %206 : vector<1x115x128xbf16> to vector<115x128xbf16>
    %208 = arith.extf %207 : vector<115x128xbf16> to vector<115x128xf32>
    %209 = arith.mulf %198, %208 : vector<115x128xf32>
    %cst_115 = arith.constant dense<0.000000e+00> : vector<128xf32>
    %210 = vector.multi_reduction <add>, %209, %cst_115 [0] : vector<115x128xf32> to vector<128xf32>
    %211 = vector.shape_cast %210 : vector<128xf32> to vector<1x128xf32>
    %212 = arith.addf %171, %211 : vector<1x128xf32>
    %c7 = arith.constant 7 : index
    %c0_116 = arith.constant 0 : index
    %c0_117 = arith.constant 0 : index
    %213 = vector.load %arg5[%c7, %c0_116, %c0_117] : memref<15x115x128xbf16, #tpu.memory_space<vmem>>, vector<1x115x128xbf16>
    %214 = vector.shape_cast %213 : vector<1x115x128xbf16> to vector<115x128xbf16>
    %215 = arith.extf %214 : vector<115x128xbf16> to vector<115x128xf32>
    %216 = arith.mulf %198, %215 : vector<115x128xf32>
    %cst_118 = arith.constant dense<0.000000e+00> : vector<128xf32>
    %217 = vector.multi_reduction <add>, %216, %cst_118 [0] : vector<115x128xf32> to vector<128xf32>
    %218 = vector.shape_cast %217 : vector<128xf32> to vector<1x128xf32>
    %219 = arith.addf %177, %218 : vector<1x128xf32>
    %c10 = arith.constant 10 : index
    %c0_119 = arith.constant 0 : index
    %c0_120 = arith.constant 0 : index
    %220 = vector.load %arg5[%c10, %c0_119, %c0_120] : memref<15x115x128xbf16, #tpu.memory_space<vmem>>, vector<1x115x128xbf16>
    %221 = vector.shape_cast %220 : vector<1x115x128xbf16> to vector<115x128xbf16>
    %222 = arith.extf %221 : vector<115x128xbf16> to vector<115x128xf32>
    %223 = arith.mulf %198, %222 : vector<115x128xf32>
    %cst_121 = arith.constant dense<0.000000e+00> : vector<128xf32>
    %224 = vector.multi_reduction <add>, %223, %cst_121 [0] : vector<115x128xf32> to vector<128xf32>
    %225 = vector.shape_cast %224 : vector<128xf32> to vector<1x128xf32>
    %226 = arith.addf %183, %225 : vector<1x128xf32>
    %c13 = arith.constant 13 : index
    %c0_122 = arith.constant 0 : index
    %c0_123 = arith.constant 0 : index
    %227 = vector.load %arg5[%c13, %c0_122, %c0_123] : memref<15x115x128xbf16, #tpu.memory_space<vmem>>, vector<1x115x128xbf16>
    %228 = vector.shape_cast %227 : vector<1x115x128xbf16> to vector<115x128xbf16>
    %229 = arith.extf %228 : vector<115x128xbf16> to vector<115x128xf32>
    %230 = arith.mulf %198, %229 : vector<115x128xf32>
    %cst_124 = arith.constant dense<0.000000e+00> : vector<128xf32>
    %231 = vector.multi_reduction <add>, %230, %cst_124 [0] : vector<115x128xf32> to vector<128xf32>
    %232 = vector.shape_cast %231 : vector<128xf32> to vector<1x128xf32>
    %233 = arith.addf %189, %232 : vector<1x128xf32>
    %c2_125 = arith.constant 2 : index
    %c0_126 = arith.constant 0 : index
    %c0_127 = arith.constant 0 : index
    %234 = vector.load %arg3[%c2_125, %c0_126, %c0_127] : memref<3x128x128xbf16, #tpu.memory_space<vmem>>, vector<1x128x128xbf16>
    %235 = vector.shape_cast %234 : vector<1x128x128xbf16> to vector<128x128xbf16>
    %cst_128 = arith.constant dense<0.000000e+00> : vector<115x128xf32>
    %236 = tpu.matmul %85, %235, %cst_128 {dimension_numbers = #tpu.dot_dimension_numbers<[1], [0], [0], [1], [0, 0, 1, 1], [], []>} : vector<115x128xbf16>, vector<128x128xbf16>, vector<115x128xf32> -> vector<115x128xf32>
    %cst_129 = arith.constant dense<0.000000e+00> : vector<115x128xf32>
    %237 = tpu.matmul %150, %235, %cst_129 {dimension_numbers = #tpu.dot_dimension_numbers<[1], [0], [0], [1], [0, 0, 1, 1], [], []>} : vector<115x128xbf16>, vector<128x128xbf16>, vector<115x128xf32> -> vector<115x128xf32>
    %238 = arith.maximumf %236, %237 : vector<115x128xf32>
    %c2_130 = arith.constant 2 : index
    %c0_131 = arith.constant 0 : index
    %c0_132 = arith.constant 0 : index
    %239 = vector.load %arg4[%c2_130, %c0_131, %c0_132] : memref<3x1x128xf32, #tpu.memory_space<vmem>>, vector<1x1x128xf32>
    %240 = vector.shape_cast %239 : vector<1x1x128xf32> to vector<1x128xf32>
    %241 = vector.broadcast %240 : vector<1x128xf32> to vector<115x128xf32>
    %242 = arith.addf %238, %241 : vector<115x128xf32>
    %c2_133 = arith.constant 2 : index
    %c0_134 = arith.constant 0 : index
    %c0_135 = arith.constant 0 : index
    %243 = vector.load %arg5[%c2_133, %c0_134, %c0_135] : memref<15x115x128xbf16, #tpu.memory_space<vmem>>, vector<1x115x128xbf16>
    %244 = vector.shape_cast %243 : vector<1x115x128xbf16> to vector<115x128xbf16>
    %245 = arith.extf %244 : vector<115x128xbf16> to vector<115x128xf32>
    %246 = arith.mulf %242, %245 : vector<115x128xf32>
    %cst_136 = arith.constant dense<0.000000e+00> : vector<128xf32>
    %247 = vector.multi_reduction <add>, %246, %cst_136 [0] : vector<115x128xf32> to vector<128xf32>
    %248 = vector.shape_cast %247 : vector<128xf32> to vector<1x128xf32>
    %249 = arith.addf %205, %248 : vector<1x128xf32>
    %c5 = arith.constant 5 : index
    %c0_137 = arith.constant 0 : index
    %c0_138 = arith.constant 0 : index
    %250 = vector.load %arg5[%c5, %c0_137, %c0_138] : memref<15x115x128xbf16, #tpu.memory_space<vmem>>, vector<1x115x128xbf16>
    %251 = vector.shape_cast %250 : vector<1x115x128xbf16> to vector<115x128xbf16>
    %252 = arith.extf %251 : vector<115x128xbf16> to vector<115x128xf32>
    %253 = arith.mulf %242, %252 : vector<115x128xf32>
    %cst_139 = arith.constant dense<0.000000e+00> : vector<128xf32>
    %254 = vector.multi_reduction <add>, %253, %cst_139 [0] : vector<115x128xf32> to vector<128xf32>
    %255 = vector.shape_cast %254 : vector<128xf32> to vector<1x128xf32>
    %256 = arith.addf %212, %255 : vector<1x128xf32>
    %c8 = arith.constant 8 : index
    %c0_140 = arith.constant 0 : index
    %c0_141 = arith.constant 0 : index
    %257 = vector.load %arg5[%c8, %c0_140, %c0_141] : memref<15x115x128xbf16, #tpu.memory_space<vmem>>, vector<1x115x128xbf16>
    %258 = vector.shape_cast %257 : vector<1x115x128xbf16> to vector<115x128xbf16>
    %259 = arith.extf %258 : vector<115x128xbf16> to vector<115x128xf32>
    %260 = arith.mulf %242, %259 : vector<115x128xf32>
    %cst_142 = arith.constant dense<0.000000e+00> : vector<128xf32>
    %261 = vector.multi_reduction <add>, %260, %cst_142 [0] : vector<115x128xf32> to vector<128xf32>
    %262 = vector.shape_cast %261 : vector<128xf32> to vector<1x128xf32>
    %263 = arith.addf %219, %262 : vector<1x128xf32>
    %c11 = arith.constant 11 : index
    %c0_143 = arith.constant 0 : index
    %c0_144 = arith.constant 0 : index
    %264 = vector.load %arg5[%c11, %c0_143, %c0_144] : memref<15x115x128xbf16, #tpu.memory_space<vmem>>, vector<1x115x128xbf16>
    %265 = vector.shape_cast %264 : vector<1x115x128xbf16> to vector<115x128xbf16>
    %266 = arith.extf %265 : vector<115x128xbf16> to vector<115x128xf32>
    %267 = arith.mulf %242, %266 : vector<115x128xf32>
    %cst_145 = arith.constant dense<0.000000e+00> : vector<128xf32>
    %268 = vector.multi_reduction <add>, %267, %cst_145 [0] : vector<115x128xf32> to vector<128xf32>
    %269 = vector.shape_cast %268 : vector<128xf32> to vector<1x128xf32>
    %270 = arith.addf %226, %269 : vector<1x128xf32>
    %c14 = arith.constant 14 : index
    %c0_146 = arith.constant 0 : index
    %c0_147 = arith.constant 0 : index
    %271 = vector.load %arg5[%c14, %c0_146, %c0_147] : memref<15x115x128xbf16, #tpu.memory_space<vmem>>, vector<1x115x128xbf16>
    %272 = vector.shape_cast %271 : vector<1x115x128xbf16> to vector<115x128xbf16>
    %273 = arith.extf %272 : vector<115x128xbf16> to vector<115x128xf32>
    %274 = arith.mulf %242, %273 : vector<115x128xf32>
    %cst_148 = arith.constant dense<0.000000e+00> : vector<128xf32>
    %275 = vector.multi_reduction <add>, %274, %cst_148 [0] : vector<115x128xf32> to vector<128xf32>
    %276 = vector.shape_cast %275 : vector<128xf32> to vector<1x128xf32>
    %277 = arith.addf %233, %276 : vector<1x128xf32>
    %cst_149 = arith.constant 0.000000e+00 : f32
    %278 = vector.broadcast %cst_149 : f32 to vector<3x128xf32>
    %279 = tpu.concatenate %249, %256, %263, %270, %277, %278 in 0 : vector<1x128xf32>, vector<1x128xf32>, vector<1x128xf32>, vector<1x128xf32>, vector<1x128xf32>, vector<3x128xf32> -> vector<8x128xf32>
    %cst_150 = arith.constant dense<0.000000e+00> : vector<8xf32>
    %280 = vector.multi_reduction <add>, %279, %cst_150 [1] : vector<8x128xf32> to vector<8xf32>
    %281 = vector.shape_cast %280 : vector<8xf32> to vector<8x1xf32>
    %c0_151 = arith.constant 0 : index
    %c0_152 = arith.constant 0 : index
    %282 = vector.load %arg6[%c0_151, %c0_152] : memref<8x1xf32, #tpu.memory_space<vmem>>, vector<8x1xf32>
    %283 = arith.addf %281, %282 : vector<8x1xf32>
    %284 = vector.shape_cast %283 : vector<8x1xf32> to vector<8x1xf32>
    %285 = vector.broadcast %284 : vector<8x1xf32> to vector<8x128xf32>
    %c0_153 = arith.constant 0 : index
    %c0_154 = arith.constant 0 : index
    %286 = vector.load %arg7[%c0_153, %c0_154] : memref<8x128xf32, #tpu.memory_space<vmem>>, vector<8x128xf32>
    tpu.vector_store %arg7[%c0_153, %c0_154], %285 {strides = array<i32>} : memref<8x128xf32, #tpu.memory_space<vmem>>, vector<8x128xf32>,
    return
  }
}

</mosaic_0001>

<bundles_post_ra>
// kernel: cnn_forward.1
= control target key start
LH: loop header
LB: loop body
LE: loop exit
PB: predicated region body
PF: predicated region fallthrough
CT: control target
= control target key end

     0   :  { %v4673_v0 = vmov 0.0   ;;  %vm4674_vm0 = vmmov 0   ;;  %s7672_s1 = inlined_call_operand.vmem [shape: bf16[128,128], index: 1, kind: input, shape index: {}]   ;;  %s7673_s0 = inlined_call_operand.vmem [shape: bf16[480,128], index: 0, kind: input, shape index: {}]   ;;  %s7674_s3 = inlined_call_operand.vmem [shape: bf16[3,128,128], index: 3, kind: input, shape index: {}]   ;;  %s7675_s2 = inlined_call_operand.vmem [shape: f32[1,128], index: 2, kind: input, shape index: {}]   ;;  %s7676_s5 = inlined_call_operand.vmem [shape: bf16[15,115,128], index: 5, kind: input, shape index: {}]   ;;  %s7677_s4 = inlined_call_operand.vmem [shape: f32[3,1,128], index: 4, kind: input, shape index: {}]   ;;  %s7678_s6 = inlined_call_operand.vmem [shape: f32[8,1], index: 6, kind: input, shape index: {}]   ;;  %s7679_s7 = inlined_call_operand.vmem [shape: f32[8,128], index: 7, kind: output, shape index: {}]  }
   0x1   :  { %4255 = vmatprep.subr.bf16.mxu0 %v4673_v0  ;;  %4331 = vmatprep.subr.bf16.mxu1 %v4673_v0  ;;  %v4603_v1 = vld [vmem:[%s7672_s1] sm:$0xff]   ;;  %v4605_v3 = vld [vmem:[%s7672_s1 + $0x8] sm:$0xff]   ;;  %v4607_v5 = vld [vmem:[%s7672_s1 + $0x10] sm:$0xff]  }
   0x2   :  { %v4604_v2 = vld [vmem:[%s7672_s1] sm:$0xff]   ;;  %4271 = vmatprep.mubr.msk.bf16.mxu0 %vm4674_vm0, %v4673_v0  ;;  %4347 = vmatprep.mubr.msk.bf16.mxu1 %vm4674_vm0, %v4673_v0  ;;  %v4606_v4 = vld [vmem:[%s7672_s1 + $0x8] sm:$0xff]   ;;  %v4608_v6 = vld [vmem:[%s7672_s1 + $0x10] sm:$0xff]  }
   0x3   :  { %4256 = vmatpush3.bf16.msra.mxu0 %v4603_v1  ;;  %4332 = vmatpush3.bf16.msra.mxu1 %v4604_v2  ;;  %v4609_v7 = vld [vmem:[%s7672_s1 + $0x18] sm:$0xff]   ;;  %v4611_v9 = vld [vmem:[%s7672_s1 + $0x20] sm:$0xff]   ;;  %v4613_v11 = vld [vmem:[%s7672_s1 + $0x28] sm:$0xff]  }
   0x4   :  { %4257 = vmatprep.subr.bf16.mxu0 %v4673_v0  ;;  %4333 = vmatprep.subr.bf16.mxu1 %v4673_v0  ;;  %v4610_v8 = vld [vmem:[%s7672_s1 + $0x18] sm:$0xff]   ;;  %v4612_v10 = vld [vmem:[%s7672_s1 + $0x20] sm:$0xff]   ;;  %v4614_v12 = vld [vmem:[%s7672_s1 + $0x28] sm:$0xff]  }
   0x5   :  { %v4615_v13 = vld [vmem:[%s7672_s1 + $0x30] sm:$0xff]   ;;  %v4617_v15 = vld [vmem:[%s7672_s1 + $0x38] sm:$0xff]   ;;  %v4619_v17 = vld [vmem:[%s7673_s0] sm:$0xff]  }
   0x6   :  { %v4616_v14 = vld [vmem:[%s7672_s1 + $0x30] sm:$0xff]   ;;  %v4618_v16 = vld [vmem:[%s7672_s1 + $0x38] sm:$0xff]   ;;  %v4621_v19 = vld [vmem:[%s7673_s0 + $0x8] sm:$0xff]  }
   0x7   :  { %4258 = vmatpush3.bf16.msra.mxu0 %v4605_v3  ;;  %4334 = vmatpush3.bf16.msra.mxu1 %v4606_v4  ;;  %v4620_v18 = vld [vmem:[%s7673_s0 + $0x78] sm:$0xff]   ;;  %v4622_v20 = vld [vmem:[%s7673_s0 + $0x80] sm:$0xff]   ;;  %v4623_v21 = vld [vmem:[%s7673_s0 + $0x10] sm:$0xff]  }
   0x8   :  { %4259 = vmatprep.subr.bf16.mxu0 %v4673_v0  ;;  %4335 = vmatprep.subr.bf16.mxu1 %v4673_v0  ;;  %v4624_v22 = vld [vmem:[%s7673_s0 + $0x88] sm:$0xff]   ;;  %v4649_v23 = vld [vmem:[%s7674_s3] sm:$0xff]   ;;  %v4625_v24 = vld [vmem:[%s7673_s0 + $0x18] sm:$0xff]  }
   0x9   :  { %v4626_v25 = vld [vmem:[%s7673_s0 + $0x90] sm:$0xff]   ;;  %v4627_v26 = vld [vmem:[%s7673_s0 + $0x20] sm:$0xff]   ;;  %v4628_v27 = vld [vmem:[%s7673_s0 + $0x98] sm:$0xff]  }
   0xa   :  { %v4629_v28 = vld [vmem:[%s7673_s0 + $0x28] sm:$0xff]   ;;  %v4630_v29 = vld [vmem:[%s7673_s0 + $0xa0] sm:$0xff]   ;;  %v4631_v30 = vld [vmem:[%s7673_s0 + $0x30] sm:$0xff]  }
   0xb   :  { %4260 = vmatpush3.bf16.msra.mxu0 %v4607_v5  ;;  %4336 = vmatpush3.bf16.msra.mxu1 %v4608_v6  ;;  %v4632_v31 = vld [vmem:[%s7673_s0 + $0xa8] sm:$0xff]   ;;  %v4633_v32 = vld [vmem:[%s7673_s0 + $0x38] sm:$0xff]   ;;  %v4634_v33 = vld [vmem:[%s7673_s0 + $0xb0] sm:$0xff]  }
   0xc   :  { %4261 = vmatprep.subr.bf16.mxu0 %v4673_v0  ;;  %4337 = vmatprep.subr.bf16.mxu1 %v4673_v0  ;;  %v4635_v34 = vld [vmem:[%s7673_s0 + $0x40] sm:$0xff]   ;;  %v4636_v35 = vld [vmem:[%s7673_s0 + $0xb8] sm:$0xff]   ;;  %v4637_v36 = vld [vmem:[%s7673_s0 + $0x48] sm:$0xff]  }
   0xd   :  { %v4638_v37 = vld [vmem:[%s7673_s0 + $0xc0] sm:$0xff]   ;;  %v4639_v38 = vld [vmem:[%s7673_s0 + $0x50] sm:$0xff]   ;;  %v4640_v39 = vld [vmem:[%s7673_s0 + $0xc8] sm:$0xff]  }
   0xe   :  { %v4641_v40 = vld [vmem:[%s7673_s0 + $0x58] sm:$0xff]   ;;  %v4642_v41 = vld [vmem:[%s7673_s0 + $0xd0] sm:$0xff]   ;;  %v4643_v42 = vld [vmem:[%s7673_s0 + $0x60] sm:$0xff]  }
   0xf   :  { %4262 = vmatpush3.bf16.msra.mxu0 %v4609_v7  ;;  %4338 = vmatpush3.bf16.msra.mxu1 %v4610_v8  ;;  %v4644_v43 = vld [vmem:[%s7673_s0 + $0xd8] sm:$0xff]   ;;  %v4650_v44 = vld [vmem:[%s7674_s3 + $0x8] sm:$0xff]   ;;  %v4646_v46 = vld [vmem:[%s7673_s0 + $0xe0] sm:$0xff]  }
  0x10   :  { %4263 = vmatprep.subr.bf16.mxu0 %v4673_v0  ;;  %4339 = vmatprep.subr.bf16.mxu1 %v4673_v0  ;;  %v4645_v45 = vld [vmem:[%s7673_s0 + $0x68] sm:$0xff]   ;;  %v4647_v47 = vld [vmem:[%s7673_s0 + $0x70] sm:$0xff]   ;;  %v4652_v50 = vld [vmem:[%s7674_s3 + $0x18] sm:$0xff]  }
  0x11   :  { %v4648_v48 = vld [vmem:[%s7673_s0 + $0xe8] sm:$0xff]   ;;  %v4651_v49 = vld [vmem:[%s7674_s3 + $0x10] sm:$0xff]   ;;  %v4653_v51 = vld [vmem:[%s7674_s3 + $0x20] sm:$0xff]  }
  0x12   :  { %v4654_v52 = vld [vmem:[%s7674_s3 + $0x28] sm:$0xff]   ;;  %v4655_v53 = vld [vmem:[%s7674_s3 + $0x30] sm:$0xff]   ;;  %v4656_v54 = vld [vmem:[%s7674_s3 + $0x38] sm:$0xff]  }
  0x13   :  { %4264 = vmatpush3.bf16.msra.mxu0 %v4611_v9  ;;  %4340 = vmatpush3.bf16.msra.mxu1 %v4612_v10  ;;  %v4977_v10 = vld [vmem:[%s7674_s3 + $0x40] sm:$0xff]  }
  0x14   :  { %4265 = vmatprep.subr.bf16.mxu0 %v4673_v0  ;;  %4341 = vmatprep.subr.bf16.mxu1 %v4673_v0  ;;  %7825 = vst [vmem:[#allocation4_spill] sm:$0xff] %v4977_v10 }
  0x17   :  { %4266 = vmatpush3.bf16.msra.mxu0 %v4613_v11  ;;  %4342 = vmatpush3.bf16.msra.mxu1 %v4614_v12 }
  0x18   :  { %4267 = vmatprep.subr.bf16.mxu0 %v4673_v0  ;;  %4343 = vmatprep.subr.bf16.mxu1 %v4673_v0 }
  0x1b   :  { %4268 = vmatpush3.bf16.msra.mxu0 %v4615_v13  ;;  %4344 = vmatpush3.bf16.msra.mxu1 %v4616_v14 }
  0x1c   :  { %4269 = vmatprep.subr.bf16.mxu0 %v4673_v0  ;;  %4345 = vmatprep.subr.bf16.mxu1 %v4673_v0 }
  0x1f   :  { %4270 = vmatpush3.bf16.msra.mxu0 %v4617_v15  ;;  %4346 = vmatpush3.bf16.msra.mxu1 %v4618_v16 }
  0x20   :  { %4407 = vmatprep.subr.bf16.mxu0 %v4649_v23  ;;  %4439 = vmatprep.subr.bf16.mxu1 %v4649_v23 }
  0x22   :  { %4272 = vmatmul.mubr.bf16.vlgmr.msra.gmra.mrb[0].mxu0 %v4619_v17  ;;  %4348 = vmatmul.mubr.bf16.vlgmr.msra.gmra.mrb[0].mxu1 %v4620_v18 }
  0x23   :  { %4275 = vmatprep.mubr.msk.bf16.mxu0 %vm4674_vm0, %v4673_v0  ;;  %4351 = vmatprep.mubr.msk.bf16.mxu1 %vm4674_vm0, %v4673_v0 }
  0x24   :  { %4440 = vmatpush3.bf16.msra.mxu1 %v4649_v23  ;;  %4408 = vmatpush3.bf16.msra.mxu0 %v4649_v23 }
  0x25   :  { %4409 = vmatprep.subr.bf16.mxu0 %v4650_v44  ;;  %4441 = vmatprep.subr.bf16.mxu1 %v4650_v44 }
  0x28   :  { %4410 = vmatpush3.bf16.msra.mxu0 %v4650_v44  ;;  %4442 = vmatpush3.bf16.msra.mxu1 %v4650_v44 }
  0x29   :  { %4411 = vmatprep.subr.bf16.mxu0 %v4651_v49  ;;  %4443 = vmatprep.subr.bf16.mxu1 %v4651_v49 }
  0x2a   :  { %4276 = vmatmul.mubr.bf16.gmra.mrb[4].mxu0 %v4621_v19  ;;  %4352 = vmatmul.mubr.bf16.gmra.mrb[4].mxu1 %v4622_v20 }
  0x2b   :  { %4279 = vmatprep.mubr.msk.bf16.mxu0 %vm4674_vm0, %v4673_v0  ;;  %4355 = vmatprep.mubr.msk.bf16.mxu1 %vm4674_vm0, %v4673_v0 }
  0x2c   :  { %4412 = vmatpush3.bf16.msra.mxu0 %v4651_v49  ;;  %4444 = vmatpush3.bf16.msra.mxu1 %v4651_v49 }
  0x2d   :  { %4413 = vmatprep.subr.bf16.mxu0 %v4652_v50  ;;  %4445 = vmatprep.subr.bf16.mxu1 %v4652_v50 }
  0x30   :  { %4414 = vmatpush3.bf16.msra.mxu0 %v4652_v50  ;;  %4446 = vmatpush3.bf16.msra.mxu1 %v4652_v50 }
  0x31   :  { %4415 = vmatprep.subr.bf16.mxu0 %v4653_v51  ;;  %4447 = vmatprep.subr.bf16.mxu1 %v4653_v51 }
  0x32   :  { %4280 = vmatmul.mubr.bf16.gmra.mrb[8].mxu0 %v4623_v21  ;;  %4356 = vmatmul.mubr.bf16.gmra.mrb[8].mxu1 %v4624_v22 }
  0x33   :  { %4283 = vmatprep.mubr.msk.bf16.mxu0 %vm4674_vm0, %v4673_v0  ;;  %4359 = vmatprep.mubr.msk.bf16.mxu1 %vm4674_vm0, %v4673_v0 }
  0x34   :  { %4416 = vmatpush3.bf16.msra.mxu0 %v4653_v51  ;;  %4448 = vmatpush3.bf16.msra.mxu1 %v4653_v51 }
  0x35   :  { %4417 = vmatprep.subr.bf16.mxu0 %v4654_v52  ;;  %4449 = vmatprep.subr.bf16.mxu1 %v4654_v52 }
  0x38   :  { %4418 = vmatpush3.bf16.msra.mxu0 %v4654_v52  ;;  %4450 = vmatpush3.bf16.msra.mxu1 %v4654_v52 }
  0x39   :  { %4419 = vmatprep.subr.bf16.mxu0 %v4655_v53  ;;  %4451 = vmatprep.subr.bf16.mxu1 %v4655_v53 }
  0x3a   :  { %4284 = vmatmul.mubr.bf16.gmra.mrb[12].mxu0 %v4625_v24  ;;  %4360 = vmatmul.mubr.bf16.gmra.mrb[12].mxu1 %v4626_v25 }
  0x3b   :  { %4287 = vmatprep.mubr.msk.bf16.mxu0 %vm4674_vm0, %v4673_v0  ;;  %4363 = vmatprep.mubr.msk.bf16.mxu1 %vm4674_vm0, %v4673_v0 }
  0x3c   :  { %4420 = vmatpush3.bf16.msra.mxu0 %v4655_v53  ;;  %4452 = vmatpush3.bf16.msra.mxu1 %v4655_v53 }
  0x3d   :  { %4421 = vmatprep.subr.bf16.mxu0 %v4656_v54  ;;  %4453 = vmatprep.subr.bf16.mxu1 %v4656_v54 }
  0x40   :  { %4422 = vmatpush3.bf16.msra.mxu0 %v4656_v54  ;;  %4454 = vmatpush3.bf16.msra.mxu1 %v4656_v54 }
  0x41   :  { %4471 = vmatprep.subr.bf16.mxu0 %v4977_v10  ;;  %4503 = vmatprep.subr.bf16.mxu1 %v4977_v10 }
  0x42   :  { %4288 = vmatmul.mubr.bf16.gmra.mrb[16].mxu0 %v4627_v26  ;;  %4364 = vmatmul.mubr.bf16.gmra.mrb[16].mxu1 %v4628_v27 }
  0x43   :  { %4291 = vmatprep.mubr.msk.bf16.mxu0 %vm4674_vm0, %v4673_v0  ;;  %4367 = vmatprep.mubr.msk.bf16.mxu1 %vm4674_vm0, %v4673_v0 }
  0x4a   :  { %4292 = vmatmul.mubr.bf16.gmra.mrb[20].mxu0 %v4629_v28  ;;  %4368 = vmatmul.mubr.bf16.gmra.mrb[20].mxu1 %v4630_v29 }
  0x4b   :  { %4295 = vmatprep.mubr.msk.bf16.mxu0 %vm4674_vm0, %v4673_v0  ;;  %4371 = vmatprep.mubr.msk.bf16.mxu1 %vm4674_vm0, %v4673_v0 }
  0x52   :  { %4296 = vmatmul.mubr.bf16.gmra.mrb[24].mxu0 %v4631_v30  ;;  %4372 = vmatmul.mubr.bf16.gmra.mrb[24].mxu1 %v4632_v31 }
  0x53   :  { %4299 = vmatprep.mubr.msk.bf16.mxu0 %vm4674_vm0, %v4673_v0  ;;  %4375 = vmatprep.mubr.msk.bf16.mxu1 %vm4674_vm0, %v4673_v0 }
  0x5a   :  { %4300 = vmatmul.mubr.bf16.gmra.mrb[28].mxu0 %v4633_v32  ;;  %4376 = vmatmul.mubr.bf16.gmra.mrb[28].mxu1 %v4634_v33 }
  0x5b   :  { %4303 = vmatprep.mubr.msk.bf16.mxu0 %vm4674_vm0, %v4673_v0  ;;  %4379 = vmatprep.mubr.msk.bf16.mxu1 %vm4674_vm0, %v4673_v0 }
  0x62   :  { %4304 = vmatmul.mubr.bf16.gmra.mrb[32].mxu0 %v4635_v34  ;;  %4380 = vmatmul.mubr.bf16.gmra.mrb[32].mxu1 %v4636_v35 }
  0x63   :  { %4307 = vmatprep.mubr.msk.bf16.mxu0 %vm4674_vm0, %v4673_v0  ;;  %4383 = vmatprep.mubr.msk.bf16.mxu1 %vm4674_vm0, %v4673_v0 }
  0x6a   :  { %4308 = vmatmul.mubr.bf16.gmra.mrb[36].mxu0 %v4637_v36  ;;  %4384 = vmatmul.mubr.bf16.gmra.mrb[36].mxu1 %v4638_v37 }
  0x6b   :  { %4311 = vmatprep.mubr.msk.bf16.mxu0 %vm4674_vm0, %v4673_v0  ;;  %4387 = vmatprep.mubr.msk.bf16.mxu1 %vm4674_vm0, %v4673_v0 }
  0x72   :  { %4312 = vmatmul.mubr.bf16.gmra.mrb[40].mxu0 %v4639_v38  ;;  %4388 = vmatmul.mubr.bf16.gmra.mrb[40].mxu1 %v4640_v39 }
  0x73   :  { %4315 = vmatprep.mubr.msk.bf16.mxu0 %vm4674_vm0, %v4673_v0  ;;  %4391 = vmatprep.mubr.msk.bf16.mxu1 %vm4674_vm0, %v4673_v0 }
  0x7a   :  { %4316 = vmatmul.mubr.bf16.gmra.mrb[44].mxu0 %v4641_v40  ;;  %4392 = vmatmul.mubr.bf16.gmra.mrb[44].mxu1 %v4642_v41 }
  0x7b   :  { %4319 = vmatprep.mubr.msk.bf16.mxu0 %vm4674_vm0, %v4673_v0  ;;  %4395 = vmatprep.mubr.msk.bf16.mxu1 %vm4674_vm0, %v4673_v0 }
  0x82   :  { %4320 = vmatmul.mubr.bf16.gmra.mrb[48].mxu0 %v4643_v42  ;;  %4396 = vmatmul.mubr.bf16.gmra.mrb[48].mxu1 %v4644_v43 }
  0x83   :  { %4323 = vmatprep.mubr.msk.bf16.mxu0 %vm4674_vm0, %v4673_v0  ;;  %4399 = vmatprep.mubr.msk.bf16.mxu1 %vm4674_vm0, %v4673_v0 }
  0x8a   :  { %4324 = vmatmul.mubr.bf16.gmra.mrb[52].mxu0 %v4645_v45  ;;  %4400 = vmatmul.mubr.bf16.gmra.mrb[52].mxu1 %v4646_v46  ;;  %v805_v45 = vlaneseq }
  0x8b   :  { %4327 = vmatprep.mubr.msk.bf16.mxu0 %vm4674_vm0, %v4673_v0  ;;  %4403 = vmatprep.mubr.msk.bf16.mxu1 %vm4674_vm0, %v4673_v0 }
  0x8c   :  { %v5017_v49 = vand.u32 127, %v805_v45 }
  0x8e   :  { %vm870_vm1 = vcmp.ge.s32.totalorder %v5017_v49, 18  ;;  %vm871_vm2 = vcmp.lt.s32.totalorder %v5017_v49, 36  ;;  %vm823_vm3 = vcmp.lt.s32.totalorder %v5017_v49, 18  ;;  %vm918_vm5 = vcmp.ge.s32.totalorder %v5017_v49, 36 }
  0x8f   :  { %vm5034_vm4 = vmand %vm870_vm1, %vm871_vm2  ;;  %vm919_vm6 = vcmp.lt.s32.totalorder %v5017_v49, 54  ;;  %vm966_vm7 = vcmp.ge.s32.totalorder %v5017_v49, 54  ;;  %vm967_vm8 = vcmp.lt.s32.totalorder %v5017_v49, 72  ;;  %vm1014_vm9 = vcmp.ge.s32.totalorder %v5017_v49, 72 }
  0x90   :  { %vm1015_vm10 = vcmp.lt.s32.totalorder %v5017_v49, 90  ;;  %vm5063_vm11 = vmand %vm918_vm5, %vm919_vm6  ;;  %vm1110_vm12 = vcmp.ge.s32.totalorder %v5017_v49, 108  ;;  %vm1111_vm13 = vcmp.lt.s32.totalorder %v5017_v49, 126  ;;  %vm1062_vm15 = vcmp.ge.s32.totalorder %v5017_v49, 90 }
  0x91   :  { %vm5073_vm14 = vmand %vm966_vm7, %vm967_vm8  ;;  %vm1063_vm0 = vcmp.lt.s32.totalorder %v5017_v49, 108  ;;  %vm3284_vm6 = vcmask 1041408   ;;  %vm3287_vm7 = vcmask 1043456   ;;  %vm3289_vm8 = vcmask 1044480  }
  0x92   :  { %4328 = vmatmul.mubr.bf16.gmra.mrb[56].mxu0 %v4647_v47  ;;  %4404 = vmatmul.mubr.bf16.gmra.mrb[56].mxu1 %v4648_v48  ;;  %vm5086_vm1 = vmand %vm1014_vm9, %vm1015_vm10 }
  0x93   :  { %vm5097_vm2 = vmand %vm1110_vm12, %vm1111_vm13 }
  0x94   :  { %vm5109_vm5 = vmand %vm1062_vm15, %vm1063_vm0 }
  0xf5   :  { %v4954_v55 = vpop.f32.mrb[0].mxu0  ;;  %v4956_v56 = vpop.f32.mrb[0].mxu1 }
  0xf6   :  { %v4273_v57 = vpop.f32.mrb[1].mxu0  ;;  %v4349_v58 = vpop.f32.mrb[1].mxu1 }
  0xf7   :  { %v4958_v59 = vpop.f32.mrb[2].mxu0  ;;  %v4960_v60 = vpop.f32.mrb[2].mxu1  ;;  %v5026_v57 = vld [vmem:[%s7675_s2] ss:$0 sm:$0xff] }
  0xf8   :  { %v4274_v61 = vpop.f32.mrb[3].mxu0  ;;  %v4350_v62 = vpop.f32.mrb[3].mxu1 }
  0xfd   :  { %v4962_v63 = vpop.f32.mrb[4].mxu0  ;;  %v4964_v0 = vpop.f32.mrb[4].mxu1 }
  0xfe   :  { %v4277_v1 = vpop.f32.mrb[5].mxu0  ;;  %v4353_v2 = vpop.f32.mrb[5].mxu1 }
  0xff   :  { %v4966_v3 = vpop.f32.mrb[6].mxu0  ;;  %v4968_v4 = vpop.f32.mrb[6].mxu1 }
 0x100   :  { %v4278_v5 = vpop.f32.mrb[7].mxu0  ;;  %v4354_v6 = vpop.f32.mrb[7].mxu1 }
 0x105   :  { %v4970_v7 = vpop.f32.mrb[8].mxu0  ;;  %v4972_v8 = vpop.f32.mrb[8].mxu1 }
 0x106   :  { %v4281_v9 = vpop.f32.mrb[9].mxu0  ;;  %v4357_v11 = vpop.f32.mrb[9].mxu1 }
 0x107   :  { %v4979_v12 = vpop.f32.mrb[10].mxu0  ;;  %v4981_v13 = vpop.f32.mrb[10].mxu1 }
 0x108   :  { %v4282_v14 = vpop.f32.mrb[11].mxu0  ;;  %v4358_v15 = vpop.f32.mrb[11].mxu1 }
 0x10d   :  { %v4985_v16 = vpop.f32.mrb[12].mxu0  ;;  %v4987_v17 = vpop.f32.mrb[12].mxu1 }
 0x10e   :  { %v4285_v18 = vpop.f32.mrb[13].mxu0  ;;  %v4361_v19 = vpop.f32.mrb[13].mxu1 }
 0x10f   :  { %v4989_v20 = vpop.f32.mrb[14].mxu0  ;;  %v4991_v21 = vpop.f32.mrb[14].mxu1 }
 0x110   :  { %v4286_v22 = vpop.f32.mrb[15].mxu0  ;;  %v4362_v23 = vpop.f32.mrb[15].mxu1 }
 0x115   :  { %v4993_v24 = vpop.f32.mrb[16].mxu0  ;;  %v4995_v25 = vpop.f32.mrb[16].mxu1 }
 0x116   :  { %v4289_v26 = vpop.f32.mrb[17].mxu0  ;;  %v4365_v27 = vpop.f32.mrb[17].mxu1 }
 0x117   :  { %v4997_v28 = vpop.f32.mrb[18].mxu0  ;;  %v4999_v29 = vpop.f32.mrb[18].mxu1 }
 0x118   :  { %v4290_v30 = vpop.f32.mrb[19].mxu0  ;;  %v4366_v31 = vpop.f32.mrb[19].mxu1 }
 0x11d   :  { %v5001_v32 = vpop.f32.mrb[20].mxu0  ;;  %v5003_v33 = vpop.f32.mrb[20].mxu1 }
 0x11e   :  { %v4293_v34 = vpop.f32.mrb[21].mxu0  ;;  %v4369_v35 = vpop.f32.mrb[21].mxu1 }
 0x11f   :  { %v5005_v36 = vpop.f32.mrb[22].mxu0  ;;  %v5007_v37 = vpop.f32.mrb[22].mxu1 }
 0x120   :  { %v4294_v38 = vpop.f32.mrb[23].mxu0  ;;  %v4370_v39 = vpop.f32.mrb[23].mxu1 }
 0x125   :  { %v5009_v40 = vpop.f32.mrb[24].mxu0  ;;  %v5011_v41 = vpop.f32.mrb[24].mxu1 }
 0x126   :  { %7826 = vst [vmem:[#allocation5_spill] sm:$0xff] %v5011_v41  ;;  %v4297_v42 = vpop.f32.mrb[25].mxu0  ;;  %v4373_v43 = vpop.f32.mrb[25].mxu1 }
 0x127   :  { %v5013_v44 = vpop.f32.mrb[26].mxu0  ;;  %v5015_v46 = vpop.f32.mrb[26].mxu1 }
 0x128   :  { %7827 = vst [vmem:[#allocation6_spill] sm:$0xff] %v5013_v44  ;;  %7828 = vst [vmem:[#allocation7_spill] sm:$0xff] %v5015_v46  ;;  %v4298_v47 = vpop.f32.mrb[27].mxu0  ;;  %v4374_v48 = vpop.f32.mrb[27].mxu1 }
 0x12d   :  { %v5019_v50 = vpop.f32.mrb[28].mxu0  ;;  %v5021_v51 = vpop.f32.mrb[28].mxu1 }
 0x12e   :  { %7829 = vst [vmem:[#allocation8_spill] sm:$0xff] %v5019_v50  ;;  %7830 = vst [vmem:[#allocation9_spill] sm:$0xff] %v5021_v51  ;;  %v4301_v52 = vpop.f32.mrb[29].mxu0  ;;  %v4377_v53 = vpop.f32.mrb[29].mxu1 }
 0x12f   :  { %v304_v54 = vpop.f32.mrb[30].mxu0  ;;  %v693_v61 = vpop.f32.mrb[30].mxu1 }
 0x130   :  { %v364_v58 = vmax.f32 %v4954_v55, %v304_v54  ;;  %v4302_v62 = vpop.f32.mrb[31].mxu0  ;;  %v753_v1 = vmax.f32 %v4956_v56, %v693_v61  ;;  %v4378_v2 = vpop.f32.mrb[31].mxu1  ;;  %v4666_v61 = vld [vmem:[%s7674_s3 + $0x88] sm:$0xff]  }
 0x132   :  { %v386_v5 = vadd.f32 %v5026_v57, %v364_v58  ;;  %v775_v9 = vadd.f32 %v5026_v57, %v753_v1 }
 0x134   :  { %401 = vst [vmem:[#allocation2] sm:$0xff] %v386_v5  ;;  %v825_v11 = vsel %vm823_vm3, %v386_v5, 0.0  ;;  %790 = vst [vmem:[#allocation3] sm:$0xff] %v775_v9  ;;  %v873_v56 = vsel %vm5034_vm4, %v775_v9, 0.0 }
 0x135   :  { %v309_v55 = vpop.f32.mrb[32].mxu0  ;;  %v698_v15 = vpop.f32.mrb[32].mxu1  ;;  %v5044_v19 = vadd.f32 %v873_v56, %v825_v11 }
 0x136   :  { %v365_v14 = vmax.f32 %v4958_v59, %v309_v55  ;;  %v4305_v18 = vpop.f32.mrb[33].mxu0  ;;  %v754_v22 = vmax.f32 %v4960_v60, %v698_v15  ;;  %v4381_v23 = vpop.f32.mrb[33].mxu1  ;;  %v1151_v15 = vsel %vm823_vm3, %v775_v9, 0.0 }
 0x137   :  { %v312_v26 = vpop.f32.mrb[34].mxu0  ;;  %v701_v31 = vpop.f32.mrb[34].mxu1 }
 0x138   :  { %v387_v27 = vadd.f32 %v5026_v57, %v365_v14  ;;  %v366_v30 = vmax.f32 %v4962_v63, %v312_v26  ;;  %v4306_v34 = vpop.f32.mrb[35].mxu0  ;;  %v776_v35 = vadd.f32 %v5026_v57, %v754_v22  ;;  %v755_v38 = vmax.f32 %v4964_v0, %v701_v31  ;;  %v4382_v39 = vpop.f32.mrb[35].mxu1 }
 0x13a   :  { %402 = vst [vmem:[#allocation2 + $0x8] sm:$0xff] %v387_v27  ;;  %v388_v59 = vadd.f32 %v5026_v57, %v366_v30  ;;  %v826_v60 = vsel %vm823_vm3, %v387_v27, 0.0  ;;  %791 = vst [vmem:[#allocation3 + $0x8] sm:$0xff] %v776_v35  ;;  %v777_v63 = vadd.f32 %v5026_v57, %v755_v38  ;;  %v874_v0 = vsel %vm5034_vm4, %v776_v35, 0.0 }
 0x13b   :  { %v889_v42 = vadd.f32 %v874_v0, %v826_v60  ;;  %v1152_v30 = vsel %vm823_vm3, %v776_v35, 0.0 }
 0x13c   :  { %403 = vst [vmem:[#allocation2 + $0x10] sm:$0xff] %v388_v59  ;;  %v827_v45 = vsel %vm823_vm3, %v388_v59, 0.0  ;;  %792 = vst [vmem:[#allocation3 + $0x10] sm:$0xff] %v777_v63  ;;  %v875_v52 = vsel %vm5034_vm4, %v777_v63, 0.0  ;;  %v5127_v31 = vsel %vm823_vm3, %v777_v63, 0.0 }
 0x13d   :  { %v317_v47 = vpop.f32.mrb[36].mxu0  ;;  %v706_v54 = vpop.f32.mrb[36].mxu1  ;;  %v5090_v62 = vadd.f32 %v875_v52, %v827_v45 }
 0x13e   :  { %v367_v53 = vmax.f32 %v4966_v3, %v317_v47  ;;  %v4309_v58 = vpop.f32.mrb[37].mxu0  ;;  %v756_v1 = vmax.f32 %v4968_v4, %v706_v54  ;;  %v4385_v2 = vpop.f32.mrb[37].mxu1  ;;  %v4667_v3 = vld [vmem:[%s7674_s3 + $0x90] sm:$0xff]   ;;  %v4668_v4 = vld [vmem:[%s7674_s3 + $0x98] sm:$0xff]  }
 0x13f   :  { %v320_v5 = vpop.f32.mrb[38].mxu0  ;;  %v709_v56 = vpop.f32.mrb[38].mxu1 }
 0x140   :  { %v5102_v11 = vadd.f32 %v5026_v57, %v367_v53  ;;  %v368_v55 = vmax.f32 %v4970_v7, %v320_v5  ;;  %v4310_v14 = vpop.f32.mrb[39].mxu0  ;;  %v5116_v18 = vadd.f32 %v5026_v57, %v756_v1  ;;  %v757_v22 = vmax.f32 %v4972_v8, %v709_v56  ;;  %v4386_v23 = vpop.f32.mrb[39].mxu1 }
 0x141   :  { %v903_v7 = vld [vmem:[#allocation2 + $0x1] sm:$0xff]  ;;  %v951_v34 = vld [vmem:[#allocation3 + $0x1] sm:$0xff] }
 0x142   :  { %v5119_v26 = vld [vmem:[#allocation2 + $0x2] sm:$0xff]  ;;  %404 = vst [vmem:[#allocation2 + $0x18] sm:$0xff] %v5102_v11  ;;  %v5131_v9 = vadd.f32 %v5026_v57, %v368_v55  ;;  %v921_v8 = vsel %vm5063_vm11, %v903_v7, 0.0  ;;  %v5138_v39 = vld [vmem:[#allocation3 + $0x2] sm:$0xff]  ;;  %793 = vst [vmem:[#allocation3 + $0x18] sm:$0xff] %v5116_v18  ;;  %v5145_v59 = vadd.f32 %v5026_v57, %v757_v22  ;;  %v969_v0 = vsel %vm5073_vm14, %v951_v34, 0.0 }
 0x143   :  { %v5121_v27 = vld [vmem:[#allocation2 + $0x3] sm:$0xff]  ;;  %v1017_v38 = vsel %vm5086_vm1, %v5119_v26, 0.0  ;;  %v936_v63 = vadd.f32 %v921_v8, %v5044_v19  ;;  %v1065_v47 = vsel %vm5109_vm5, %v5138_v39, 0.0  ;;  %v5153_v52 = vld [vmem:[#allocation2 + $0xb] sm:$0xff]  ;;  %v1181_v2 = vsel %vm5034_vm4, %v903_v7, 0.0 }
 0x144   :  { %v1113_v35 = vsel %vm5097_vm2, %v5121_v27, 0.0  ;;  %v904_v60 = vld [vmem:[#allocation2 + $0x9] sm:$0xff]  ;;  %405 = vst [vmem:[#allocation2 + $0x20] sm:$0xff] %v5131_v9  ;;  %v952_v54 = vld [vmem:[#allocation3 + $0x9] sm:$0xff]  ;;  %v1114_v1 = vsel %vm5097_vm2, %v5153_v52, 0.0  ;;  %794 = vst [vmem:[#allocation3 + $0x20] sm:$0xff] %v5145_v59  ;;  %v1196_v46 = vadd.f32 %v1181_v2, %v1151_v15 }
 0x145   :  { %v1000_v45 = vld [vmem:[#allocation2 + $0xa] sm:$0xff]  ;;  %v922_v53 = vsel %vm5063_vm11, %v904_v60, 0.0  ;;  %v1048_v19 = vld [vmem:[#allocation3 + $0xa] sm:$0xff]  ;;  %v325_v5 = vpop.f32.mrb[40].mxu0  ;;  %v970_v56 = vsel %vm5073_vm14, %v952_v54, 0.0  ;;  %v984_v14 = vadd.f32 %v969_v0, %v936_v63  ;;  %v714_v8 = vpop.f32.mrb[40].mxu1 }
 0x146   :  { %v1018_v58 = vsel %vm5086_vm1, %v1000_v45, 0.0  ;;  %v937_v55 = vadd.f32 %v922_v53, %v889_v42  ;;  %v1066_v22 = vsel %vm5109_vm5, %v1048_v19, 0.0  ;;  %v369_v23 = vmax.f32 %v4979_v12, %v325_v5  ;;  %v4313_v51 = vpop.f32.mrb[41].mxu0  ;;  %v4389_v53 = vpop.f32.mrb[41].mxu1 }
 0x147   :  { %v1182_v50 = vsel %vm5034_vm4, %v904_v60, 0.0  ;;  %v1211_v7 = vsel %vm5063_vm11, %v951_v34, 0.0  ;;  %v758_v42 = vmax.f32 %v4981_v13, %v714_v8  ;;  %v328_v44 = vpop.f32.mrb[42].mxu0  ;;  %v1032_v63 = vadd.f32 %v1017_v38, %v984_v14  ;;  %v717_v51 = vpop.f32.mrb[42].mxu1 }
 0x148   :  { %v985_v41 = vadd.f32 %v970_v56, %v937_v55  ;;  %v1197_v0 = vadd.f32 %v1182_v50, %v1152_v30  ;;  %v5177_v10 = vadd.f32 %v5026_v57, %v369_v23  ;;  %v370_v12 = vmax.f32 %v4985_v16, %v328_v44  ;;  %v4314_v5 = vpop.f32.mrb[43].mxu0  ;;  %v4390_v2 = vpop.f32.mrb[43].mxu1  ;;  %v1331_v30 = vld [vmem:[#allocation3 + $0x3] sm:$0xff] }
 0x149   :  { %v1212_v15 = vsel %vm5063_vm11, %v952_v54, 0.0  ;;  %v1226_v60 = vadd.f32 %v1211_v7, %v1196_v46  ;;  %v5183_v34 = vadd.f32 %v5026_v57, %v758_v42  ;;  %v759_v13 = vmax.f32 %v4987_v17, %v717_v51 }
 0x14a   :  { %v1033_v55 = vadd.f32 %v1018_v58, %v985_v41  ;;  %v1080_v38 = vadd.f32 %v1065_v47, %v1032_v63  ;;  %406 = vst [vmem:[#allocation2 + $0x28] sm:$0xff] %v5177_v10  ;;  %v5188_v50 = vadd.f32 %v5026_v57, %v370_v12  ;;  %v1227_v16 = vadd.f32 %v1212_v15, %v1197_v0  ;;  %v1332_v58 = vld [vmem:[#allocation3 + $0xb] sm:$0xff]  ;;  %v5220_v63 = vld [vmem:[#allocation2 + $0x11] sm:$0xff] }
 0x14b   :  { %v1241_v44 = vsel %vm5073_vm14, %v5119_v26, 0.0  ;;  %v1242_v46 = vsel %vm5073_vm14, %v1000_v45, 0.0  ;;  %795 = vst [vmem:[#allocation3 + $0x28] sm:$0xff] %v5183_v34  ;;  %v5197_v17 = vadd.f32 %v5026_v57, %v759_v13  ;;  %v1271_v26 = vsel %vm5086_vm1, %v5138_v39, 0.0  ;;  %v5228_v15 = vld [vmem:[#allocation2 + $0x19] sm:$0xff] }
 0x14c   :  { %v1081_v41 = vadd.f32 %v1066_v22, %v1033_v55  ;;  %v1128_v47 = vadd.f32 %v1113_v35, %v1080_v38  ;;  %v1256_v54 = vadd.f32 %v1241_v44, %v1226_v60  ;;  %407 = vst [vmem:[#allocation2 + $0x30] sm:$0xff] %v5188_v50  ;;  %v1257_v56 = vadd.f32 %v1242_v46, %v1227_v16  ;;  %v5234_v38 = vld [vmem:[#allocation3 + $0x11] sm:$0xff]  ;;  %v5236_v16 = vld [vmem:[#allocation3 + $0x19] sm:$0xff] }
 0x14d   :  { %v1272_v45 = vsel %vm5086_vm1, %v1048_v19, 0.0  ;;  %v1301_v14 = vsel %vm5109_vm5, %v5121_v27, 0.0  ;;  %796 = vst [vmem:[#allocation3 + $0x30] sm:$0xff] %v5197_v17  ;;  %v333_v22 = vpop.f32.mrb[44].mxu0  ;;  %v1302_v8 = vsel %vm5109_vm5, %v5153_v52, 0.0  ;;  %v1346_v7 = vsel %vm5097_vm2, %v1331_v30, 0.0 }
 0x14e   :  { %v1129_v35 = vadd.f32 %v1114_v1, %v1081_v41  ;;  %v1286_v23 = vadd.f32 %v1271_v26, %v1256_v54  ;;  %v371_v39 = vmax.f32 %v4989_v20, %v333_v22  ;;  %v722_v42 = vpop.f32.mrb[44].mxu1  ;;  %v4317_v19 = vpop.f32.mrb[45].mxu0  ;;  %v1287_v53 = vadd.f32 %v1272_v45, %v1257_v56  ;;  %v5248_v54 = vld [vmem:[#allocation2 + $0x1a] sm:$0xff]  ;;  %v5258_v45 = vld [vmem:[#allocation3 + $0x12] sm:$0xff] }
 0x14f   :  { %v1347_v27 = vsel %vm5097_vm2, %v1332_v58, 0.0  ;;  %v828_v1 = vsel %vm823_vm3, %v5102_v11, 0.0  ;;  %v760_v0 = vmax.f32 %v4991_v21, %v722_v42  ;;  %v4393_v52 = vpop.f32.mrb[45].mxu1  ;;  %v336_v12 = vpop.f32.mrb[46].mxu0  ;;  %v876_v20 = vsel %vm5034_vm4, %v5116_v18, 0.0  ;;  %v5262_v22 = vld [vmem:[#allocation2 + $0x13] sm:$0xff] }
 0x150   :  { %v5223_v51 = vpack.c.bf16 %v1129_v35, %v1128_v47  ;;  %v1316_v5 = vadd.f32 %v1301_v14, %v1286_v23  ;;  %v5231_v60 = vadd.f32 %v5026_v57, %v371_v39  ;;  %v372_v11 = vmax.f32 %v4993_v24, %v336_v12  ;;  %v725_v13 = vpop.f32.mrb[46].mxu1  ;;  %v4318_v2 = vpop.f32.mrb[47].mxu0  ;;  %v5246_v47 = vld [vmem:[#allocation2 + $0x12] sm:$0xff] }
 0x151   :  { %v1317_v55 = vadd.f32 %v1302_v8, %v1287_v53  ;;  %v891_v21 = vadd.f32 %v876_v20, %v828_v1  ;;  %v5239_v44 = vadd.f32 %v5026_v57, %v760_v0  ;;  %v761_v46 = vmax.f32 %v4995_v25, %v725_v13  ;;  %v4394_v30 = vpop.f32.mrb[47].mxu1  ;;  %v5260_v14 = vld [vmem:[#allocation3 + $0x1a] sm:$0xff] }
 0x152   :  { %4423 = vmatprep.mubr.bf16.mxu0 %v5223_v51  ;;  %v1361_v41 = vadd.f32 %v1346_v7, %v1316_v5  ;;  %v923_v24 = vsel %vm5063_vm11, %v5220_v63, 0.0  ;;  %408 = vst [vmem:[#allocation2 + $0x38] sm:$0xff] %v5231_v60  ;;  %v5252_v58 = vadd.f32 %v5026_v57, %v372_v11  ;;  %v924_v25 = vsel %vm5063_vm11, %v5228_v15, 0.0  ;;  %v5274_v7 = vld [vmem:[#allocation2 + $0x1b] sm:$0xff] }
 0x153   :  { %v1362_v56 = vadd.f32 %v1347_v27, %v1317_v55  ;;  %v938_v26 = vadd.f32 %v923_v24, %v5090_v62  ;;  %797 = vst [vmem:[#allocation3 + $0x38] sm:$0xff] %v5239_v44  ;;  %v5266_v35 = vadd.f32 %v5026_v57, %v761_v46  ;;  %v939_v23 = vadd.f32 %v924_v25, %v891_v21 }
 0x154   :  { %v971_v8 = vsel %vm5073_vm14, %v5234_v38, 0.0  ;;  %v972_v62 = vsel %vm5073_vm14, %v5236_v16, 0.0  ;;  %409 = vst [vmem:[#allocation2 + $0x40] sm:$0xff] %v5252_v58  ;;  %v1019_v19 = vsel %vm5086_vm1, %v5246_v47, 0.0  ;;  %v1020_v53 = vsel %vm5086_vm1, %v5248_v54, 0.0 }
 0x155   :  { %v5277_v39 = vpack.c.bf16 %v1362_v56, %v1361_v41  ;;  %v986_v42 = vadd.f32 %v971_v8, %v938_v26  ;;  %798 = vst [vmem:[#allocation3 + $0x40] sm:$0xff] %v5266_v35  ;;  %v341_v27 = vpop.f32.mrb[48].mxu0  ;;  %v987_v1 = vadd.f32 %v972_v62, %v939_v23  ;;  %v1067_v0 = vsel %vm5109_vm5, %v5258_v45, 0.0  ;;  %v730_v20 = vpop.f32.mrb[48].mxu1 }
 0x156   :  { %v1068_v52 = vsel %vm5109_vm5, %v5260_v14, 0.0  ;;  %v1115_v12 = vsel %vm5097_vm2, %v5262_v22, 0.0  ;;  %v373_v5 = vmax.f32 %v4997_v28, %v341_v27  ;;  %v4321_v11 = vpop.f32.mrb[49].mxu0  ;;  %v1116_v2 = vsel %vm5097_vm2, %v5274_v7, 0.0  ;;  %v4397_v46 = vpop.f32.mrb[49].mxu1 }
 0x157   :  { %4455 = vmatprep.mubr.bf16.mxu1 %v5277_v39  ;;  %v1034_v13 = vadd.f32 %v1019_v19, %v986_v42  ;;  %v1154_v55 = vsel %vm823_vm3, %v5116_v18, 0.0  ;;  %v762_v21 = vmax.f32 %v4999_v29, %v730_v20  ;;  %v344_v30 = vpop.f32.mrb[50].mxu0  ;;  %v1035_v41 = vadd.f32 %v1020_v53, %v987_v1  ;;  %v733_v26 = vpop.f32.mrb[50].mxu1 }
 0x158   :  { %v1183_v28 = vsel %vm5034_vm4, %v5220_v63, 0.0  ;;  %v1184_v24 = vsel %vm5034_vm4, %v5228_v15, 0.0  ;;  %v5311_v56 = vadd.f32 %v5026_v57, %v373_v5  ;;  %v374_v25 = vmax.f32 %v5001_v32, %v344_v30  ;;  %v4322_v18 = vpop.f32.mrb[51].mxu0  ;;  %v4398_v63 = vpop.f32.mrb[51].mxu1  ;;  %v1334_v5 = vld [vmem:[#allocation3 + $0x1b] sm:$0xff] }
 0x159   :  { %v1082_v23 = vadd.f32 %v1067_v0, %v1034_v13  ;;  %v1198_v29 = vadd.f32 %v1183_v28, %v5127_v31  ;;  %v5316_v8 = vadd.f32 %v5026_v57, %v762_v21  ;;  %v763_v62 = vmax.f32 %v5003_v33, %v733_v26  ;;  %v5370_v18 = vld [vmem:[#allocation2 + $0x21] sm:$0xff] }
 0x15a   :  { %v1083_v42 = vadd.f32 %v1068_v52, %v1035_v41  ;;  %v1199_v19 = vadd.f32 %v1184_v24, %v1154_v55  ;;  %410 = vst [vmem:[#allocation2 + $0x48] sm:$0xff] %v5311_v56  ;;  %v5321_v15 = vadd.f32 %v5026_v57, %v374_v25  ;;  %v1213_v32 = vsel %vm5063_vm11, %v5234_v38, 0.0  ;;  %v1333_v52 = vld [vmem:[#allocation3 + $0x13] sm:$0xff] }
 0x15b   :  { %v1130_v53 = vadd.f32 %v1115_v12, %v1082_v23  ;;  %v1214_v31 = vsel %vm5063_vm11, %v5236_v16, 0.0  ;;  %799 = vst [vmem:[#allocation3 + $0x48] sm:$0xff] %v5316_v8  ;;  %v5331_v33 = vadd.f32 %v5026_v57, %v763_v62  ;;  %v1228_v1 = vadd.f32 %v1213_v32, %v1198_v29  ;;  %v7844_v32 = vld [vmem:[#allocation5_spill] sm:$0xff] }
 0x15c   :  { %v1131_v27 = vadd.f32 %v1116_v2, %v1083_v42  ;;  %v1229_v0 = vadd.f32 %v1214_v31, %v1199_v19  ;;  %411 = vst [vmem:[#allocation2 + $0x50] sm:$0xff] %v5321_v15  ;;  %v1243_v38 = vsel %vm5073_vm14, %v5246_v47, 0.0  ;;  %v1244_v16 = vsel %vm5073_vm14, %v5248_v54, 0.0  ;;  %v5355_v54 = vld [vmem:[%s7674_s3 + $0x48] sm:$0xff]   ;;  %v7843_v42 = vld [vmem:[#allocation4_spill] sm:$0xff] }
 0x15d   :  { %v1273_v12 = vsel %vm5086_vm1, %v5258_v45, 0.0  ;;  %v1274_v20 = vsel %vm5086_vm1, %v5260_v14, 0.0  ;;  %800 = vst [vmem:[#allocation3 + $0x50] sm:$0xff] %v5331_v33  ;;  %v1258_v13 = vadd.f32 %v1243_v38, %v1228_v1  ;;  %v1303_v47 = vsel %vm5109_vm5, %v5262_v22, 0.0  ;;  %v349_v55 = vpop.f32.mrb[52].mxu0  ;;  %v738_v30 = vpop.f32.mrb[52].mxu1 }
 0x15e   :  { %v5347_v11 = vpack.c.bf16 %v1131_v27, %v1130_v53  ;;  %v1259_v2 = vadd.f32 %v1244_v16, %v1229_v0  ;;  %v1304_v45 = vsel %vm5109_vm5, %v5274_v7, 0.0  ;;  %v1348_v14 = vsel %vm5097_vm2, %v1333_v52, 0.0  ;;  %v4325_v22 = vpop.f32.mrb[53].mxu0  ;;  %v4401_v25 = vpop.f32.mrb[53].mxu1  ;;  %v5392_v1 = vld [vmem:[#allocation3 + $0x21] sm:$0xff]  ;;  %v5394_v0 = vld [vmem:[#allocation3 + $0x29] sm:$0xff] }
 0x15f   :  { %v1349_v21 = vsel %vm5097_vm2, %v1334_v5, 0.0  ;;  %v375_v46 = vmax.f32 %v5005_v36, %v349_v55  ;;  %v1288_v41 = vadd.f32 %v1273_v12, %v1258_v13  ;;  %v764_v24 = vmax.f32 %v5007_v37, %v738_v30  ;;  %v352_v26 = vpop.f32.mrb[54].mxu0  ;;  %v741_v29 = vpop.f32.mrb[54].mxu1  ;;  %v5407_v12 = vld [vmem:[#allocation2 + $0x22] sm:$0xff] }
 0x160   :  { %4424 = vmatmul.mubr.bf16.vlgmr.msra.gmra.mrb[60].mxu0 %v5347_v11  ;;  %v1289_v28 = vadd.f32 %v1274_v20, %v1259_v2  ;;  %v829_v7 = vsel %vm823_vm3, %v5131_v9, 0.0  ;;  %v376_v36 = vmax.f32 %v5009_v40, %v352_v26  ;;  %v4326_v62 = vpop.f32.mrb[55].mxu0  ;;  %v830_v63 = vsel %vm823_vm3, %v5177_v10, 0.0  ;;  %v5386_v9 = vld [vmem:[%s7674_s3 + $0x50] sm:$0xff]   ;;  %v4402_v27 = vpop.f32.mrb[55].mxu1  ;;  %v5419_v30 = vld [vmem:[#allocation2 + $0x23] sm:$0xff] }
 0x161   :  { %v5373_v23 = vadd.f32 %v5026_v57, %v375_v46  ;;  %v877_v37 = vsel %vm5034_vm4, %v5145_v59, 0.0  ;;  %4472 = vmatpush3.bf16.msra.mxu0 %v7843_v42  ;;  %v1318_v19 = vadd.f32 %v1303_v47, %v1288_v41  ;;  %v5389_v40 = vadd.f32 %v5026_v57, %v764_v24  ;;  %v908_v10 = vld [vmem:[#allocation2 + $0x29] sm:$0xff] }
 0x162   :  { %v1319_v53 = vadd.f32 %v1304_v45, %v1289_v28  ;;  %v765_v31 = vmax.f32 %v7844_v32, %v741_v29  ;;  %4473 = vmatprep.subr.bf16.mxu0 %v5355_v54  ;;  %v5399_v52 = vadd.f32 %v5026_v57, %v376_v36  ;;  %v878_v5 = vsel %vm5034_vm4, %v5183_v34, 0.0  ;;  %v5409_v20 = vld [vmem:[#allocation2 + $0x2a] sm:$0xff]  ;;  %v5415_v45 = vld [vmem:[#allocation3 + $0x22] sm:$0xff]  ;;  %v5417_v46 = vld [vmem:[#allocation3 + $0x2a] sm:$0xff] }
 0x163   :  { %412 = vst [vmem:[#allocation2 + $0x58] sm:$0xff] %v5373_v23  ;;  %v892_v38 = vadd.f32 %v877_v37, %v829_v7  ;;  %v925_v16 = vsel %vm5063_vm11, %v5370_v18, 0.0  ;;  %v1363_v13 = vadd.f32 %v1348_v14, %v1318_v19  ;;  %801 = vst [vmem:[#allocation3 + $0x58] sm:$0xff] %v5389_v40  ;;  %v893_v55 = vadd.f32 %v878_v5, %v830_v63  ;;  %v5430_v28 = vld [vmem:[#allocation2 + $0x2b] sm:$0xff]  ;;  %v5448_v29 = vld [vmem:[%s7674_s3 + $0x58] sm:$0xff]  }
 0x164   :  { %v1364_v2 = vadd.f32 %v1349_v21, %v1319_v53  ;;  %v5413_v47 = vadd.f32 %v5026_v57, %v765_v31  ;;  %413 = vst [vmem:[#allocation2 + $0x60] sm:$0xff] %v5399_v52  ;;  %v926_v22 = vsel %vm5063_vm11, %v908_v10, 0.0  ;;  %v973_v14 = vsel %vm5073_vm14, %v5392_v1, 0.0 }
 0x165   :  { %v940_v41 = vadd.f32 %v925_v16, %v892_v38  ;;  %v974_v21 = vsel %vm5073_vm14, %v5394_v0, 0.0  ;;  %4474 = vmatpush3.bf16.msra.mxu0 %v5355_v54  ;;  %v941_v25 = vadd.f32 %v926_v22, %v893_v55  ;;  %v1021_v26 = vsel %vm5086_vm1, %v5407_v12, 0.0  ;;  %v5442_v36 = vpop.f32.mrb[56].mxu0  ;;  %v746_v53 = vpop.f32.mrb[56].mxu1 }
 0x166   :  { %v5433_v24 = vpack.c.bf16 %v1364_v2, %v1363_v13  ;;  %802 = vst [vmem:[#allocation3 + $0x60] sm:$0xff] %v5413_v47  ;;  %v1022_v7 = vsel %vm5086_vm1, %v5409_v20, 0.0  ;;  %4475 = vmatprep.subr.bf16.mxu0 %v5386_v9  ;;  %v1069_v63 = vsel %vm5109_vm5, %v5415_v45, 0.0  ;;  %v1070_v37 = vsel %vm5109_vm5, %v5417_v46, 0.0  ;;  %v4329_v32 = vpop.f32.mrb[57].mxu0  ;;  %v4405_v16 = vpop.f32.mrb[57].mxu1 }
 0x167   :  { %v988_v62 = vadd.f32 %v973_v14, %v940_v41  ;;  %v1117_v19 = vsel %vm5097_vm2, %v5419_v30, 0.0  ;;  %v989_v31 = vadd.f32 %v974_v21, %v941_v25  ;;  %v1118_v27 = vsel %vm5097_vm2, %v5430_v28, 0.0  ;;  %v360_v13 = vpop.f32.mrb[58].mxu0  ;;  %v749_v14 = vpop.f32.mrb[58].mxu1  ;;  %v1336_v32 = vld [vmem:[#allocation3 + $0x2b] sm:$0xff] }
 0x168   :  { %4456 = vmatmul.mubr.bf16.vlgmr.msra.gmra.mrb[60].mxu1 %v5433_v24  ;;  %v1155_v5 = vsel %vm823_vm3, %v5145_v59, 0.0  ;;  %v1156_v38 = vsel %vm823_vm3, %v5183_v34, 0.0  ;;  %v1185_v55 = vsel %vm5034_vm4, %v5370_v18, 0.0  ;;  %v1186_v22 = vsel %vm5034_vm4, %v908_v10, 0.0  ;;  %v4330_v59 = vpop.f32.mrb[59].mxu0  ;;  %v5487_v10 = vld [vmem:[%s7674_s3 + $0x60] sm:$0xff]  }
 0x169   :  { %v1036_v2 = vadd.f32 %v1021_v26, %v988_v62  ;;  %v1215_v41 = vsel %vm5063_vm11, %v5392_v1, 0.0  ;;  %4504 = vmatpush3.bf16.msra.mxu1 %v7843_v42  ;;  %4476 = vmatpush3.bf16.msra.mxu0 %v5386_v9  ;;  %v1037_v34 = vadd.f32 %v1022_v7, %v989_v31  ;;  %v1200_v21 = vadd.f32 %v1185_v55, %v1155_v5  ;;  %v1335_v26 = vld [vmem:[#allocation3 + $0x23] sm:$0xff]  ;;  %v4406_v62 = vpop.f32.mrb[59].mxu1 }
 0x16a   :  { %v1201_v25 = vadd.f32 %v1186_v22, %v1156_v38  ;;  %v1216_v18 = vsel %vm5063_vm11, %v5394_v0, 0.0  ;;  %4505 = vmatprep.subr.bf16.mxu1 %v5355_v54  ;;  %4477 = vmatprep.subr.bf16.mxu0 %v5448_v29  ;;  %v1245_v1 = vsel %vm5073_vm14, %v5407_v12, 0.0  ;;  %v1246_v0 = vsel %vm5073_vm14, %v5409_v20, 0.0  ;;  %v910_v62 = vld [vmem:[#allocation2 + $0x39] sm:$0xff] }
 0x16b   :  { %v1084_v42 = vadd.f32 %v1069_v63, %v1036_v2  ;;  %v1275_v7 = vsel %vm5086_vm1, %v5415_v45, 0.0  ;;  %v1085_v31 = vadd.f32 %v1070_v37, %v1037_v34  ;;  %v1230_v5 = vadd.f32 %v1215_v41, %v1200_v21  ;;  %v7847_v41 = vld [vmem:[#allocation8_spill] sm:$0xff] }
 0x16c   :  { %v1231_v38 = vadd.f32 %v1216_v18, %v1201_v25  ;;  %v1276_v63 = vsel %vm5086_vm1, %v5417_v46, 0.0  ;;  %v1305_v12 = vsel %vm5109_vm5, %v5419_v30, 0.0  ;;  %v1306_v20 = vsel %vm5109_vm5, %v5430_v28, 0.0  ;;  %v7845_v30 = vld [vmem:[#allocation6_spill] sm:$0xff] }
 0x16d   :  { %v1132_v16 = vadd.f32 %v1117_v19, %v1084_v42  ;;  %v1350_v45 = vsel %vm5097_vm2, %v1335_v26, 0.0  ;;  %4506 = vmatpush3.bf16.msra.mxu1 %v5355_v54  ;;  %4478 = vmatpush3.bf16.msra.mxu0 %v5448_v29  ;;  %v1133_v37 = vadd.f32 %v1118_v27, %v1085_v31  ;;  %v1260_v2 = vadd.f32 %v1245_v1, %v1230_v5  ;;  %v7846_v19 = vld [vmem:[#allocation7_spill] sm:$0xff]  ;;  %v7848_v54 = vld [vmem:[#allocation9_spill] sm:$0xff] }
 0x16e   :  { %v1261_v55 = vadd.f32 %v1246_v0, %v1231_v38  ;;  %v1351_v46 = vsel %vm5097_vm2, %v1336_v32, 0.0  ;;  %4507 = vmatprep.subr.bf16.mxu1 %v5386_v9  ;;  %4479 = vmatprep.subr.bf16.mxu0 %v5487_v10  ;;  %v377_v28 = vmax.f32 %v7845_v30, %v5442_v36  ;;  %v766_v22 = vmax.f32 %v7846_v19, %v746_v53  ;;  %v909_v26 = vld [vmem:[#allocation2 + $0x31] sm:$0xff]  ;;  %v5528_v36 = vld [vmem:[%s7674_s3 + $0x68] sm:$0xff]  }
 0x16f   :  { %v378_v59 = vmax.f32 %v7847_v41, %v360_v13  ;;  %v767_v34 = vmax.f32 %v7848_v54, %v749_v14  ;;  %v5520_v21 = vpack.c.bf16 %v1133_v37, %v1132_v16  ;;  %v1290_v27 = vadd.f32 %v1275_v7, %v1260_v2  ;;  %v957_v32 = vld [vmem:[#allocation3 + $0x31] sm:$0xff]  ;;  %v958_v31 = vld [vmem:[#allocation3 + $0x39] sm:$0xff] }
 0x170   :  { %v1291_v25 = vadd.f32 %v1276_v63, %v1261_v55  ;;  %v831_v18 = vsel %vm823_vm3, %v5188_v50, 0.0  ;;  %v5531_v53 = vadd.f32 %v5026_v57, %v377_v28  ;;  %v5534_v13 = vadd.f32 %v5026_v57, %v766_v22  ;;  %v1005_v38 = vld [vmem:[#allocation2 + $0x32] sm:$0xff]  ;;  %v1006_v63 = vld [vmem:[#allocation2 + $0x3a] sm:$0xff]  ;;  %v1053_v37 = vld [vmem:[#allocation3 + $0x32] sm:$0xff] }
 0x171   :  { %v400_v14 = vadd.f32 %v5026_v57, %v378_v59  ;;  %v789_v42 = vadd.f32 %v5026_v57, %v767_v34  ;;  %4508 = vmatpush3.bf16.msra.mxu1 %v5386_v9  ;;  %4427 = vmatprep.mubr.bf16.mxu0 %v5520_v21  ;;  %v1320_v50 = vadd.f32 %v1305_v12, %v1290_v27  ;;  %v832_v0 = vsel %vm823_vm3, %v5231_v60, 0.0  ;;  %v1054_v2 = vld [vmem:[#allocation3 + $0x3a] sm:$0xff]  ;;  %v1102_v27 = vld [vmem:[#allocation2 + $0x3b] sm:$0xff] }
 0x172   :  { %v1321_v1 = vadd.f32 %v1306_v20, %v1291_v25  ;;  %v879_v7 = vsel %vm5034_vm4, %v5197_v17, 0.0  ;;  %4509 = vmatprep.subr.bf16.mxu1 %v5448_v29  ;;  %414 = vst [vmem:[#allocation2 + $0x68] sm:$0xff] %v5531_v53  ;;  %803 = vst [vmem:[#allocation3 + $0x68] sm:$0xff] %v5534_v13  ;;  %v880_v57 = vsel %vm5034_vm4, %v5239_v44, 0.0  ;;  %v927_v60 = vsel %vm5063_vm11, %v909_v26, 0.0  ;;  %4480 = vmatpush3.bf16.msra.mxu0 %v5487_v10  ;;  %v5561_v55 = vld [vmem:[%s7674_s3 + $0x70] sm:$0xff]  }
 0x173   :  { %415 = vst [vmem:[#allocation2 + $0x70] sm:$0xff] %v400_v14  ;;  %804 = vst [vmem:[#allocation3 + $0x70] sm:$0xff] %v789_v42  ;;  %v894_v9 = vadd.f32 %v879_v7, %v831_v18  ;;  %v928_v5 = vsel %vm5063_vm11, %v910_v62, 0.0  ;;  %v1365_v16 = vadd.f32 %v1350_v45, %v1320_v50  ;;  %v895_v20 = vadd.f32 %v880_v57, %v832_v0  ;;  %v5574_v59 = vld [vmem:[#allocation2 + $0x33] sm:$0xff] }
 0x174   :  { %v1366_v12 = vadd.f32 %v1351_v46, %v1321_v1  ;;  %4481 = vmatprep.subr.bf16.mxu0 %v5528_v36  ;;  %v975_v28 = vsel %vm5073_vm14, %v957_v32, 0.0  ;;  %v976_v19 = vsel %vm5073_vm14, %v958_v31, 0.0  ;;  %v1023_v22 = vsel %vm5086_vm1, %v1005_v38, 0.0 }
 0x175   :  { %v942_v30 = vadd.f32 %v927_v60, %v894_v9  ;;  %4510 = vmatpush3.bf16.msra.mxu1 %v5448_v29  ;;  %v943_v46 = vadd.f32 %v928_v5, %v895_v20  ;;  %v1024_v41 = vsel %vm5086_vm1, %v1006_v63, 0.0  ;;  %v1071_v34 = vsel %vm5109_vm5, %v1053_v37, 0.0 }
 0x176   :  { %v5568_v45 = vpack.c.bf16 %v1366_v12, %v1365_v16  ;;  %4511 = vmatprep.subr.bf16.mxu1 %v5487_v10  ;;  %v1072_v29 = vsel %vm5109_vm5, %v1054_v2, 0.0  ;;  %v1157_v25 = vsel %vm823_vm3, %v5197_v17, 0.0  ;;  %4482 = vmatpush3.bf16.msra.mxu0 %v5528_v36  ;;  %v1158_v14 = vsel %vm823_vm3, %v5239_v44, 0.0  ;;  %v5597_v17 = vld [vmem:[%s7674_s3 + $0x78] sm:$0xff]  }
 0x177   :  { %v990_v54 = vadd.f32 %v975_v28, %v942_v30  ;;  %v991_v18 = vadd.f32 %v976_v19, %v943_v46  ;;  %v1187_v42 = vsel %vm5034_vm4, %v909_v26, 0.0  ;;  %v1188_v50 = vsel %vm5034_vm4, %v910_v62, 0.0  ;;  %4483 = vmatprep.subr.bf16.mxu0 %v5561_v55  ;;  %v5623_v30 = vld [vmem:[%s7674_s3 + $0x80] sm:$0xff]  }
 0x178   :  { %4459 = vmatprep.mubr.bf16.mxu1 %v5568_v45  ;;  %v1119_v0 = vsel %vm5097_vm2, %v5574_v59, 0.0  ;;  %v1202_v7 = vadd.f32 %v1187_v42, %v1157_v25  ;;  %v1203_v44 = vadd.f32 %v1188_v50, %v1158_v14  ;;  %v1120_v62 = vsel %vm5097_vm2, %v1102_v27, 0.0  ;;  %v959_v42 = vld [vmem:[#allocation3 + $0x41] sm:$0xff]  ;;  %v960_v50 = vld [vmem:[#allocation3 + $0x49] sm:$0xff] }
 0x179   :  { %v1038_v1 = vadd.f32 %v1023_v22, %v990_v54  ;;  %4512 = vmatpush3.bf16.msra.mxu1 %v5487_v10  ;;  %v1039_v26 = vadd.f32 %v1024_v41, %v991_v18  ;;  %v1217_v57 = vsel %vm5063_vm11, %v957_v32, 0.0  ;;  %v1218_v9 = vsel %vm5063_vm11, %v958_v31, 0.0  ;;  %v912_v54 = vld [vmem:[#allocation2 + $0x49] sm:$0xff] }
 0x17a   :  { %4513 = vmatprep.subr.bf16.mxu1 %v5528_v36  ;;  %v1232_v5 = vadd.f32 %v1217_v57, %v1202_v7  ;;  %v1233_v16 = vadd.f32 %v1218_v9, %v1203_v44  ;;  %v1247_v12 = vsel %vm5073_vm14, %v1005_v38, 0.0  ;;  %4484 = vmatpush3.bf16.msra.mxu0 %v5561_v55  ;;  %v1248_v20 = vsel %vm5073_vm14, %v1006_v63, 0.0  ;;  %v1007_v44 = vld [vmem:[#allocation2 + $0x42] sm:$0xff] }
 0x17b   :  { %v1086_v60 = vadd.f32 %v1071_v34, %v1038_v1  ;;  %v1087_v10 = vadd.f32 %v1072_v29, %v1039_v26  ;;  %v1277_v32 = vsel %vm5086_vm1, %v1053_v37, 0.0  ;;  %v1278_v31 = vsel %vm5086_vm1, %v1054_v2, 0.0  ;;  %4485 = vmatprep.subr.bf16.mxu0 %v5597_v17  ;;  %v911_v37 = vld [vmem:[#allocation2 + $0x41] sm:$0xff]  ;;  %v1337_v29 = vld [vmem:[#allocation3 + $0x33] sm:$0xff] }
 0x17c   :  { %v1262_v38 = vadd.f32 %v1247_v12, %v1232_v5  ;;  %v1263_v28 = vadd.f32 %v1248_v20, %v1233_v16  ;;  %v1307_v19 = vsel %vm5109_vm5, %v5574_v59, 0.0  ;;  %v1308_v63 = vsel %vm5109_vm5, %v1102_v27, 0.0  ;;  %v1338_v27 = vld [vmem:[#allocation3 + $0x3b] sm:$0xff]  ;;  %v1008_v26 = vld [vmem:[#allocation2 + $0x4a] sm:$0xff] }
 0x17d   :  { %4514 = vmatpush3.bf16.msra.mxu1 %v5528_v36  ;;  %v1134_v2 = vadd.f32 %v1119_v0, %v1086_v60  ;;  %v1135_v46 = vadd.f32 %v1120_v62, %v1087_v10  ;;  %v833_v22 = vsel %vm823_vm3, %v5252_v58, 0.0  ;;  %v834_v41 = vsel %vm823_vm3, %v5311_v56, 0.0  ;;  %v1055_v5 = vld [vmem:[#allocation3 + $0x42] sm:$0xff] }
 0x17e   :  { %4515 = vmatprep.subr.bf16.mxu1 %v5561_v55  ;;  %v1292_v59 = vadd.f32 %v1277_v32, %v1262_v38  ;;  %v1293_v34 = vadd.f32 %v1278_v31, %v1263_v28  ;;  %v881_v36 = vsel %vm5034_vm4, %v5266_v35, 0.0  ;;  %v882_v25 = vsel %vm5034_vm4, %v5316_v8, 0.0  ;;  %4486 = vmatpush3.bf16.msra.mxu0 %v5597_v17  ;;  %v1056_v28 = vld [vmem:[#allocation3 + $0x4a] sm:$0xff] }
 0x17f   :  { %v5645_v58 = vpack.c.bf16 %v1135_v46, %v1134_v2  ;;  %v896_v56 = vadd.f32 %v881_v36, %v833_v22  ;;  %v897_v18 = vadd.f32 %v882_v25, %v834_v41  ;;  %v929_v14 = vsel %vm5063_vm11, %v911_v37, 0.0  ;;  %4535 = vmatprep.subr.bf16.mxu0 %v5623_v30 }
 0x180   :  { %v1322_v1 = vadd.f32 %v1307_v19, %v1292_v59  ;;  %v1323_v0 = vadd.f32 %v1308_v63, %v1293_v34  ;;  %v930_v7 = vsel %vm5063_vm11, %v912_v54, 0.0  ;;  %v1352_v62 = vsel %vm5097_vm2, %v1337_v29, 0.0  ;;  %v1103_v19 = vld [vmem:[#allocation2 + $0x43] sm:$0xff]  ;;  %v1104_v34 = vld [vmem:[#allocation2 + $0x4b] sm:$0xff] }
 0x181   :  { %4516 = vmatpush3.bf16.msra.mxu1 %v5561_v55  ;;  %4428 = vmatmul.mubr.bf16.gmra.mrb[64].mxu0 %v5645_v58  ;;  %v1353_v57 = vsel %vm5097_vm2, %v1338_v27, 0.0  ;;  %v944_v9 = vadd.f32 %v929_v14, %v896_v56  ;;  %v945_v60 = vadd.f32 %v930_v7, %v897_v18  ;;  %v977_v10 = vsel %vm5073_vm14, %v959_v42, 0.0 }
 0x182   :  { %4517 = vmatprep.subr.bf16.mxu1 %v5597_v17  ;;  %v1367_v16 = vadd.f32 %v1352_v62, %v1322_v1  ;;  %v1368_v12 = vadd.f32 %v1353_v57, %v1323_v0  ;;  %v978_v55 = vsel %vm5073_vm14, %v960_v50, 0.0  ;;  %v1025_v31 = vsel %vm5086_vm1, %v1007_v44, 0.0 }
 0x183   :  { %v992_v20 = vadd.f32 %v977_v10, %v944_v9  ;;  %v993_v32 = vadd.f32 %v978_v55, %v945_v60  ;;  %v1026_v38 = vsel %vm5086_vm1, %v1008_v26, 0.0  ;;  %v1073_v2 = vsel %vm5109_vm5, %v1055_v5, 0.0  ;;  %v914_v10 = vld [vmem:[#allocation2 + $0x59] sm:$0xff] }
 0x184   :  { %v5667_v63 = vpack.c.bf16 %v1368_v12, %v1367_v16  ;;  %v1159_v46 = vsel %vm823_vm3, %v5266_v35, 0.0  ;;  %v1160_v22 = vsel %vm823_vm3, %v5316_v8, 0.0  ;;  %v1189_v29 = vsel %vm5034_vm4, %v911_v37, 0.0  ;;  %v913_v12 = vld [vmem:[#allocation2 + $0x51] sm:$0xff] }
 0x185   :  { %4518 = vmatpush3.bf16.msra.mxu1 %v5597_v17  ;;  %v1040_v41 = vadd.f32 %v1025_v31, %v992_v20  ;;  %v1041_v59 = vadd.f32 %v1026_v38, %v993_v32  ;;  %v1190_v27 = vsel %vm5034_vm4, %v912_v54, 0.0  ;;  %v1074_v35 = vsel %vm5109_vm5, %v1056_v28, 0.0  ;;  %v1340_v38 = vld [vmem:[#allocation3 + $0x4b] sm:$0xff] }
 0x186   :  { %4567 = vmatprep.subr.bf16.mxu1 %v5623_v30  ;;  %4460 = vmatmul.mubr.bf16.gmra.mrb[64].mxu1 %v5667_v63  ;;  %v1121_v8 = vsel %vm5097_vm2, %v1103_v19, 0.0  ;;  %v1204_v17 = vadd.f32 %v1189_v29, %v1159_v46  ;;  %v1205_v36 = vadd.f32 %v1190_v27, %v1160_v22  ;;  %v1219_v37 = vsel %vm5063_vm11, %v959_v42, 0.0  ;;  %v962_v46 = vld [vmem:[#allocation3 + $0x59] sm:$0xff] }
 0x187   :  { %v1088_v25 = vadd.f32 %v1073_v2, %v1040_v41  ;;  %v1089_v56 = vadd.f32 %v1074_v35, %v1041_v59  ;;  %v1220_v54 = vsel %vm5063_vm11, %v960_v50, 0.0  ;;  %v1122_v18 = vsel %vm5097_vm2, %v1104_v34, 0.0  ;;  %v961_v2 = vld [vmem:[#allocation3 + $0x51] sm:$0xff]  ;;  %v1009_v59 = vld [vmem:[#allocation2 + $0x52] sm:$0xff] }
 0x188   :  { %v1234_v14 = vadd.f32 %v1219_v37, %v1204_v17  ;;  %v1235_v1 = vadd.f32 %v1220_v54, %v1205_v36  ;;  %v1249_v0 = vsel %vm5073_vm14, %v1007_v44, 0.0  ;;  %v1250_v57 = vsel %vm5073_vm14, %v1008_v26, 0.0  ;;  %v1339_v44 = vld [vmem:[#allocation3 + $0x43] sm:$0xff]  ;;  %v1057_v36 = vld [vmem:[#allocation3 + $0x52] sm:$0xff] }
 0x189   :  { %v1136_v7 = vadd.f32 %v1121_v8, %v1088_v25  ;;  %v1137_v62 = vadd.f32 %v1122_v18, %v1089_v56  ;;  %v1279_v9 = vsel %vm5086_vm1, %v1055_v5, 0.0  ;;  %v1280_v50 = vsel %vm5086_vm1, %v1056_v28, 0.0  ;;  %v1010_v17 = vld [vmem:[#allocation2 + $0x5a] sm:$0xff]  ;;  %v1058_v25 = vld [vmem:[#allocation3 + $0x5a] sm:$0xff] }
 0x18a   :  { %v1264_v42 = vadd.f32 %v1249_v0, %v1234_v14  ;;  %v1265_v60 = vadd.f32 %v1250_v57, %v1235_v1  ;;  %v1309_v16 = vsel %vm5109_vm5, %v1103_v19, 0.0  ;;  %v835_v26 = vsel %vm823_vm3, %v5321_v15, 0.0 }
 0x18b   :  { %v5704_v55 = vpack.c.bf16 %v1137_v62, %v1136_v7  ;;  %v836_v5 = vsel %vm823_vm3, %v5373_v23, 0.0  ;;  %v883_v20 = vsel %vm5034_vm4, %v5331_v33, 0.0  ;;  %v884_v28 = vsel %vm5034_vm4, %v5389_v40, 0.0 }
 0x18c   :  { %v1294_v32 = vadd.f32 %v1279_v9, %v1264_v42  ;;  %v1295_v31 = vadd.f32 %v1280_v50, %v1265_v60  ;;  %v898_v19 = vadd.f32 %v883_v20, %v835_v26  ;;  %v1310_v15 = vsel %vm5109_vm5, %v1104_v34, 0.0  ;;  %v1105_v42 = vld [vmem:[#allocation2 + $0x53] sm:$0xff] }
 0x18d   :  { %4431 = vmatprep.mubr.bf16.mxu0 %v5704_v55  ;;  %v899_v23 = vadd.f32 %v884_v28, %v836_v5  ;;  %v931_v22 = vsel %vm5063_vm11, %v913_v12, 0.0  ;;  %v932_v41 = vsel %vm5063_vm11, %v914_v10, 0.0  ;;  %v1354_v35 = vsel %vm5097_vm2, %v1339_v44, 0.0 }
 0x18e   :  { %v1324_v29 = vadd.f32 %v1309_v16, %v1294_v32  ;;  %v1325_v27 = vadd.f32 %v1310_v15, %v1295_v31  ;;  %v946_v8 = vadd.f32 %v931_v22, %v898_v19  ;;  %v1355_v34 = vsel %vm5097_vm2, %v1340_v38, 0.0  ;;  %v1106_v16 = vld [vmem:[#allocation2 + $0x5b] sm:$0xff] }
 0x18f   :  { %v947_v56 = vadd.f32 %v932_v41, %v899_v23  ;;  %v979_v37 = vsel %vm5073_vm14, %v961_v2, 0.0  ;;  %v980_v54 = vsel %vm5073_vm14, %v962_v46, 0.0  ;;  %v1027_v0 = vsel %vm5086_vm1, %v1009_v59, 0.0 }
 0x190   :  { %v1369_v18 = vadd.f32 %v1354_v35, %v1324_v29  ;;  %v1370_v14 = vadd.f32 %v1355_v34, %v1325_v27  ;;  %v994_v1 = vadd.f32 %v979_v37, %v946_v8  ;;  %v1028_v62 = vsel %vm5086_vm1, %v1010_v17, 0.0  ;;  %v5770_v34 = vld [vmem:[#allocation2 + $0x61] sm:$0xff] }
 0x191   :  { %v995_v7 = vadd.f32 %v980_v54, %v947_v56  ;;  %v1075_v57 = vsel %vm5109_vm5, %v1057_v36, 0.0  ;;  %v1076_v9 = vsel %vm5109_vm5, %v1058_v25, 0.0  ;;  %v1161_v44 = vsel %vm823_vm3, %v5331_v33, 0.0 }
 0x192   :  { %v5741_v60 = vpack.c.bf16 %v1370_v14, %v1369_v18  ;;  %v1042_v50 = vadd.f32 %v1027_v0, %v994_v1  ;;  %v1191_v26 = vsel %vm5034_vm4, %v913_v12, 0.0  ;;  %v1162_v20 = vsel %vm823_vm3, %v5389_v40, 0.0  ;;  %v1342_v18 = vld [vmem:[#allocation3 + $0x5b] sm:$0xff] }
 0x193   :  { %v1043_v5 = vadd.f32 %v1028_v62, %v995_v7  ;;  %v1192_v32 = vsel %vm5034_vm4, %v914_v10, 0.0  ;;  %v1206_v31 = vadd.f32 %v1191_v26, %v1161_v44  ;;  %v1123_v28 = vsel %vm5097_vm2, %v1105_v42, 0.0  ;;  %v5793_v62 = vld [vmem:[#allocation3 + $0x61] sm:$0xff]  ;;  %v5805_v26 = vld [vmem:[#allocation2 + $0x6a] sm:$0xff] }
 0x194   :  { %4463 = vmatprep.mubr.bf16.mxu1 %v5741_v60  ;;  %v1090_v38 = vadd.f32 %v1075_v57, %v1042_v50  ;;  %v1207_v19 = vadd.f32 %v1192_v32, %v1162_v20  ;;  %v1221_v33 = vsel %vm5063_vm11, %v961_v2, 0.0  ;;  %v1124_v15 = vsel %vm5097_vm2, %v1106_v16, 0.0  ;;  %v5795_v57 = vld [vmem:[#allocation3 + $0x69] sm:$0xff] }
 0x195   :  { %v1091_v12 = vadd.f32 %v1076_v9, %v1043_v5  ;;  %v1222_v40 = vsel %vm5063_vm11, %v962_v46, 0.0  ;;  %v1236_v23 = vadd.f32 %v1221_v33, %v1206_v31  ;;  %v1251_v22 = vsel %vm5073_vm14, %v1009_v59, 0.0  ;;  %v5797_v9 = vld [vmem:[#allocation2 + $0x62] sm:$0xff] }
 0x196   :  { %v1237_v10 = vadd.f32 %v1222_v40, %v1207_v19  ;;  %v1252_v41 = vsel %vm5073_vm14, %v1010_v17, 0.0  ;;  %v1281_v29 = vsel %vm5086_vm1, %v1057_v36, 0.0  ;;  %v1138_v27 = vadd.f32 %v1123_v28, %v1090_v38  ;;  %v5780_v36 = vld [vmem:[#allocation2 + $0x69] sm:$0xff]  ;;  %v5809_v38 = vld [vmem:[#allocation3 + $0x62] sm:$0xff] }
 0x197   :  { %v1139_v2 = vadd.f32 %v1124_v15, %v1091_v12  ;;  %v1266_v35 = vadd.f32 %v1251_v22, %v1236_v23  ;;  %v1282_v8 = vsel %vm5086_vm1, %v1058_v25, 0.0  ;;  %v1311_v56 = vsel %vm5109_vm5, %v1105_v42, 0.0  ;;  %v1341_v25 = vld [vmem:[#allocation3 + $0x53] sm:$0xff]  ;;  %v869_v19 = vld [vmem:[#allocation3 + $0x70] sm:$0x7] }
 0x198   :  { %v1267_v46 = vadd.f32 %v1252_v41, %v1237_v10  ;;  %v837_v59 = vsel %vm823_vm3, %v5399_v52, 0.0  ;;  %v838_v17 = vsel %vm823_vm3, %v5531_v53, 0.0  ;;  %v885_v14 = vsel %vm5034_vm4, %v5413_v47, 0.0  ;;  %v821_v28 = vld [vmem:[#allocation2 + $0x70] sm:$0x7]  ;;  %v1060_v40 = vld [vmem:[#allocation3 + $0x6a] sm:$0xff] }
 0x199   :  { %v5782_v37 = vpack.c.bf16 %v1139_v2, %v1138_v27  ;;  %v1296_v54 = vadd.f32 %v1281_v29, %v1266_v35  ;;  %v886_v1 = vsel %vm5034_vm4, %v5534_v13, 0.0  ;;  %v900_v0 = vadd.f32 %v885_v14, %v837_v59  ;;  %v5822_v29 = vld [vmem:[#allocation2 + $0x63] sm:$0xff]  ;;  %v5824_v27 = vld [vmem:[#allocation2 + $0x6b] sm:$0xff] }
 0x19a   :  { %v1297_v52 = vadd.f32 %v1282_v8, %v1267_v46  ;;  %v901_v7 = vadd.f32 %v886_v1, %v838_v17  ;;  %v933_v53 = vsel %vm5063_vm11, %v5770_v34, 0.0  ;;  %v1312_v42 = vsel %vm5109_vm5, %v1106_v16, 0.0  ;;  %v917_v2 = vld [vmem:[#allocation2 + $0x71] sm:$0x7]  ;;  %v965_v59 = vld [vmem:[#allocation3 + $0x71] sm:$0x7] }
 0x19b   :  { %4432 = vmatmul.mubr.bf16.gmra.mrb[68].mxu0 %v5782_v37  ;;  %v1326_v50 = vadd.f32 %v1311_v56, %v1296_v54  ;;  %v934_v44 = vsel %vm5063_vm11, %v5780_v36, 0.0  ;;  %v1356_v20 = vsel %vm5097_vm2, %v1341_v25, 0.0  ;;  %v948_v32 = vadd.f32 %v933_v53, %v900_v0 }
 0x19c   :  { %v1327_v5 = vadd.f32 %v1312_v42, %v1297_v52  ;;  %v949_v31 = vadd.f32 %v934_v44, %v901_v7  ;;  %v1357_v16 = vsel %vm5097_vm2, %v1342_v18, 0.0  ;;  %v981_v33 = vsel %vm5073_vm14, %v5793_v62, 0.0  ;;  %v1013_v44 = vld [vmem:[#allocation2 + $0x72] sm:$0x7] }
 0x19d   :  { %v982_v12 = vsel %vm5073_vm14, %v5795_v57, 0.0  ;;  %v1029_v15 = vsel %vm5086_vm1, %v5797_v9, 0.0  ;;  %v1371_v23 = vadd.f32 %v1356_v20, %v1326_v50  ;;  %v996_v22 = vadd.f32 %v981_v33, %v948_v32 }
 0x19e   :  { %v1372_v10 = vadd.f32 %v1357_v16, %v1327_v5  ;;  %v997_v41 = vadd.f32 %v982_v12, %v949_v31  ;;  %v1030_v35 = vsel %vm5086_vm1, %v5805_v26, 0.0  ;;  %v1077_v8 = vsel %vm5109_vm5, %v5809_v38, 0.0  ;;  %v1061_v12 = vld [vmem:[#allocation3 + $0x72] sm:$0x7] }
 0x19f   :  { %v839_v46 = vsel %vm823_vm3, %v821_v28, 0.0  ;;  %v887_v56 = vsel %vm5034_vm4, %v869_v19, 0.0  ;;  %v1044_v54 = vadd.f32 %v1029_v15, %v996_v22  ;;  %v1078_v14 = vsel %vm5109_vm5, %v1060_v40, 0.0 }
 0x1a0   :  { %v5836_v17 = vpack.c.bf16 %v1372_v10, %v1371_v23  ;;  %v1045_v25 = vadd.f32 %v1030_v35, %v997_v41  ;;  %v902_v18 = vadd.f32 %v887_v56, %v839_v46  ;;  %v1125_v1 = vsel %vm5097_vm2, %v5822_v29, 0.0  ;;  %v1109_v23 = vld [vmem:[#allocation2 + $0x73] sm:$0x7] }
 0x1a1   :  { %v1126_v52 = vsel %vm5097_vm2, %v5824_v27, 0.0  ;;  %v935_v0 = vsel %vm5063_vm11, %v917_v2, 0.0  ;;  %v1092_v7 = vadd.f32 %v1077_v8, %v1044_v54  ;;  %v983_v50 = vsel %vm5073_vm14, %v965_v59, 0.0 }
 0x1a2   :  { %4464 = vmatmul.mubr.bf16.gmra.mrb[68].mxu1 %v5836_v17  ;;  %v1093_v53 = vadd.f32 %v1078_v14, %v1045_v25  ;;  %v950_v42 = vadd.f32 %v935_v0, %v902_v18  ;;  %v1163_v5 = vsel %vm823_vm3, %v5413_v47, 0.0  ;;  %v1164_v20 = vsel %vm823_vm3, %v5534_v13, 0.0 }
 0x1a3   :  { %v1193_v32 = vsel %vm5034_vm4, %v5770_v34, 0.0  ;;  %v1194_v31 = vsel %vm5034_vm4, %v5780_v36, 0.0  ;;  %v1140_v28 = vadd.f32 %v1125_v1, %v1092_v7  ;;  %v1031_v47 = vsel %vm5086_vm1, %v1013_v44, 0.0 }
 0x1a4   :  { %v1141_v16 = vadd.f32 %v1126_v52, %v1093_v53  ;;  %v998_v33 = vadd.f32 %v983_v50, %v950_v42  ;;  %v1208_v15 = vadd.f32 %v1193_v32, %v1163_v5  ;;  %v1209_v10 = vadd.f32 %v1194_v31, %v1164_v20  ;;  %v1343_v42 = vld [vmem:[#allocation3 + $0x63] sm:$0xff]  ;;  %v1344_v50 = vld [vmem:[#allocation3 + $0x6b] sm:$0xff] }
 0x1a5   :  { %v1223_v13 = vsel %vm5063_vm11, %v5793_v62, 0.0  ;;  %v1224_v36 = vsel %vm5063_vm11, %v5795_v57, 0.0  ;;  %v1079_v35 = vsel %vm5109_vm5, %v1061_v12, 0.0  ;;  %v1253_v46 = vsel %vm5073_vm14, %v5797_v9, 0.0 }
 0x1a6   :  { %v5868_v22 = vpack.c.bf16 %v1141_v16, %v1140_v28  ;;  %v1046_v34 = vadd.f32 %v1031_v47, %v998_v33  ;;  %v1238_v41 = vadd.f32 %v1223_v13, %v1208_v15  ;;  %v1239_v8 = vadd.f32 %v1224_v36, %v1209_v10  ;;  %v1345_v28 = vld [vmem:[#allocation3 + $0x73] sm:$0x7]  ;;  %v4669_v47 = vld [vmem:[%s7674_s3 + $0xa0] sm:$0xff]   ;;  %v4672_v10 = vld [vmem:[%s7674_s3 + $0xb8] sm:$0xff]  }
 0x1a7   :  { %v1127_v62 = vsel %vm5097_vm2, %v1109_v23, 0.0  ;;  %v1254_v54 = vsel %vm5073_vm14, %v5805_v26, 0.0  ;;  %v1283_v18 = vsel %vm5086_vm1, %v5809_v38, 0.0  ;;  %v1165_v14 = vsel %vm823_vm3, %v869_v19, 0.0  ;;  %v6034_v36 = vld [vmem:[%s7676_s5 + $0xc0] sm:$0xff]  }
 0x1a8   :  { %4435 = vmatprep.mubr.bf16.mxu0 %v5868_v22  ;;  %v1094_v56 = vadd.f32 %v1079_v35, %v1046_v34  ;;  %v1268_v57 = vadd.f32 %v1253_v46, %v1238_v41  ;;  %v1269_v25 = vadd.f32 %v1254_v54, %v1239_v8  ;;  %v1195_v9 = vsel %vm5034_vm4, %v917_v2, 0.0  ;;  %v6039_v41 = vld [vmem:[%s7676_s5 + $0x228] sm:$0xff]  }
 0x1a9   :  { %v1284_v52 = vsel %vm5086_vm1, %v1060_v40, 0.0  ;;  %v1210_v7 = vadd.f32 %v1195_v9, %v1165_v14  ;;  %v1313_v26 = vsel %vm5109_vm5, %v5822_v29, 0.0  ;;  %v1225_v49 = vsel %vm5063_vm11, %v965_v59, 0.0  ;;  %v6054_v14 = vld [vmem:[%s7676_s5 + $0x18] sm:$0xff]   ;;  %v6059_v9 = vld [vmem:[%s7676_s5 + $0xc8] sm:$0xff]  }
 0x1aa   :  { %v1142_v1 = vadd.f32 %v1127_v62, %v1094_v56  ;;  %v1298_v0 = vadd.f32 %v1283_v18, %v1268_v57  ;;  %v1299_v53 = vadd.f32 %v1284_v52, %v1269_v25  ;;  %v1314_v6 = vsel %vm5109_vm5, %v5824_v27, 0.0 }
 0x1ab   :  { %v1240_v40 = vadd.f32 %v1225_v49, %v1210_v7  ;;  %v1255_v5 = vsel %vm5073_vm14, %v1013_v44, 0.0  ;;  %v1358_v29 = vsel %vm5097_vm2, %v1343_v42, 0.0  ;;  %v1359_v43 = vsel %vm5097_vm2, %v1344_v50, 0.0  ;;  %v6078_v42 = vld [vmem:[%s7676_s5 + $0x2e8] sm:$0xff]   ;;  %v6083_v50 = vld [vmem:[%s7676_s5 + $0x10] sm:$0xff]  }
 0x1ac   :  { %v5898_v38 = vpack.c.bf16 %v1142_v1, %v1142_v1  ;;  %v1328_v19 = vadd.f32 %v1313_v26, %v1298_v0  ;;  %v1329_v2 = vadd.f32 %v1314_v6, %v1299_v53  ;;  %v1285_v27 = vsel %vm5086_vm1, %v1061_v12, 0.0  ;;  %v6064_v1 = vld [vmem:[%s7676_s5 + $0x180] sm:$0xff]   ;;  %v6073_v26 = vld [vmem:[%s7676_s5 + $0x230] sm:$0xff]  }
 0x1ad   :  { %v1270_v59 = vadd.f32 %v1255_v5, %v1240_v40  ;;  %v1315_v44 = vsel %vm5109_vm5, %v1109_v23, 0.0  ;;  %v1360_v33 = vsel %vm5097_vm2, %v1345_v28, 0.0  ;;  %v4670_v23 = vld [vmem:[%s7674_s3 + $0xa8] sm:$0xff]   ;;  %v3658_v52 = vunpack.c.l.bf16 %v6034_v36  ;;  %v6092_v40 = vld [vmem:[%s7676_s5 + $0x178] sm:$0xff]   ;;  %v6500_v5 = vld [vmem:[%s7676_s5 + $0x330] sm:$0xff]  }
 0x1ae   :  { %4436 = vmatmul.mubr.bf16.gmra.mrb[72].mxu0 %v5898_v38  ;;  %v1373_v20 = vadd.f32 %v1358_v29, %v1328_v19  ;;  %v1374_v32 = vadd.f32 %v1359_v43, %v1329_v2  ;;  %v3710_v7 = vunpack.c.l.bf16 %v6039_v41  ;;  %v6166_v43 = vld [vmem:[%s7676_s5 + $0x20] sm:$0xff]   ;;  %v6446_v28 = vld [vmem:[%s7676_s5 + $0x58] sm:$0xff]   ;;  %vm1735_vm3 = vcmask 1042432  }
 0x1af   :  { %4487 = vmatprep.mubr.bf16.mxu0 %v5223_v51  ;;  %v1300_v31 = vadd.f32 %v1285_v27, %v1270_v59  ;;  %v6101_v59 = vld [vmem:[%s7676_s5 + $0x2e0] sm:$0xff]   ;;  %7868 = vst [vmem:[#allocation23_spill] sm:$0xff] %v6446_v28  ;;  %vm3282_vm4 = vcmask 1040384  }
 0x1b0   :  { %v5913_v48 = vpack.c.bf16 %v1374_v32, %v1373_v20  ;;  %v6106_v20 = vld [vmem:[%s7676_s5 + $0xd0] sm:$0xff]   ;;  %v6152_v27 = vld [vmem:[%s7676_s5 + $0x240] sm:$0xff]  }
 0x1b1   :  { %v1330_v16 = vadd.f32 %v1315_v44, %v1300_v31  ;;  %v6115_v44 = vld [vmem:[%s7676_s5 + $0x238] sm:$0xff]  }
 0x1b2   :  { %4467 = vmatprep.mubr.bf16.mxu1 %v5913_v48 }
 0x1b3   :  { %v1375_v15 = vadd.f32 %v1360_v33, %v1330_v16  ;;  %v6121_v33 = vld [vmem:[%s7677_s4] ss:$0 sm:$0xff] }
 0x1b5   :  { %v5923_v12 = vpack.c.bf16 %v1375_v15, %v1375_v15 }
 0x1b6   :  { %4488 = vmatmul.mubr.bf16.vlgmr.msra.gmra.mrb[76].mxu0 %v5347_v11 }
 0x1b7   :  { %4491 = vmatprep.mubr.bf16.mxu0 %v5520_v21  ;;  %4536 = vmatpush3.bf16.msra.mxu0 %v5623_v30 }
 0x1b8   :  { %4468 = vmatmul.mubr.bf16.gmra.mrb[72].mxu1 %v5923_v12  ;;  %4537 = vmatprep.subr.bf16.mxu0 %v4666_v61 }
 0x1b9   :  { %4519 = vmatprep.mubr.bf16.mxu1 %v5277_v39 }
 0x1bb   :  { %4538 = vmatpush3.bf16.msra.mxu0 %v4666_v61 }
 0x1bc   :  { %4539 = vmatprep.subr.bf16.mxu0 %v4667_v3 }
 0x1be   :  { %4492 = vmatmul.mubr.bf16.gmra.mrb[80].mxu0 %v5645_v58 }
 0x1bf   :  { %4495 = vmatprep.mubr.bf16.mxu0 %v5704_v55  ;;  %4540 = vmatpush3.bf16.msra.mxu0 %v4667_v3 }
 0x1c0   :  { %4520 = vmatmul.mubr.bf16.vlgmr.msra.gmra.mrb[76].mxu1 %v5433_v24  ;;  %4541 = vmatprep.subr.bf16.mxu0 %v4668_v4 }
 0x1c1   :  { %4568 = vmatpush3.bf16.msra.mxu1 %v5623_v30  ;;  %4523 = vmatprep.mubr.bf16.mxu1 %v5568_v45  ;;  %v4671_v30 = vld [vmem:[%s7674_s3 + $0xb0] sm:$0xff]  }
 0x1c2   :  { %4569 = vmatprep.subr.bf16.mxu1 %v4666_v61 }
 0x1c3   :  { %4542 = vmatpush3.bf16.msra.mxu0 %v4668_v4 }
 0x1c4   :  { %4543 = vmatprep.subr.bf16.mxu0 %v4669_v47 }
 0x1c5   :  { %4570 = vmatpush3.bf16.msra.mxu1 %v4666_v61 }
 0x1c6   :  { %4571 = vmatprep.subr.bf16.mxu1 %v4667_v3  ;;  %4496 = vmatmul.mubr.bf16.gmra.mrb[84].mxu0 %v5782_v37 }
 0x1c7   :  { %4499 = vmatprep.mubr.bf16.mxu0 %v5868_v22  ;;  %4544 = vmatpush3.bf16.msra.mxu0 %v4669_v47 }
 0x1c8   :  { %4524 = vmatmul.mubr.bf16.gmra.mrb[80].mxu1 %v5667_v63  ;;  %4545 = vmatprep.subr.bf16.mxu0 %v4670_v23 }
 0x1c9   :  { %4572 = vmatpush3.bf16.msra.mxu1 %v4667_v3  ;;  %4527 = vmatprep.mubr.bf16.mxu1 %v5741_v60 }
 0x1ca   :  { %4573 = vmatprep.subr.bf16.mxu1 %v4668_v4 }
 0x1cb   :  { %4546 = vmatpush3.bf16.msra.mxu0 %v4670_v23 }
 0x1cc   :  { %4547 = vmatprep.subr.bf16.mxu0 %v4671_v30 }
 0x1cd   :  { %4574 = vmatpush3.bf16.msra.mxu1 %v4668_v4 }
 0x1ce   :  { %4575 = vmatprep.subr.bf16.mxu1 %v4669_v47  ;;  %4500 = vmatmul.mubr.bf16.gmra.mrb[88].mxu0 %v5898_v38 }
 0x1cf   :  { %4548 = vmatpush3.bf16.msra.mxu0 %v4671_v30  ;;  %4551 = vmatprep.mubr.bf16.mxu0 %v5223_v51  ;;  %v5980_v51 = vld [vmem:[%s7676_s5 + $0x8] sm:$0xff]  }
 0x1d0   :  { %4528 = vmatmul.mubr.bf16.gmra.mrb[84].mxu1 %v5836_v17  ;;  %4549 = vmatprep.subr.bf16.mxu0 %v4672_v10  ;;  %v3630_v13 = vunpack.c.l.bf16 %v5980_v51  ;;  %v3631_v18 = vunpack.c.h.bf16 %v5980_v51 }
 0x1d1   :  { %4576 = vmatpush3.bf16.msra.mxu1 %v4669_v47  ;;  %4531 = vmatprep.mubr.bf16.mxu1 %v5913_v48 }
 0x1d2   :  { %4577 = vmatprep.subr.bf16.mxu1 %v4670_v23 }
 0x1d3   :  { %4550 = vmatpush3.bf16.msra.mxu0 %v4672_v10 }
 0x1d5   :  { %4578 = vmatpush3.bf16.msra.mxu1 %v4670_v23 }
 0x1d6   :  { %4579 = vmatprep.subr.bf16.mxu1 %v4671_v30  ;;  %4552 = vmatmul.mubr.bf16.vlgmr.msra.gmra.mrb[92].mxu0 %v5347_v11  ;;  %v5990_v11 = vld [vmem:[%s7676_s5 + $0x170] sm:$0xff]  }
 0x1d7   :  { %4555 = vmatprep.mubr.bf16.mxu0 %v5520_v21  ;;  %v3682_v34 = vunpack.c.l.bf16 %v5990_v11  ;;  %v3683_v0 = vunpack.c.h.bf16 %v5990_v11  ;;  %v6235_v11 = vld [vmem:[%s7676_s5 + $0xe0] sm:$0xff]  }
 0x1d8   :  { %4532 = vmatmul.mubr.bf16.gmra.mrb[88].mxu1 %v5923_v12 }
 0x1d9   :  { %4580 = vmatpush3.bf16.msra.mxu1 %v4671_v30  ;;  %4583 = vmatprep.mubr.bf16.mxu1 %v5277_v39  ;;  %v5985_v39 = vld [vmem:[%s7676_s5 + $0xb8] sm:$0xff]   ;;  %v6430_v30 = vld [vmem:[%s7676_s5 + $0x100] sm:$0xff]  }
 0x1da   :  { %4581 = vmatprep.subr.bf16.mxu1 %v4672_v10  ;;  %7866 = vst [vmem:[#allocation21_spill] sm:$0xff] %v6430_v30 }
 0x1dd   :  { %4582 = vmatpush3.bf16.msra.mxu1 %v4672_v10  ;;  %v6147_v10 = vld [vmem:[%s7676_s5 + $0x190] sm:$0xff]  }
 0x1de   :  { %4556 = vmatmul.mubr.bf16.gmra.mrb[96].mxu0 %v5645_v58  ;;  %v6007_v58 = vld [vmem:[%s7676_s5] sm:$0xff]  }
 0x1df   :  { %4559 = vmatprep.mubr.bf16.mxu0 %v5704_v55  ;;  %v3626_v56 = vunpack.c.l.bf16 %v6007_v58  ;;  %v3627_v49 = vunpack.c.h.bf16 %v6007_v58 }
 0x1e0   :  { %4584 = vmatmul.mubr.bf16.vlgmr.msra.gmra.mrb[92].mxu1 %v5433_v24  ;;  %v5995_v24 = vld [vmem:[%s7676_s5 + $0x220] sm:$0xff]  }
 0x1e1   :  { %4587 = vmatprep.mubr.bf16.mxu1 %v5568_v45  ;;  %v6002_v45 = vld [vmem:[%s7676_s5 + $0x2d8] sm:$0xff]   ;;  %v3707_v35 = vunpack.c.h.bf16 %v5995_v24  ;;  %v3706_v19 = vunpack.c.l.bf16 %v5995_v24 }
 0x1e2   :  { %v3734_v8 = vunpack.c.l.bf16 %v6002_v45  ;;  %v3735_v53 = vunpack.c.h.bf16 %v6002_v45 }
 0x1e6   :  { %4560 = vmatmul.mubr.bf16.gmra.mrb[100].mxu0 %v5782_v37  ;;  %v6024_v37 = vld [vmem:[%s7676_s5 + $0x2d0] sm:$0xff]  }
 0x1e7   :  { %4563 = vmatprep.mubr.bf16.mxu0 %v5868_v22  ;;  %v3655_v22 = vunpack.c.h.bf16 %v5985_v39  ;;  %v3730_v25 = vunpack.c.l.bf16 %v6024_v37  ;;  %v3731_v2 = vunpack.c.h.bf16 %v6024_v37 }
 0x1e8   :  { %4588 = vmatmul.mubr.bf16.gmra.mrb[96].mxu1 %v5667_v63  ;;  %v6012_v63 = vld [vmem:[%s7676_s5 + $0xb4] ss:$360 sps:$4 sm:$0xff]  }
 0x1e9   :  { %4591 = vmatprep.mubr.bf16.mxu1 %v5741_v60  ;;  %v6019_v60 = vld [vmem:[%s7676_s5 + $0x168] sm:$0xff]   ;;  %v1760_v62 = vunpack.c.l.bf16 %v6012_v63  ;;  %v1894_v57 = vunpack.c.h.bf16 %v6012_v63 }
 0x1ea   :  { %v3678_v54 = vunpack.c.l.bf16 %v6019_v60  ;;  %v3679_v6 = vunpack.c.h.bf16 %v6019_v60 }
 0x1ee   :  { %4564 = vmatmul.mubr.bf16.gmra.mrb[104].mxu0 %v5898_v38  ;;  %v3654_v38 = vunpack.c.l.bf16 %v5985_v39 }
 0x1f0   :  { %4592 = vmatmul.mubr.bf16.gmra.mrb[100].mxu1 %v5836_v17 }
 0x1f1   :  { %4595 = vmatprep.mubr.bf16.mxu1 %v5913_v48  ;;  %v6460_v48 = vld [vmem:[%s7676_s5 + $0x328] sm:$0xff]  }
 0x1f2   :  { %7870 = vst [vmem:[#allocation25_spill] sm:$0xff] %v6460_v48 }
 0x1f8   :  { %4596 = vmatmul.mubr.bf16.gmra.mrb[104].mxu1 %v5923_v12 }
 0x233   :  { %v5997_v21 = vpop.f32.mrb[60].mxu0 }
 0x234   :  { %v6014_v55 = vpop.f32.mrb[61].mxu0 }
 0x235   :  { %v6026_v17 = vpop.f32.mrb[62].mxu0 }
 0x236   :  { %v6043_v46 = vpop.f32.mrb[63].mxu0 }
 0x23b   :  { %v4457_v32 = vpop.f32.mrb[60].mxu1 }
 0x23c   :  { %v1642_v16 = vmax.f32 %v5997_v21, %v4457_v32  ;;  %v1578_v15 = vpop.f32.mrb[61].mxu1  ;;  %v6133_v21 = vld [vmem:[%s7676_s5 + $0x28] sm:$0xff]   ;;  %v6138_v32 = vld [vmem:[%s7676_s5 + $0xd8] sm:$0xff]  }
 0x23d   :  { %v1640_v4 = vmax.f32 %v6014_v55, %v1578_v15  ;;  %v4458_v47 = vpop.f32.mrb[62].mxu1 }
 0x23e   :  { %v1643_v3 = vmax.f32 %v6026_v17, %v4458_v47  ;;  %v1581_v55 = vpop.f32.mrb[63].mxu1  ;;  %v6157_v17 = vld [vmem:[%s7676_s5 + $0x2f8] sm:$0xff]   ;;  %v1664_v47 = vadd.f32 %v6121_v33, %v1642_v16 }
 0x23f   :  { %v1641_v31 = vmax.f32 %v6043_v46, %v1581_v55  ;;  %v1662_v29 = vadd.f32 %v6121_v33, %v1640_v4  ;;  %v6175_v46 = vld [vmem:[%s7676_s5 + $0x188] sm:$0xff]  }
 0x240   :  { %v1709_v61 = vmul.f32 %v3630_v13, %v1664_v47  ;;  %v1777_v16 = vmul.f32 %v3655_v22, %v1664_v47  ;;  %v1844_v55 = vmul.f32 %v3682_v34, %v1664_v47  ;;  %v1665_v23 = vadd.f32 %v6121_v33, %v1643_v3 }
 0x241   :  { %v1663_v4 = vadd.f32 %v6121_v33, %v1641_v31  ;;  %v1911_v31 = vmul.f32 %v3707_v35, %v1664_v47  ;;  %v1707_v15 = vmul.f32 %v3626_v56, %v1662_v29  ;;  %v1775_v12 = vmul.f32 %v1760_v62, %v1662_v29 }
 0x242   :  { %v1842_v13 = vmul.f32 %v3678_v54, %v1662_v29  ;;  %v1909_v56 = vmul.f32 %v1894_v57, %v1662_v29  ;;  %v1976_v62 = vmul.f32 %v3730_v25, %v1662_v29  ;;  %v1978_v58 = vmul.f32 %v3734_v8, %v1664_v47  ;;  %v6226_v8 = vld [vmem:[%s7676_s5 + $0x2f0] sm:$0xff]  }
 0x243   :  { %v1708_v22 = vmul.f32 %v3627_v49, %v1663_v4  ;;  %v1776_v34 = vmul.f32 %v3654_v38, %v1663_v4  ;;  %v1843_v35 = vmul.f32 %v3679_v6, %v1663_v4  ;;  %v1910_v3 = vmul.f32 %v3706_v19, %v1663_v4  ;;  %v6416_v47 = vld [vmem:[%s7676_s5 + $0x270] sm:$0xff]  }
 0x244   :  { %v1977_v54 = vmul.f32 %v3731_v2, %v1663_v4  ;;  %v1710_v60 = vmul.f32 %v3631_v18, %v1665_v23  ;;  %v1778_v63 = vmul.f32 %v3658_v52, %v1665_v23  ;;  %v1845_v24 = vmul.f32 %v3683_v0, %v1665_v23  ;;  %v6240_v0 = vld [vmem:[%s7676_s5 + $0x248] sm:$0xff]   ;;  %v6273_v4 = vld [vmem:[%s7676_s5 + $0x254] sm:$0x3]  ;;  %7864 = vst [vmem:[#allocation19_spill] sm:$0xff] %v6416_v47 }
 0x245   :  { %v1722_v39 = vadd.f32 %v1708_v22, %v1707_v15  ;;  %v1790_v49 = vadd.f32 %v1776_v34, %v1775_v12  ;;  %v1857_v38 = vadd.f32 %v1843_v35, %v1842_v13  ;;  %v1924_v57 = vadd.f32 %v1910_v3, %v1909_v56  ;;  %v6282_v35 = vld [vmem:[%s7676_s5 + $0x308] sm:$0x3]  ;;  %v6287_v56 = vld [vmem:[%s7676_s5 + $0x30] sm:$0xff]   ;;  %v6367_v22 = vld [vmem:[%s7676_s5 + $0x30c] sm:$0xf] }
 0x246   :  { %v1991_v25 = vadd.f32 %v1977_v54, %v1976_v62  ;;  %v1912_v51 = vmul.f32 %v3710_v7, %v1665_v23  ;;  %v1979_v18 = vmul.f32 %v3735_v53, %v1665_v23  ;;  %v6252_v53 = vld [vmem:[%s7676_s5 + $0x38] sm:$0x3]  ;;  %7857 = vst [vmem:[#allocation12_spill] sm:$0xff] %v6367_v22  ;;  %v6372_v13 = vld [vmem:[%s7676_s5 + $0x48] sm:$0xff]   ;;  %v6425_v15 = vld [vmem:[%s7676_s5 + $0x320] sm:$0xff]  }
 0x247   :  { %v1723_v6 = vadd.f32 %v1722_v39, %v1709_v61  ;;  %v1791_v37 = vadd.f32 %v1790_v49, %v1777_v16  ;;  %v1858_v19 = vadd.f32 %v1857_v38, %v1844_v55  ;;  %v1925_v52 = vadd.f32 %v1924_v57, %v1911_v31  ;;  %v6263_v16 = vld [vmem:[%s7676_s5 + $0xec] sm:$0x3]  ;;  %v6268_v55 = vld [vmem:[%s7676_s5 + $0x1a0] sm:$0x3]  ;;  %v6292_v62 = vld [vmem:[%s7676_s5 + $0x198] sm:$0xff]   ;;  %7858 = vst [vmem:[#allocation13_spill] sm:$0xff] %v6372_v13 }
 0x248   :  { %v1992_v2 = vadd.f32 %v1991_v25, %v1978_v58  ;;  %v6301_v49 = vld [vmem:[%s7676_s5 + $0x300] sm:$0xff]   ;;  %v6306_v38 = vld [vmem:[%s7676_s5 + $0xe8] ss:$360 sps:$4 sm:$0xff]   ;;  %v6386_v31 = vld [vmem:[%s7676_s5 + $0x318] sm:$0xff]   ;;  %7865 = vst [vmem:[#allocation20_spill] sm:$0xff] %v6425_v15  ;;  %v7878_v15 = vunpack.c.l.bf16 %v6054_v14 }
 0x249   :  { %v6242_v29 = vadd.f32 %v1723_v6, %v1710_v60  ;;  %v6244_v61 = vadd.f32 %v1791_v37, %v1778_v63  ;;  %v6246_v7 = vadd.f32 %v1858_v19, %v1845_v24  ;;  %v6254_v12 = vadd.f32 %v1925_v52, %v1912_v51  ;;  %v6315_v24 = vld [vmem:[%s7676_s5 + $0x40] sm:$0xff]   ;;  %v6320_v6 = vld [vmem:[%s7676_s5 + $0xf8] sm:$0xff]   ;;  %v6329_v52 = vld [vmem:[%s7676_s5 + $0x1a8] sm:$0xff]   ;;  %7860 = vst [vmem:[#allocation15_spill] sm:$0xff] %v6386_v31 }
 0x24a   :  { %v6256_v23 = vadd.f32 %v1992_v2, %v1979_v18  ;;  %7849 = vst [vmem:[#allocation4_spill] sm:$0xff] %v6315_v24  ;;  %7850 = vst [vmem:[#allocation5_spill] sm:$0xff] %v6320_v6  ;;  %v6334_v2 = vld [vmem:[%s7676_s5 + $0x260] sm:$0xff]   ;;  %v6339_v37 = vld [vmem:[%s7676_s5 + $0x310] sm:$0xff]  }
 0x24b   :  { %7851 = vst [vmem:[#allocation6_spill] sm:$0xff] %v6329_v52  ;;  %7852 = vst [vmem:[#allocation7_spill] sm:$0xff] %v6334_v2  ;;  %v6348_v57 = vld [vmem:[%s7676_s5 + $0x3c] ss:$360 sps:$4 sm:$0xff]   ;;  %v6353_v63 = vld [vmem:[%s7676_s5 + $0xf0] sm:$0xff]  }
 0x24c   :  { %7853 = vst [vmem:[#allocation8_spill] sm:$0xff] %v6339_v37  ;;  %7854 = vst [vmem:[#allocation9_spill] sm:$0xff] %v6348_v57  ;;  %v6358_v19 = vld [vmem:[%s7676_s5 + $0x258] sm:$0xff]   ;;  %v6377_v51 = vld [vmem:[%s7676_s5 + $0x1b0] sm:$0xff]  }
 0x24d   :  { %7855 = vst [vmem:[#allocation10_spill] sm:$0xff] %v6353_v63  ;;  %7856 = vst [vmem:[#allocation11_spill] sm:$0xff] %v6358_v19  ;;  %v6395_v25 = vld [vmem:[%s7676_s5 + $0x50] sm:$0xff]   ;;  %v6406_v58 = vld [vmem:[%s7676_s5 + $0x108] sm:$0xff]  }
 0x24e   :  { %7859 = vst [vmem:[#allocation14_spill] sm:$0xff] %v6377_v51  ;;  %7861 = vst [vmem:[#allocation16_spill] sm:$0xff] %v6395_v25  ;;  %v6411_v54 = vld [vmem:[%s7676_s5 + $0x1b8] sm:$0xff]   ;;  %v6435_v3 = vld [vmem:[%s7676_s5 + $0x268] sm:$0xff]   ;;  %v7876_v51 = vunpack.c.h.bf16 %v6039_v41 }
 0x24f   :  { %7862 = vst [vmem:[#allocation17_spill] sm:$0xff] %v6406_v58  ;;  %7863 = vst [vmem:[#allocation18_spill] sm:$0xff] %v6411_v54  ;;  %v6451_v22 = vld [vmem:[%s7676_s5 + $0x1c0] sm:$0xff]   ;;  %v6478_v37 = vld [vmem:[%s7676_s5 + $0x118] sm:$0xff]   ;;  %v7875_v54 = vunpack.c.l.bf16 %v6092_v40 }
 0x250   :  { %7867 = vst [vmem:[#allocation22_spill] sm:$0xff] %v6435_v3  ;;  %7869 = vst [vmem:[#allocation24_spill] sm:$0xff] %v6451_v22  ;;  %v6473_v6 = vld [vmem:[%s7676_s5 + $0x60] sm:$0xff]   ;;  %v6487_v52 = vld [vmem:[%s7676_s5 + $0x1c8] sm:$0xff]  }
 0x251   :  { %v6492_v13 = vld [vmem:[%s7676_s5 + $0x280] sm:$0xff]   ;;  %v6505_v39 = vld [vmem:[%s7676_s5 + $0x110] sm:$0xff]   ;;  %v6517_v25 = vld [vmem:[%s7676_s5 + $0x278] sm:$0xff]  }
 0x252   :  { %7871 = vst [vmem:[#allocation26_spill] sm:$0xff] %v6505_v39  ;;  %7872 = vst [vmem:[#allocation27_spill] sm:$0xff] %v6517_v25 }
 0x254   :  { %v6397_v60 = vpop.f32.mrb[64].mxu0 }
 0x255   :  { %v1498_v18 = vpop.f32.mrb[65].mxu0 }
 0x256   :  { %v6437_v45 = vpop.f32.mrb[66].mxu0 }
 0x257   :  { %v1501_v63 = vpop.f32.mrb[67].mxu0 }
 0x259   :  { %v4461_v57 = vpop.f32.mrb[64].mxu1 }
 0x25a   :  { %v1646_v2 = vmax.f32 %v6397_v60, %v4461_v57  ;;  %v1594_v19 = vpop.f32.mrb[65].mxu1 }
 0x25b   :  { %v1644_v58 = vmax.f32 %v1498_v18, %v1594_v19  ;;  %v4462_v31 = vpop.f32.mrb[66].mxu1 }
 0x25c   :  { %v1647_v47 = vmax.f32 %v6437_v45, %v4462_v31  ;;  %v1597_v19 = vpop.f32.mrb[67].mxu1  ;;  %v1668_v45 = vadd.f32 %v6121_v33, %v1646_v2  ;;  %v7877_v31 = vunpack.c.l.bf16 %v6101_v59 }
 0x25d   :  { %v1666_v34 = vadd.f32 %v6121_v33, %v1644_v58  ;;  %v1645_v3 = vmax.f32 %v1501_v63, %v1597_v19  ;;  %v7873_v58 = vunpack.c.l.bf16 %v6083_v50  ;;  %v7874_v19 = vunpack.c.h.bf16 %v6034_v36 }
 0x25e   :  { %v1713_v22 = vmul.f32 %v7878_v15, %v1668_v45  ;;  %v7883_v15 = vunpack.c.l.bf16 %v6059_v9 }
 0x25f   :  { %v1711_v63 = vmul.f32 %v7873_v58, %v1666_v34  ;;  %v1779_v30 = vmul.f32 %v7874_v19, %v1666_v34  ;;  %v1846_v18 = vmul.f32 %v7875_v54, %v1666_v34  ;;  %v1913_v2 = vmul.f32 %v7876_v51, %v1666_v34 }
 0x260   :  { %v1980_v24 = vmul.f32 %v7877_v31, %v1666_v34  ;;  %v1667_v60 = vadd.f32 %v6121_v33, %v1645_v3  ;;  %v1669_v54 = vadd.f32 %v6121_v33, %v1647_v47  ;;  %v7879_v3 = vunpack.c.h.bf16 %v6059_v9 }
 0x261   :  { %v1725_v58 = vadd.f32 %v6242_v29, %v1711_v63  ;;  %v1793_v36 = vadd.f32 %v6244_v61, %v1779_v30  ;;  %v1860_v19 = vadd.f32 %v6246_v7, %v1846_v18  ;;  %v1927_v41 = vadd.f32 %v6254_v12, %v1913_v2 }
 0x262   :  { %v1994_v51 = vadd.f32 %v6256_v23, %v1980_v24  ;;  %v1781_v31 = vmul.f32 %v7879_v3, %v1668_v45  ;;  %v7880_v29 = vunpack.c.l.bf16 %v6064_v1  ;;  %v7881_v30 = vunpack.c.h.bf16 %v6073_v26 }
 0x263   :  { %v7882_v7 = vunpack.c.h.bf16 %v6083_v50  ;;  %v1780_v18 = vmul.f32 %v7883_v15, %v1667_v60  ;;  %v7884_v12 = vunpack.c.h.bf16 %v6092_v40  ;;  %v7885_v24 = vunpack.c.l.bf16 %v6073_v26  ;;  %v6570_v26 = vld [vmem:[%s7676_s5 + $0x68] sm:$0xff]  }
 0x264   :  { %v1848_v63 = vmul.f32 %v7880_v29, %v1668_v45  ;;  %v1915_v61 = vmul.f32 %v7881_v30, %v1668_v45  ;;  %v7886_v3 = vunpack.c.h.bf16 %v6101_v59  ;;  %v7887_v29 = vunpack.c.l.bf16 %v6078_v42  ;;  %7890 = vst [vmem:[#allocation28_spill] sm:$0xff] %v6570_v26  ;;  %v6575_v59 = vld [vmem:[%s7676_s5 + $0x1d0] sm:$0xff]  }
 0x265   :  { %v1712_v47 = vmul.f32 %v7882_v7, %v1667_v60  ;;  %v1847_v23 = vmul.f32 %v7884_v12, %v1667_v60  ;;  %v1914_v2 = vmul.f32 %v7885_v24, %v1667_v60  ;;  %v7888_v30 = vunpack.c.h.bf16 %v6054_v14  ;;  %7891 = vst [vmem:[#allocation29_spill] sm:$0xff] %v6575_v59 }
 0x266   :  { %v1981_v34 = vmul.f32 %v7886_v3, %v1667_v60  ;;  %v1982_v57 = vmul.f32 %v7887_v29, %v1668_v45  ;;  %v7889_v50 = vunpack.c.l.bf16 %v6106_v20  ;;  %v1794_v15 = vadd.f32 %v1793_v36, %v1780_v18  ;;  %v6766_v29 = vld [vmem:[%s7676_s5 + $0x360] sm:$0xff]  }
 0x267   :  { %v1714_v48 = vmul.f32 %v7888_v30, %v1669_v54  ;;  %v1726_v9 = vadd.f32 %v1725_v58, %v1712_v47  ;;  %v1861_v28 = vadd.f32 %v1860_v19, %v1847_v23  ;;  %v1928_v40 = vadd.f32 %v1927_v41, %v1914_v2  ;;  %v6586_v23 = vld [vmem:[%s7676_s5 + $0x338] sm:$0xff]   ;;  %v6708_v30 = vld [vmem:[%s7676_s5 + $0x294] sm:$0xf]  ;;  %7920 = vst [vmem:[#allocation55_spill] sm:$0xff] %v6766_v29 }
 0x268   :  { %v1782_v7 = vmul.f32 %v7889_v50, %v1669_v54  ;;  %v1995_v12 = vadd.f32 %v1994_v51, %v1981_v34  ;;  %v7892_v14 = vunpack.c.h.bf16 %v6064_v1  ;;  %v7893_v45 = vunpack.c.l.bf16 %v6115_v44  ;;  %7895 = vst [vmem:[#allocation30_spill] sm:$0xff] %v6586_v23  ;;  %v6703_v50 = vld [vmem:[%s7676_s5 + $0x1e0] sm:$0xff]   ;;  %7912 = vst [vmem:[#allocation47_spill] sm:$0xff] %v6708_v30  ;;  %v6724_v2 = vld [vmem:[%s7676_s5 + $0x138] sm:$0xff]  }
 0x269   :  { %v7894_v36 = vunpack.c.h.bf16 %v6078_v42  ;;  %v1727_v41 = vadd.f32 %v1726_v9, %v1713_v22  ;;  %v1795_v51 = vadd.f32 %v1794_v15, %v1781_v31  ;;  %v1862_v34 = vadd.f32 %v1861_v28, %v1848_v63  ;;  %v6596_v42 = vld [vmem:[%s7676_s5 + $0x74] sm:$0x3]  ;;  %v6601_v28 = vld [vmem:[%s7676_s5 + $0x128] sm:$0x3]  ;;  %v6614_v31 = vld [vmem:[%s7676_s5 + $0x1dc] sm:$0x3] }
 0x26a   :  { %v1849_v60 = vmul.f32 %v7892_v14, %v1669_v54  ;;  %v1916_v58 = vmul.f32 %v7893_v45, %v1669_v54  ;;  %v1929_v47 = vadd.f32 %v1928_v40, %v1915_v61  ;;  %v1996_v18 = vadd.f32 %v1995_v12, %v1982_v57  ;;  %7896 = vst [vmem:[#allocation31_spill] sm:$0xff] %v6596_v42  ;;  %v6619_v63 = vld [vmem:[%s7676_s5 + $0x290] sm:$0x3]  ;;  %v6624_v61 = vld [vmem:[%s7676_s5 + $0x344] sm:$0x3]  ;;  %v6638_v15 = vld [vmem:[%s7676_s5 + $0x288] sm:$0xff]  }
 0x26b   :  { %v1983_v19 = vmul.f32 %v7894_v36, %v1669_v54  ;;  %v6588_v24 = vadd.f32 %v1727_v41, %v1714_v48  ;;  %7897 = vst [vmem:[#allocation32_spill] sm:$0xff] %v6601_v28  ;;  %v6603_v22 = vadd.f32 %v1795_v51, %v1782_v7  ;;  %7898 = vst [vmem:[#allocation33_spill] sm:$0xff] %v6614_v31  ;;  %v6633_v9 = vld [vmem:[%s7676_s5 + $0x120] sm:$0xff]   ;;  %v6647_v45 = vld [vmem:[%s7676_s5 + $0x70] ss:$360 sps:$4 sm:$0xff]   ;;  %v7930_v42 = vunpack.c.l.bf16 %v6226_v8 }
 0x26c   :  { %v6605_v48 = vadd.f32 %v1862_v34, %v1849_v60  ;;  %v6607_v57 = vadd.f32 %v1929_v47, %v1916_v58  ;;  %7899 = vst [vmem:[#allocation34_spill] sm:$0xff] %v6619_v63  ;;  %7900 = vst [vmem:[#allocation35_spill] sm:$0xff] %v6624_v61  ;;  %v6652_v58 = vld [vmem:[%s7676_s5 + $0x12c] ss:$532 sps:$4 sm:$0xff]   ;;  %v6666_v47 = vld [vmem:[%s7676_s5 + $0x130] sm:$0xff]  }
 0x26d   :  { %v6609_v54 = vadd.f32 %v1996_v18, %v1983_v19  ;;  %7901 = vst [vmem:[#allocation36_spill] sm:$0xff] %v6633_v9  ;;  %7902 = vst [vmem:[#allocation37_spill] sm:$0xff] %v6638_v15  ;;  %v6661_v34 = vld [vmem:[%s7676_s5 + $0x80] sm:$0xff]   ;;  %v6671_v18 = vld [vmem:[%s7676_s5 + $0x1e8] sm:$0xff]  }
 0x26e   :  { %7903 = vst [vmem:[#allocation38_spill] sm:$0xff] %v6647_v45  ;;  %7904 = vst [vmem:[#allocation39_spill] sm:$0xff] %v6652_v58  ;;  %v6673_v19 = vpop.f32.mrb[68].mxu0  ;;  %v6682_v14 = vld [vmem:[%s7676_s5 + $0x298] sm:$0xff]   ;;  %v6687_v12 = vld [vmem:[%s7676_s5 + $0x350] sm:$0xff]  }
 0x26f   :  { %7905 = vst [vmem:[#allocation40_spill] sm:$0xff] %v6661_v34  ;;  %7906 = vst [vmem:[#allocation41_spill] sm:$0xff] %v6666_v47  ;;  %v6692_v41 = vld [vmem:[%s7676_s5 + $0x78] sm:$0xff]   ;;  %v6694_v51 = vpop.f32.mrb[69].mxu0  ;;  %v6713_v36 = vld [vmem:[%s7676_s5 + $0x348] sm:$0xff]  }
 0x270   :  { %7907 = vst [vmem:[#allocation42_spill] sm:$0xff] %v6671_v18  ;;  %7908 = vst [vmem:[#allocation43_spill] sm:$0xff] %v6682_v14  ;;  %v6715_v60 = vpop.f32.mrb[70].mxu0  ;;  %v6729_v1 = vld [vmem:[%s7676_s5 + $0x2a0] sm:$0xff]   ;;  %v6742_v31 = vld [vmem:[%s7676_s5 + $0x90] sm:$0xff]  }
 0x271   :  { %7909 = vst [vmem:[#allocation44_spill] sm:$0xff] %v6687_v12  ;;  %7910 = vst [vmem:[#allocation45_spill] sm:$0xff] %v6692_v41  ;;  %v1517_v45 = vpop.f32.mrb[71].mxu0  ;;  %v6747_v40 = vld [vmem:[%s7676_s5 + $0x140] sm:$0xff]   ;;  %v6756_v63 = vld [vmem:[%s7676_s5 + $0x1f8] sm:$0xff]   ;;  %v7926_v12 = vunpack.c.l.bf16 %v6166_v43 }
 0x272   :  { %7911 = vst [vmem:[#allocation46_spill] sm:$0xff] %v6703_v50  ;;  %7913 = vst [vmem:[#allocation48_spill] sm:$0xff] %v6713_v36  ;;  %v6761_v7 = vld [vmem:[%s7676_s5 + $0x2a8] sm:$0xff]   ;;  %v6780_v18 = vld [vmem:[%s7676_s5 + $0x1f0] sm:$0xff]  }
 0x273   :  { %7914 = vst [vmem:[#allocation49_spill] sm:$0xff] %v6724_v2  ;;  %7915 = vst [vmem:[#allocation50_spill] sm:$0xff] %v6729_v1  ;;  %v6775_v30 = vld [vmem:[%s7676_s5 + $0x88] sm:$0xff]   ;;  %v6789_v9 = vld [vmem:[%s7676_s5 + $0x358] sm:$0xff]  }
 0x274   :  { %7916 = vst [vmem:[#allocation51_spill] sm:$0xff] %v6742_v31  ;;  %7917 = vst [vmem:[#allocation52_spill] sm:$0xff] %v6747_v40  ;;  %v6798_v15 = vld [vmem:[%s7676_s5 + $0x148] sm:$0xff]  }
 0x275   :  { %7918 = vst [vmem:[#allocation53_spill] sm:$0xff] %v6756_v63  ;;  %7919 = vst [vmem:[#allocation54_spill] sm:$0xff] %v6761_v7  ;;  %v4465_v34 = vpop.f32.mrb[68].mxu1 }
 0x276   :  { %7921 = vst [vmem:[#allocation56_spill] sm:$0xff] %v6775_v30  ;;  %7922 = vst [vmem:[#allocation57_spill] sm:$0xff] %v6780_v18  ;;  %v1650_v50 = vmax.f32 %v6673_v19, %v4465_v34  ;;  %v1610_v41 = vpop.f32.mrb[69].mxu1  ;;  %v6807_v34 = vld [vmem:[%s7676_s5 + $0x2b0] sm:$0xff]   ;;  %v7929_v19 = vunpack.c.h.bf16 %v6115_v44 }
 0x277   :  { %7923 = vst [vmem:[#allocation58_spill] sm:$0xff] %v6789_v9  ;;  %7924 = vst [vmem:[#allocation59_spill] sm:$0xff] %v6798_v15  ;;  %v1648_v61 = vmax.f32 %v6694_v51, %v1610_v41  ;;  %v4466_v3 = vpop.f32.mrb[70].mxu1  ;;  %v7927_v41 = vunpack.c.h.bf16 %v6106_v20 }
 0x278   :  { %7925 = vst [vmem:[#allocation60_spill] sm:$0xff] %v6807_v34  ;;  %v1651_v58 = vmax.f32 %v6715_v60, %v4466_v3  ;;  %v1613_v47 = vpop.f32.mrb[71].mxu1  ;;  %v1672_v2 = vadd.f32 %v6121_v33, %v1650_v50  ;;  %v8005_v34 = vld [vmem:[#allocation13_spill] sm:$0xff] }
 0x279   :  { %v1670_v51 = vadd.f32 %v6121_v33, %v1648_v61  ;;  %v1649_v36 = vmax.f32 %v1517_v45, %v1613_v47  ;;  %v7928_v61 = vunpack.c.l.bf16 %v6175_v46  ;;  %v7931_v47 = vunpack.c.l.bf16 %v6133_v21 }
 0x27b   :  { %v1715_v28 = vmul.f32 %v7926_v12, %v1670_v51  ;;  %v1783_v31 = vmul.f32 %v7927_v41, %v1670_v51  ;;  %v1850_v45 = vmul.f32 %v7928_v61, %v1670_v51  ;;  %v1917_v50 = vmul.f32 %v7929_v19, %v1670_v51 }
 0x27c   :  { %v1984_v14 = vmul.f32 %v7930_v42, %v1670_v51  ;;  %v1671_v3 = vadd.f32 %v6121_v33, %v1649_v36  ;;  %v1673_v61 = vadd.f32 %v6121_v33, %v1651_v58  ;;  %v1717_v30 = vmul.f32 %v7931_v47, %v1672_v2 }
 0x27d   :  { %v1729_v12 = vadd.f32 %v6588_v24, %v1715_v28  ;;  %v1797_v20 = vadd.f32 %v6603_v22, %v1783_v31  ;;  %v1864_v41 = vadd.f32 %v6605_v48, %v1850_v45  ;;  %v1931_v44 = vadd.f32 %v6607_v57, %v1917_v50 }
 0x27e   :  { %v1998_v19 = vadd.f32 %v6609_v54, %v1984_v14  ;;  %v7932_v36 = vunpack.c.h.bf16 %v6138_v32  ;;  %v7933_v24 = vunpack.c.l.bf16 %v6147_v10  ;;  %v7934_v22 = vunpack.c.h.bf16 %v6152_v27 }
 0x27f   :  { %v7935_v31 = vunpack.c.h.bf16 %v6166_v43  ;;  %v7936_v45 = vunpack.c.l.bf16 %v6138_v32  ;;  %v7937_v57 = vunpack.c.h.bf16 %v6175_v46  ;;  %v7938_v14 = vunpack.c.l.bf16 %v6152_v27 }
 0x280   :  { %v1785_v51 = vmul.f32 %v7932_v36, %v1672_v2  ;;  %v1852_v28 = vmul.f32 %v7933_v24, %v1672_v2  ;;  %v1919_v48 = vmul.f32 %v7934_v22, %v1672_v2  ;;  %v7939_v36 = vunpack.c.h.bf16 %v6226_v8  ;;  %v6871_v8 = vld [vmem:[%s7676_s5 + $0xa0] sm:$0xff]  }
 0x281   :  { %v1716_v58 = vmul.f32 %v7935_v31, %v1671_v3  ;;  %v1784_v47 = vmul.f32 %v7936_v45, %v1671_v3  ;;  %v1851_v54 = vmul.f32 %v7937_v57, %v1671_v3  ;;  %v1918_v50 = vmul.f32 %v7938_v14, %v1671_v3  ;;  %v6864_v45 = vpop.f32.mrb[72].mxu0  ;;  %7943 = vst [vmem:[#allocation61_spill] sm:$0xff] %v6871_v8 }
 0x282   :  { %v1985_v42 = vmul.f32 %v7939_v36, %v1671_v3  ;;  %v7940_v24 = vunpack.c.l.bf16 %v6157_v17  ;;  %v7941_v22 = vunpack.c.h.bf16 %v6133_v21  ;;  %v7942_v43 = vunpack.c.l.bf16 %v6235_v11  ;;  %v6866_v14 = vpop.f32.mrb[73].mxu0  ;;  %v6876_v21 = vld [vmem:[%s7676_s5 + $0x150] sm:$0xff]  }
 0x283   :  { %v1730_v32 = vadd.f32 %v1729_v12, %v1716_v58  ;;  %v1798_v46 = vadd.f32 %v1797_v20, %v1784_v47  ;;  %v1865_v57 = vadd.f32 %v1864_v41, %v1851_v54  ;;  %v1932_v29 = vadd.f32 %v1931_v44, %v1918_v50  ;;  %7944 = vst [vmem:[#allocation62_spill] sm:$0xff] %v6876_v21  ;;  %v6887_v58 = vld [vmem:[%s7676_s5 + $0x208] sm:$0xff]  }
 0x284   :  { %v1986_v60 = vmul.f32 %v7940_v24, %v1672_v2  ;;  %v1718_v18 = vmul.f32 %v7941_v22, %v1673_v61  ;;  %v1786_v31 = vmul.f32 %v7942_v43, %v1673_v61  ;;  %v1999_v27 = vadd.f32 %v1998_v19, %v1985_v42  ;;  %v4438_v42 = vpop.f32.mrb[74].mxu0  ;;  %7948 = vst [vmem:[#allocation63_spill] sm:$0xff] %v6887_v58 }
 0x285   :  { %v7945_v2 = vunpack.c.h.bf16 %v6147_v10  ;;  %v7946_v12 = vunpack.c.l.bf16 %v6240_v0  ;;  %v7947_v41 = vunpack.c.h.bf16 %v6157_v17  ;;  %v1731_v19 = vadd.f32 %v1730_v32, %v1717_v30  ;;  %v6889_v24 = vpop.f32.mrb[75].mxu0  ;;  %v6894_v10 = vld [vmem:[%s7676_s5 + $0x2b8] sm:$0xff]   ;;  %v6899_v17 = vld [vmem:[%s7676_s5 + $0x370] sm:$0xff]   ;;  %v6955_v42 = vld [vmem:[%s7676_s5 + $0x164] sm:$0x3] }
 0x286   :  { %v1799_v47 = vadd.f32 %v1798_v46, %v1785_v51  ;;  %v1866_v54 = vadd.f32 %v1865_v57, %v1852_v28  ;;  %v1933_v50 = vadd.f32 %v1932_v29, %v1919_v48  ;;  %v2000_v36 = vadd.f32 %v1999_v27, %v1986_v60  ;;  %7949 = vst [vmem:[#allocation64_spill] sm:$0xff] %v6894_v10  ;;  %v6904_v30 = vld [vmem:[%s7676_s5 + $0x98] sm:$0xff]   ;;  %v6914_v28 = vld [vmem:[%s7676_s5 + $0x200] sm:$0xff]   ;;  %v6919_v48 = vld [vmem:[%s7676_s5 + $0x368] sm:$0xff]  }
 0x287   :  { %v1853_v3 = vmul.f32 %v7945_v2, %v1673_v61  ;;  %v1920_v20 = vmul.f32 %v7946_v12, %v1673_v61  ;;  %v1987_v44 = vmul.f32 %v7947_v41, %v1673_v61  ;;  %7950 = vst [vmem:[#allocation65_spill] sm:$0xff] %v6899_v17  ;;  %7951 = vst [vmem:[#allocation66_spill] sm:$0xff] %v6904_v30  ;;  %v6932_v46 = vld [vmem:[%s7676_s5 + $0x158] sm:$0xff]   ;;  %v6937_v57 = vld [vmem:[%s7676_s5 + $0x2c0] sm:$0xff]  }
 0x288   :  { %v6906_v61 = vadd.f32 %v1731_v19, %v1718_v18  ;;  %7952 = vst [vmem:[#allocation67_spill] sm:$0xff] %v6914_v28  ;;  %7953 = vst [vmem:[#allocation68_spill] sm:$0xff] %v6919_v48  ;;  %v6921_v22 = vadd.f32 %v1799_v47, %v1786_v31  ;;  %v6950_v19 = vld [vmem:[%s7676_s5 + $0xb0] sm:$0x3]  ;;  %v6960_v47 = vld [vmem:[%s7676_s5 + $0x218] sm:$0x3] }
 0x289   :  { %v6923_v18 = vadd.f32 %v1866_v54, %v1853_v3  ;;  %v6925_v43 = vadd.f32 %v1933_v50, %v1920_v20  ;;  %v6927_v32 = vadd.f32 %v2000_v36, %v1987_v44  ;;  %7954 = vst [vmem:[#allocation69_spill] sm:$0xff] %v6932_v46  ;;  %7955 = vst [vmem:[#allocation70_spill] sm:$0xff] %v6937_v57  ;;  %v6962_v54 = vpop.f32.mrb[76].mxu0  ;;  %v6971_v20 = vld [vmem:[%s7676_s5 + $0x2cc] sm:$0x3]  ;;  %v6992_v27 = vld [vmem:[%s7676_s5 + $0x210] sm:$0xff]   ;;  %v7967_v50 = vunpack.c.l.bf16 %v6268_v55 }
 0x28a   :  { %7956 = vst [vmem:[#allocation71_spill] sm:$0xff] %v6950_v19  ;;  %7957 = vst [vmem:[#allocation72_spill] sm:$0xff] %v6955_v42  ;;  %v6976_v12 = vld [vmem:[%s7676_s5 + $0x380] sm:$0x3]  ;;  %v6978_v3 = vpop.f32.mrb[77].mxu0  ;;  %v6987_v2 = vld [vmem:[%s7676_s5 + $0xa8] sm:$0xff]   ;;  %v7968_v36 = vunpack.c.l.bf16 %v6273_v4 }
 0x28b   :  { %7958 = vst [vmem:[#allocation73_spill] sm:$0xff] %v6960_v47  ;;  %7959 = vst [vmem:[#allocation74_spill] sm:$0xff] %v6971_v20  ;;  %v4469_v31 = vpop.f32.mrb[72].mxu1  ;;  %v6994_v51 = vpop.f32.mrb[78].mxu0  ;;  %v7003_v60 = vld [vmem:[%s7676_s5 + $0x378] sm:$0xff]  }
 0x28c   :  { %7960 = vst [vmem:[#allocation75_spill] sm:$0xff] %v6976_v12  ;;  %7961 = vst [vmem:[#allocation76_spill] sm:$0xff] %v6987_v2  ;;  %v1654_v29 = vmax.f32 %v6864_v45, %v4469_v31  ;;  %v1626_v28 = vpop.f32.mrb[73].mxu1  ;;  %v7006_v30 = vpop.f32.mrb[79].mxu0  ;;  %v7014_v41 = vld [vmem:[%s7676_s5 + $0x160] ss:$360 sps:$4 sm:$0xff]   ;;  %v7965_v45 = vunpack.c.l.bf16 %v6252_v53  ;;  %v7972_v53 = vunpack.c.l.bf16 %v6292_v62 }
 0x28d   :  { %7962 = vst [vmem:[#allocation77_spill] sm:$0xff] %v6992_v27  ;;  %7963 = vst [vmem:[#allocation78_spill] sm:$0xff] %v7003_v60  ;;  %v1652_v44 = vmax.f32 %v6866_v14, %v1626_v28  ;;  %v4470_v42 = vpop.f32.mrb[74].mxu1 }
 0x28e   :  { %7964 = vst [vmem:[#allocation79_spill] sm:$0xff] %v7014_v41  ;;  %v1676_v17 = vadd.f32 %v6121_v33, %v1654_v29  ;;  %v1629_v47 = vpop.f32.mrb[75].mxu1  ;;  %v7966_v29 = vunpack.c.l.bf16 %v6263_v16  ;;  %v7971_v42 = vunpack.c.h.bf16 %v6235_v11 }
 0x28f   :  { %v1674_v20 = vadd.f32 %v6121_v33, %v1652_v44  ;;  %v1653_v14 = vmax.f32 %v6889_v24, %v1629_v47  ;;  %v7969_v44 = vunpack.c.l.bf16 %v6282_v35  ;;  %v7970_v24 = vunpack.c.l.bf16 %v6287_v56 }
 0x290   :  { %v1721_v31 = vmul.f32 %v7965_v45, %v1676_v17  ;;  %v1789_v19 = vmul.f32 %v7966_v29, %v1676_v17  ;;  %v1856_v57 = vmul.f32 %v7967_v50, %v1676_v17  ;;  %v1923_v12 = vmul.f32 %v7968_v36, %v1676_v17 }
 0x291   :  { %v1990_v2 = vmul.f32 %v7969_v44, %v1676_v17  ;;  %v1719_v47 = vmul.f32 %v7970_v24, %v1674_v20  ;;  %v1787_v28 = vmul.f32 %v7971_v42, %v1674_v20  ;;  %v1854_v45 = vmul.f32 %v7972_v53, %v1674_v20  ;;  %v7044_v16 = vpop.f32.mrb[80].mxu0 }
 0x292   :  { %v1736_v55 = vsel %vm1735_vm3, %v1721_v31, 0.0  ;;  %v1803_v50 = vsel %vm1735_vm3, %v1789_v19, 0.0  ;;  %v7048_v4 = vpop.f32.mrb[81].mxu0  ;;  %v7973_v29 = vunpack.c.h.bf16 %v6240_v0  ;;  %v1870_v19 = vsel %vm1735_vm3, %v1856_v57, 0.0 }
 0x293   :  { %v1733_v36 = vadd.f32 %v6906_v61, %v1719_v47  ;;  %v1801_v11 = vadd.f32 %v6921_v22, %v1787_v28  ;;  %v1868_v42 = vadd.f32 %v6923_v18, %v1854_v45  ;;  %v4521_v24 = vpop.f32.mrb[76].mxu1  ;;  %v7057_v53 = vpop.f32.mrb[82].mxu0  ;;  %v7974_v31 = vunpack.c.l.bf16 %v6301_v49  ;;  %v7067_v61 = vld [vmem:[%s7677_s4 + $0x1] ss:$0 sm:$0xff] }
 0x294   :  { %v1921_v44 = vmul.f32 %v7973_v29, %v1674_v20  ;;  %v1675_v35 = vadd.f32 %v6121_v33, %v1653_v14  ;;  %v2271_v17 = vmax.f32 %v6962_v54, %v4521_v24  ;;  %v2207_v22 = vpop.f32.mrb[77].mxu1  ;;  %v7069_v0 = vpop.f32.mrb[83].mxu0  ;;  %v7072_v18 = vsel %vm1735_vm3, %v1923_v12, 0.0 }
 0x295   :  { %v1988_v27 = vmul.f32 %v7974_v31, %v1674_v20  ;;  %7975 = vst [vmem:[#allocation80_spill] sm:$0xff] %v7072_v18  ;;  %v2269_v28 = vmax.f32 %v6978_v3, %v2207_v22  ;;  %v4522_v20 = vpop.f32.mrb[78].mxu1  ;;  %v7077_v33 = vsel %vm1735_vm3, %v1990_v2, 0.0  ;;  %v7977_v14 = vunpack.c.h.bf16 %v6287_v56  ;;  %v8000_v18 = vld [vmem:[#allocation11_spill] sm:$0xff] }
 0x296   :  { %v1935_v57 = vadd.f32 %v6925_v43, %v1921_v44  ;;  %7976 = vst [vmem:[#allocation81_spill] sm:$0xff] %v7077_v33  ;;  %v7978_v45 = vunpack.c.l.bf16 %v6306_v38  ;;  %v7979_v24 = vunpack.c.h.bf16 %v6292_v62  ;;  %v2210_v31 = vpop.f32.mrb[79].mxu1  ;;  %v7980_v43 = vunpack.c.h.bf16 %v6306_v38 }
 0x297   :  { %v2002_v54 = vadd.f32 %v6927_v32, %v1988_v27  ;;  %v1720_v47 = vmul.f32 %v7977_v14, %v1675_v35  ;;  %v7981_v3 = vunpack.c.h.bf16 %v6301_v49  ;;  %v2294_v2 = vadd.f32 %v7067_v61, %v2271_v17 }
 0x298   :  { %v1788_v29 = vmul.f32 %v7978_v45, %v1675_v35  ;;  %v1855_v12 = vmul.f32 %v7979_v24, %v1675_v35  ;;  %v1922_v44 = vmul.f32 %v7980_v43, %v1675_v35  ;;  %v2292_v32 = vadd.f32 %v7067_v61, %v2269_v28  ;;  %v7984_v24 = vld [vmem:[#allocation4_spill] sm:$0xff]  ;;  %v7986_v43 = vld [vmem:[#allocation5_spill] sm:$0xff] }
 0x299   :  { %v1989_v22 = vmul.f32 %v7981_v3, %v1675_v35  ;;  %v1734_v27 = vadd.f32 %v1733_v36, %v1720_v47  ;;  %v2272_v33 = vmax.f32 %v6994_v51, %v4522_v20  ;;  %v7985_v41 = vunpack.c.h.bf16 %v7984_v24  ;;  %v7105_v17 = vpop.f32.mrb[84].mxu0  ;;  %v7995_v3 = vld [vmem:[#allocation9_spill] sm:$0xff] }
 0x29a   :  { %v1802_v56 = vadd.f32 %v1801_v11, %v1788_v29  ;;  %v1869_v14 = vadd.f32 %v1868_v42, %v1855_v12  ;;  %v7093_v45 = vadd.f32 %v1935_v57, %v1922_v44  ;;  %v7987_v49 = vunpack.c.l.bf16 %v7986_v43  ;;  %v7989_v42 = vld [vmem:[#allocation6_spill] sm:$0xff]  ;;  %v7111_v20 = vpop.f32.mrb[85].mxu0 }
 0x29b   :  { %v7095_v62 = vadd.f32 %v2002_v54, %v1989_v22  ;;  %v7099_v38 = vmul.f32 %v7985_v41, %v2294_v2  ;;  %v1737_v28 = vadd.f32 %v1736_v55, %v1734_v27  ;;  %v7990_v51 = vunpack.c.h.bf16 %v7989_v42  ;;  %v7991_v54 = vld [vmem:[#allocation7_spill] sm:$0xff]  ;;  %v7993_v41 = vld [vmem:[#allocation8_spill] sm:$0xff] }
 0x29c   :  { %7982 = vst [vmem:[#allocation82_spill] sm:$0xff] %v7093_v45  ;;  %v7103_v35 = vmul.f32 %v7987_v49, %v2294_v2  ;;  %v1804_v36 = vadd.f32 %v1803_v50, %v1802_v56  ;;  %v7107_v11 = vadd.f32 %v1870_v19, %v1869_v14  ;;  %v7992_v47 = vunpack.c.l.bf16 %v7991_v54  ;;  %v4525_v50 = vpop.f32.mrb[80].mxu1  ;;  %v7121_v19 = vpop.f32.mrb[86].mxu0 }
 0x29d   :  { %7983 = vst [vmem:[#allocation83_spill] sm:$0xff] %v7095_v62  ;;  %v2476_v57 = vmul.f32 %v7990_v51, %v2294_v2  ;;  %v7994_v12 = vunpack.c.h.bf16 %v7993_v41  ;;  %v7996_v22 = vunpack.c.l.bf16 %v7995_v3  ;;  %v7997_v62 = vld [vmem:[#allocation10_spill] sm:$0xff]  ;;  %v1738_v27 = vrot.slane %v1737_v28, 4  ;;  %v7127_v46 = vpop.f32.mrb[87].mxu0 }
 0x29e   :  { %7988 = vst [vmem:[#allocation4_spill] sm:$0xff] %v7107_v11  ;;  %v2544_v29 = vmul.f32 %v7992_v47, %v2294_v2  ;;  %v7998_v60 = vunpack.c.l.bf16 %v7997_v62  ;;  %v1805_v56 = vrot.slane %v1804_v36, 4  ;;  %v7999_v14 = vunpack.c.h.bf16 %v7995_v3  ;;  %v2223_v11 = vpop.f32.mrb[81].mxu1 }
 0x29f   :  { %v2612_v44 = vmul.f32 %v7994_v12, %v2294_v2  ;;  %v2338_v49 = vmul.f32 %v7996_v22, %v2292_v32  ;;  %v8001_v45 = vunpack.c.l.bf16 %v8000_v18  ;;  %v8002_v2 = vld [vmem:[#allocation12_spill] sm:$0xff]  ;;  %v2295_v48 = vadd.f32 %v7067_v61, %v2272_v33  ;;  %v4526_v58 = vpop.f32.mrb[82].mxu1 }
 0x2a0   :  { %v2406_v55 = vmul.f32 %v7998_v60, %v2292_v32  ;;  %v2474_v51 = vmul.f32 %v7999_v14, %v2292_v32  ;;  %v8003_v12 = vunpack.c.l.bf16 %v8002_v2  ;;  %v2270_v60 = vmax.f32 %v7006_v30, %v2210_v31  ;;  %v7136_v14 = vpop.f32.mrb[83].mxu1  ;;  %v8008_v30 = vld [vmem:[#allocation14_spill] sm:$0xff] }
 0x2a1   :  { %v2542_v47 = vmul.f32 %v8001_v45, %v2292_v32  ;;  %v2275_v10 = vmax.f32 %v7044_v16, %v4525_v50  ;;  %v2273_v21 = vmax.f32 %v7048_v4, %v2223_v11  ;;  %v2276_v3 = vmax.f32 %v7057_v53, %v4526_v58  ;;  %v8011_v11 = vld [vmem:[#allocation15_spill] sm:$0xff] }
 0x2a2   :  { %v2610_v22 = vmul.f32 %v8003_v12, %v2292_v32  ;;  %v7138_v45 = vadd.f32 %v1738_v27, %v1737_v28  ;;  %v7140_v8 = vadd.f32 %v1805_v56, %v1804_v36  ;;  %v8006_v2 = vunpack.c.l.bf16 %v8005_v34 }
 0x2a3   :  { %v8007_v33 = vunpack.c.h.bf16 %v7986_v43  ;;  %v8009_v31 = vunpack.c.l.bf16 %v8008_v30  ;;  %v8010_v50 = vunpack.c.h.bf16 %v7991_v54  ;;  %v8012_v58 = vunpack.c.l.bf16 %v8011_v11 }
 0x2a4   :  { %8004 = vst [vmem:[#allocation5_spill] sm:$0xff] %v7140_v8  ;;  %v2341_v32 = vmul.f32 %v8006_v2, %v2295_v48  ;;  %v2293_v28 = vadd.f32 %v7067_v61, %v2270_v60  ;;  %v2298_v36 = vadd.f32 %v7067_v61, %v2275_v10  ;;  %v2296_v27 = vadd.f32 %v7067_v61, %v2273_v21  ;;  %v7158_v2 = vpop.f32.mrb[88].mxu0 }
 0x2a5   :  { %v2409_v12 = vmul.f32 %v8007_v33, %v2295_v48  ;;  %v2477_v16 = vmul.f32 %v8009_v31, %v2295_v48  ;;  %v2545_v4 = vmul.f32 %v8010_v50, %v2295_v48  ;;  %v2613_v53 = vmul.f32 %v8012_v58, %v2295_v48  ;;  %v7170_v15 = vpop.f32.mrb[89].mxu0  ;;  %v8018_v33 = vld [vmem:[#allocation16_spill] sm:$0xff] }
 0x2a6   :  { %v2299_v56 = vadd.f32 %v7067_v61, %v2276_v3  ;;  %v2274_v43 = vmax.f32 %v7069_v0, %v7136_v14  ;;  %v8013_v31 = vunpack.c.l.bf16 %v7984_v24  ;;  %v8014_v60 = vunpack.c.h.bf16 %v7997_v62  ;;  %v8020_v24 = vld [vmem:[#allocation17_spill] sm:$0xff]  ;;  %v8022_v62 = vld [vmem:[#allocation18_spill] sm:$0xff] }
 0x2a7   :  { %v8015_v10 = vunpack.c.l.bf16 %v7989_v42  ;;  %v8016_v3 = vunpack.c.h.bf16 %v8000_v18  ;;  %v8017_v0 = vunpack.c.l.bf16 %v7993_v41  ;;  %v8019_v9 = vunpack.c.h.bf16 %v8018_v33  ;;  %v4502_v18 = vpop.f32.mrb[90].mxu0 }
 0x2a8   :  { %v2339_v48 = vmul.f32 %v8013_v31, %v2293_v28  ;;  %v2407_v50 = vmul.f32 %v8014_v60, %v2293_v28  ;;  %v8021_v31 = vunpack.c.l.bf16 %v8020_v24  ;;  %v8023_v60 = vunpack.c.h.bf16 %v8022_v62 }
 0x2a9   :  { %v2475_v21 = vmul.f32 %v8015_v10, %v2293_v28  ;;  %v2543_v58 = vmul.f32 %v8016_v3, %v2293_v28  ;;  %v2611_v14 = vmul.f32 %v8017_v0, %v2293_v28  ;;  %v7176_v54 = vmul.f32 %v8019_v9, %v2298_v36  ;;  %v4529_v10 = vpop.f32.mrb[84].mxu1  ;;  %v7186_v28 = vpop.f32.mrb[91].mxu0  ;;  %v8025_v9 = vld [vmem:[#allocation19_spill] sm:$0xff] }
 0x2aa   :  { %v7180_v8 = vmul.f32 %v8021_v31, %v2298_v36  ;;  %v7184_v42 = vmul.f32 %v8023_v60, %v2298_v36  ;;  %v2353_v3 = vadd.f32 %v2339_v48, %v2338_v49  ;;  %v2421_v7 = vadd.f32 %v2407_v50, %v2406_v55  ;;  %v2239_v41 = vpop.f32.mrb[85].mxu1  ;;  %8024 = vst [vmem:[#allocation6_spill] sm:$0xff] %v7186_v28  ;;  %v8027_v31 = vld [vmem:[#allocation20_spill] sm:$0xff]  ;;  %v8030_v50 = vld [vmem:[#allocation21_spill] sm:$0xff] }
 0x2ab   :  { %v2489_v63 = vadd.f32 %v2475_v21, %v2474_v51  ;;  %v2557_v40 = vadd.f32 %v2543_v58, %v2542_v47  ;;  %v2625_v0 = vadd.f32 %v2611_v14, %v2610_v22  ;;  %v8026_v1 = vunpack.c.l.bf16 %v8025_v9  ;;  %v4530_v18 = vpop.f32.mrb[86].mxu1 }
 0x2ac   :  { %v8028_v59 = vunpack.c.h.bf16 %v8027_v31  ;;  %v8029_v60 = vunpack.c.h.bf16 %v8005_v34  ;;  %v2354_v49 = vadd.f32 %v2353_v3, %v7099_v38  ;;  %v2422_v55 = vadd.f32 %v2421_v7, %v7103_v35  ;;  %v7200_v48 = vpop.f32.mrb[87].mxu1  ;;  %v8036_v35 = vld [vmem:[#allocation23_spill] sm:$0xff] }
 0x2ad   :  { %v7190_v23 = vmul.f32 %v8026_v1, %v2298_v36  ;;  %v2490_v51 = vadd.f32 %v2489_v63, %v2476_v57  ;;  %v2558_v47 = vadd.f32 %v2557_v40, %v2544_v29  ;;  %v2626_v22 = vadd.f32 %v2625_v0, %v2612_v44  ;;  %v7214_v0 = vpop.f32.mrb[92].mxu0 }
 0x2ae   :  { %v7194_v26 = vmul.f32 %v8028_v59, %v2298_v36  ;;  %v2342_v25 = vmul.f32 %v8029_v60, %v2296_v27  ;;  %v8031_v1 = vunpack.c.l.bf16 %v8030_v50  ;;  %v8032_v58 = vunpack.c.h.bf16 %v8008_v30  ;;  %v8033_v36 = vld [vmem:[#allocation22_spill] sm:$0xff] }
 0x2af   :  { %v8034_v14 = vunpack.c.l.bf16 %v8033_v36  ;;  %v2355_v60 = vadd.f32 %v2354_v49, %v2341_v32  ;;  %v2423_v28 = vadd.f32 %v2422_v55, %v2409_v12  ;;  %v2491_v39 = vadd.f32 %v2490_v51, %v2477_v16  ;;  %v7216_v32 = vpop.f32.mrb[93].mxu0  ;;  %v8039_v16 = vld [vmem:[#allocation24_spill] sm:$0xff]  ;;  %v8042_v49 = vld [vmem:[#allocation25_spill] sm:$0xff] }
 0x2b0   :  { %v2410_v21 = vmul.f32 %v8031_v1, %v2296_v27  ;;  %v2478_v59 = vmul.f32 %v8032_v58, %v2296_v27  ;;  %v2559_v38 = vadd.f32 %v2558_v47, %v2545_v4  ;;  %v8035_v7 = vunpack.c.h.bf16 %v8011_v11  ;;  %v7226_v47 = vpop.f32.mrb[94].mxu0 }
 0x2b1   :  { %v2546_v34 = vmul.f32 %v8034_v14, %v2296_v27  ;;  %v2627_v40 = vadd.f32 %v2626_v22, %v2613_v53  ;;  %v8037_v57 = vunpack.c.l.bf16 %v8036_v35  ;;  %v8038_v44 = vunpack.c.h.bf16 %v8020_v24  ;;  %v7224_v24 = vpop.f32.mrb[88].mxu1 }
 0x2b2   :  { %v2614_v63 = vmul.f32 %v8035_v7, %v2296_v27  ;;  %v2356_v30 = vadd.f32 %v2355_v60, %v2342_v25  ;;  %v2424_v1 = vadd.f32 %v2423_v28, %v2410_v21  ;;  %v2492_v58 = vadd.f32 %v2491_v39, %v2478_v59  ;;  %v2255_v21 = vpop.f32.mrb[89].mxu1  ;;  %v7232_v59 = vpop.f32.mrb[95].mxu0 }
 0x2b3   :  { %v2345_v29 = vmul.f32 %v8037_v57, %v2299_v56  ;;  %v2413_v3 = vmul.f32 %v8038_v44, %v2299_v56  ;;  %v2560_v14 = vadd.f32 %v2559_v38, %v2546_v34  ;;  %v8040_v4 = vunpack.c.l.bf16 %v8039_v16  ;;  %v4534_v60 = vpop.f32.mrb[90].mxu1 }
 0x2b4   :  { %v2628_v12 = vadd.f32 %v2627_v40, %v2614_v63  ;;  %v8041_v53 = vunpack.c.h.bf16 %v8025_v9  ;;  %v8043_v55 = vunpack.c.l.bf16 %v8042_v49  ;;  %v2297_v25 = vadd.f32 %v7067_v61, %v2274_v43  ;;  %v7252_v38 = vpop.f32.mrb[91].mxu1 }
 0x2b5   :  { %v2481_v11 = vmul.f32 %v8040_v4, %v2299_v56  ;;  %v2279_v39 = vmax.f32 %v7105_v17, %v4529_v10  ;;  %v2277_v28 = vmax.f32 %v7111_v20, %v2239_v41  ;;  %v2280_v22 = vmax.f32 %v7121_v19, %v4530_v18 }
 0x2b6   :  { %v2549_v27 = vmul.f32 %v8041_v53, %v2299_v56  ;;  %v2617_v51 = vmul.f32 %v8043_v55, %v2299_v56  ;;  %v2278_v9 = vmax.f32 %v7127_v46, %v7200_v48  ;;  %v2283_v56 = vmax.f32 %v7158_v2, %v7224_v24 }
 0x2b7   :  { %v2281_v34 = vmax.f32 %v7170_v15, %v2255_v21  ;;  %v8044_v43 = vrot.slane %v7138_v45, 2  ;;  %v8045_v20 = vunpack.c.l.bf16 %v8018_v33  ;;  %v8046_v10 = vunpack.c.h.bf16 %v8030_v50 }
 0x2b8   :  { %v8047_v18 = vunpack.c.l.bf16 %v8022_v62  ;;  %v8048_v48 = vunpack.c.h.bf16 %v8033_v36  ;;  %v8049_v15 = vunpack.c.l.bf16 %v8027_v31  ;;  %v2300_v63 = vadd.f32 %v7067_v61, %v2277_v28 }
 0x2b9   :  { %v7242_v17 = vadd.f32 %v8044_v43, %v7138_v45  ;;  %v2343_v19 = vmul.f32 %v8045_v20, %v2297_v25  ;;  %v2411_v41 = vmul.f32 %v8046_v10, %v2297_v25  ;;  %v2302_v45 = vadd.f32 %v7067_v61, %v2279_v39 }
 0x2ba   :  { %v2479_v46 = vmul.f32 %v8047_v18, %v2297_v25  ;;  %v2547_v2 = vmul.f32 %v8048_v48, %v2297_v25  ;;  %v2615_v7 = vmul.f32 %v8049_v15, %v2297_v25  ;;  %v2303_v33 = vadd.f32 %v7067_v61, %v2280_v22  ;;  %v7271_v25 = vpop.f32.mrb[96].mxu0  ;;  %v8059_v15 = vld [vmem:[#allocation27_spill] sm:$0xff] }
 0x2bb   :  { %v2357_v40 = vadd.f32 %v2356_v30, %v2343_v19  ;;  %v2425_v50 = vadd.f32 %v2424_v1, %v2411_v41  ;;  %v8050_v4 = vunpack.c.h.bf16 %v6473_v6  ;;  %v8051_v53 = vunpack.c.l.bf16 %v6478_v37  ;;  %v8056_v19 = vld [vmem:[#allocation26_spill] sm:$0xff] }
 0x2bc   :  { %v2493_v57 = vadd.f32 %v2492_v58, %v2479_v46  ;;  %v2561_v44 = vadd.f32 %v2560_v14, %v2547_v2  ;;  %v2629_v62 = vadd.f32 %v2628_v12, %v2615_v7  ;;  %v8052_v31 = vunpack.c.h.bf16 %v6487_v52  ;;  %v7277_v12 = vpop.f32.mrb[97].mxu0 }
 0x2bd   :  { %v7261_v36 = vmul.f32 %v8050_v4, %v2302_v45  ;;  %v7265_v55 = vmul.f32 %v8051_v53, %v2302_v45  ;;  %v2358_v30 = vadd.f32 %v2357_v40, %v7176_v54  ;;  %v2426_v1 = vadd.f32 %v2425_v50, %v7180_v8  ;;  %v7286_v54 = vpop.f32.mrb[92].mxu1  ;;  %v7288_v8 = vpop.f32.mrb[98].mxu0 }
 0x2be   :  { %v7269_v24 = vmul.f32 %v8052_v31, %v2302_v45  ;;  %v2494_v58 = vadd.f32 %v2493_v57, %v7184_v42  ;;  %v2562_v14 = vadd.f32 %v2561_v44, %v7190_v23  ;;  %v2630_v39 = vadd.f32 %v2629_v62, %v7194_v26  ;;  %v7294_v46 = vpop.f32.mrb[93].mxu1  ;;  %v7296_v48 = vpop.f32.mrb[99].mxu0  ;;  %v8062_v62 = vld [vmem:[#allocation28_spill] sm:$0xff] }
 0x2bf   :  { %v8053_v28 = vunpack.c.l.bf16 %v6492_v13  ;;  %v8054_v21 = vunpack.c.h.bf16 %v6500_v5  ;;  %v8055_v43 = vunpack.c.h.bf16 %v8036_v35  ;;  %v2359_v42 = vadd.f32 %v2358_v30, %v2345_v29  ;;  %v7302_v29 = vpop.f32.mrb[94].mxu1 }
 0x2c0   :  { %v8057_v23 = vunpack.c.l.bf16 %v8056_v19  ;;  %v2427_v41 = vadd.f32 %v2426_v1, %v2413_v3  ;;  %v8058_v26 = vunpack.c.h.bf16 %v8039_v16  ;;  %v2495_v2 = vadd.f32 %v2494_v58, %v2481_v11  ;;  %v7306_v53 = vpop.f32.mrb[95].mxu1  ;;  %v8065_v58 = vld [vmem:[#allocation29_spill] sm:$0xff] }
 0x2c1   :  { %v2552_v22 = vmul.f32 %v8053_v28, %v2302_v45  ;;  %v2620_v60 = vmul.f32 %v8054_v21, %v2302_v45  ;;  %v2346_v20 = vmul.f32 %v8055_v43, %v2300_v63  ;;  %v8060_v35 = vunpack.c.l.bf16 %v8059_v15  ;;  %v8068_v21 = vld [vmem:[#allocation30_spill] sm:$0xff] }
 0x2c2   :  { %v2414_v10 = vmul.f32 %v8057_v23, %v2300_v63  ;;  %v2482_v18 = vmul.f32 %v8058_v26, %v2300_v63  ;;  %v2563_v45 = vadd.f32 %v2562_v14, %v2549_v27  ;;  %v8061_v40 = vunpack.c.h.bf16 %v8042_v49  ;;  %v8070_v23 = vld [vmem:[#allocation6_spill] sm:$0xff] }
 0x2c3   :  { %v2550_v7 = vmul.f32 %v8060_v35, %v2300_v63  ;;  %v2360_v57 = vadd.f32 %v2359_v42, %v2346_v20  ;;  %v2631_v3 = vadd.f32 %v2630_v39, %v2617_v51  ;;  %v8063_v16 = vunpack.c.l.bf16 %v8062_v62 }
 0x2c4   :  { %v2618_v50 = vmul.f32 %v8061_v40, %v2300_v63  ;;  %v2428_v44 = vadd.f32 %v2427_v41, %v2414_v10  ;;  %v2496_v31 = vadd.f32 %v2495_v2, %v2482_v18  ;;  %v8064_v11 = vunpack.c.h.bf16 %v6478_v37  ;;  %v7323_v41 = vpop.f32.mrb[100].mxu0  ;;  %v8078_v40 = vld [vmem:[#allocation32_spill] sm:$0xff] }
 0x2c5   :  { %v2349_v4 = vmul.f32 %v8063_v16, %v2303_v33  ;;  %v2564_v30 = vadd.f32 %v2563_v45, %v2550_v7  ;;  %v8066_v27 = vunpack.c.l.bf16 %v8065_v58  ;;  %v8067_v63 = vunpack.c.h.bf16 %v6492_v13  ;;  %v7333_v35 = vpop.f32.mrb[101].mxu0 }
 0x2c6   :  { %v2417_v1 = vmul.f32 %v8064_v11, %v2303_v33  ;;  %v2632_v49 = vadd.f32 %v2631_v3, %v2618_v50  ;;  %v8069_v43 = vunpack.c.l.bf16 %v8068_v21  ;;  %v2301_v39 = vadd.f32 %v7067_v61, %v2278_v9  ;;  %v8080_v3 = vld [vmem:[#allocation33_spill] sm:$0xff]  ;;  %v7343_v11 = vpop.f32.mrb[96].mxu1 }
 0x2c7   :  { %v2485_v14 = vmul.f32 %v8066_v27, %v2303_v33  ;;  %v2553_v28 = vmul.f32 %v8067_v63, %v2303_v33  ;;  %v2306_v20 = vadd.f32 %v7067_v61, %v2283_v56  ;;  %v2304_v42 = vadd.f32 %v7067_v61, %v2281_v34 }
 0x2c8   :  { %v2621_v51 = vmul.f32 %v8069_v43, %v2303_v33  ;;  %v2282_v37 = vmax.f32 %v8070_v23, %v7252_v38  ;;  %v2906_v10 = vmax.f32 %v7214_v0, %v7286_v54  ;;  %v8071_v13 = vunpack.c.l.bf16 %v6473_v6  ;;  %v8076_v0 = vld [vmem:[#allocation31_spill] sm:$0xff]  ;;  %v7347_v23 = vpop.f32.mrb[97].mxu1 }
 0x2c9   :  { %v8072_v18 = vunpack.c.h.bf16 %v8056_v19  ;;  %v8073_v9 = vunpack.c.l.bf16 %v6487_v52  ;;  %v8074_v56 = vunpack.c.h.bf16 %v8059_v15  ;;  %v8075_v38 = vunpack.c.l.bf16 %v6500_v5  ;;  %v7345_v52 = vpop.f32.mrb[102].mxu0 }
 0x2ca   :  { %v2347_v26 = vmul.f32 %v8071_v13, %v2301_v39  ;;  %v8077_v54 = vunpack.c.l.bf16 %v8076_v0  ;;  %v8079_v6 = vunpack.c.l.bf16 %v8078_v40  ;;  %v8081_v19 = vunpack.c.l.bf16 %v8080_v3  ;;  %v7349_v5 = vpop.f32.mrb[103].mxu0 }
 0x2cb   :  { %v2415_v33 = vmul.f32 %v8072_v18, %v2301_v39  ;;  %v2483_v2 = vmul.f32 %v8073_v9, %v2301_v39  ;;  %v2551_v34 = vmul.f32 %v8074_v56, %v2301_v39  ;;  %v2619_v7 = vmul.f32 %v8075_v38, %v2301_v39  ;;  %v7354_v56 = vpop.f32.mrb[98].mxu1 }
 0x2cc   :  { %v2352_v45 = vmul.f32 %v8077_v54, %v2306_v20  ;;  %v2420_v50 = vmul.f32 %v8079_v6, %v2306_v20  ;;  %v2488_v16 = vmul.f32 %v8081_v19, %v2306_v20  ;;  %v2361_v15 = vadd.f32 %v2360_v57, %v2347_v26  ;;  %v8092_v19 = vld [vmem:[#allocation37_spill] sm:$0xff] }
 0x2cd   :  { %v2429_v27 = vadd.f32 %v2428_v44, %v2415_v33  ;;  %v2497_v63 = vadd.f32 %v2496_v31, %v2483_v2  ;;  %v2565_v43 = vadd.f32 %v2564_v30, %v2551_v34  ;;  %v2633_v39 = vadd.f32 %v2632_v49, %v2619_v7  ;;  %v7359_v30 = vpop.f32.mrb[99].mxu1  ;;  %v8082_v33 = vld [vmem:[#allocation34_spill] sm:$0xff]  ;;  %v8084_v34 = vld [vmem:[#allocation35_spill] sm:$0xff] }
 0x2ce   :  { %v2366_v13 = vsel %vm1735_vm3, %v2352_v45, 0.0  ;;  %v2434_v18 = vsel %vm1735_vm3, %v2420_v50, 0.0  ;;  %v2502_v9 = vsel %vm1735_vm3, %v2488_v16, 0.0  ;;  %v2362_v38 = vadd.f32 %v2361_v15, %v7261_v36  ;;  %v8088_v36 = vld [vmem:[#allocation36_spill] sm:$0xff]  ;;  %v7383_v15 = vpop.f32.mrb[104].mxu0 }
 0x2cf   :  { %v2430_v57 = vadd.f32 %v2429_v27, %v7265_v55  ;;  %v2498_v44 = vadd.f32 %v2497_v63, %v7269_v24  ;;  %v2566_v31 = vadd.f32 %v2565_v43, %v2552_v22  ;;  %v2634_v26 = vadd.f32 %v2633_v39, %v2620_v60  ;;  %v7376_v60 = vld [vmem:[%s7677_s4 + $0x2] ss:$0 sm:$0xff]  ;;  %v7387_v39 = vpop.f32.mrb[105].mxu0 }
 0x2d0   :  { %v8083_v49 = vunpack.c.l.bf16 %v8082_v33  ;;  %v8085_v7 = vunpack.c.l.bf16 %v8084_v34  ;;  %v8087_v54 = vunpack.c.h.bf16 %v8062_v62  ;;  %v2363_v40 = vadd.f32 %v2362_v38, %v2349_v4 }
 0x2d1   :  { %v8089_v6 = vunpack.c.l.bf16 %v8088_v36  ;;  %v2431_v50 = vadd.f32 %v2430_v57, %v2417_v1  ;;  %v8090_v24 = vunpack.c.h.bf16 %v8065_v58  ;;  %v8093_v62 = vunpack.c.l.bf16 %v8092_v19 }
 0x2d2   :  { %v2556_v2 = vmul.f32 %v8083_v49, %v2306_v20  ;;  %v7365_v0 = vmul.f32 %v8085_v7, %v2306_v20  ;;  %v2350_v45 = vmul.f32 %v8087_v54, %v2304_v42  ;;  %v2499_v20 = vadd.f32 %v2498_v44, %v2485_v14  ;;  %v7391_v44 = vpop.f32.mrb[100].mxu1  ;;  %v4566_v49 = vpop.f32.mrb[106].mxu0 }
 0x2d3   :  { %v2418_v55 = vmul.f32 %v8089_v6, %v2304_v42  ;;  %v2486_v22 = vmul.f32 %v8090_v24, %v2304_v42  ;;  %v2554_v16 = vmul.f32 %v8093_v62, %v2304_v42  ;;  %v2567_v4 = vadd.f32 %v2566_v31, %v2553_v28 }
 0x2d4   :  { %8086 = vst [vmem:[#allocation7_spill] sm:$0xff] %v7365_v0  ;;  %v7379_v3 = vsel %vm1735_vm3, %v2556_v2, 0.0  ;;  %v2364_v27 = vadd.f32 %v2363_v40, %v2350_v45  ;;  %v8094_v58 = vunpack.c.h.bf16 %v8068_v21  ;;  %v2635_v43 = vadd.f32 %v2634_v26, %v2621_v51  ;;  %v7401_v26 = vpop.f32.mrb[107].mxu0  ;;  %v8102_v45 = vld [vmem:[#allocation40_spill] sm:$0xff] }
 0x2d5   :  { %8091 = vst [vmem:[#allocation8_spill] sm:$0xff] %v7379_v3  ;;  %v2432_v1 = vadd.f32 %v2431_v50, %v2418_v55  ;;  %v2500_v38 = vadd.f32 %v2499_v20, %v2486_v22  ;;  %v2568_v57 = vadd.f32 %v2567_v4, %v2554_v16  ;;  %v2305_v33 = vadd.f32 %v7067_v61, %v2282_v37  ;;  %v8095_v61 = vld [vmem:[#allocation38_spill] sm:$0xff]  ;;  %v8104_v55 = vld [vmem:[#allocation41_spill] sm:$0xff] }
 0x2d6   :  { %v2622_v63 = vmul.f32 %v8094_v58, %v2304_v42  ;;  %v2929_v14 = vadd.f32 %v7376_v60, %v2906_v10  ;;  %v2904_v31 = vmax.f32 %v7216_v32, %v7294_v46  ;;  %v2907_v21 = vmax.f32 %v7226_v47, %v7302_v29  ;;  %v7399_v42 = vpop.f32.mrb[101].mxu1  ;;  %v8100_v29 = vld [vmem:[#allocation39_spill] sm:$0xff]  ;;  %v8106_v22 = vld [vmem:[#allocation42_spill] sm:$0xff] }
 0x2d7   :  { %v2905_v51 = vmax.f32 %v7232_v59, %v7306_v53  ;;  %v8096_v37 = vunpack.c.l.bf16 %v8095_v61  ;;  %v8097_v2 = vunpack.c.h.bf16 %v8088_v36  ;;  %v8098_v7 = vunpack.c.h.bf16 %v8095_v61  ;;  %v7411_v47 = vpop.f32.mrb[102].mxu1  ;;  %v8111_v61 = vld [vmem:[#allocation44_spill] sm:$0xff] }
 0x2d8   :  { %v2636_v28 = vadd.f32 %v2635_v43, %v2622_v63  ;;  %v8099_v32 = vunpack.c.h.bf16 %v8092_v19  ;;  %v8101_v59 = vunpack.c.h.bf16 %v8100_v29  ;;  %v8103_v40 = vunpack.c.l.bf16 %v8102_v45  ;;  %v7421_v62 = vpop.f32.mrb[103].mxu1  ;;  %v8109_v43 = vld [vmem:[#allocation43_spill] sm:$0xff] }
 0x2d9   :  { %v2351_v10 = vmul.f32 %v8096_v37, %v2305_v33  ;;  %v2419_v34 = vmul.f32 %v8097_v2, %v2305_v33  ;;  %v2487_v54 = vmul.f32 %v8098_v7, %v2305_v33  ;;  %v8105_v50 = vunpack.c.h.bf16 %v8104_v55 }
 0x2da   :  { %v2555_v46 = vmul.f32 %v8099_v32, %v2305_v33  ;;  %v2623_v53 = vmul.f32 %v8101_v59, %v2305_v33  ;;  %v2975_v6 = vmul.f32 %v8103_v40, %v2929_v14  ;;  %v8107_v36 = vunpack.c.l.bf16 %v8106_v22 }
 0x2db   :  { %v3043_v24 = vmul.f32 %v8105_v50, %v2929_v14  ;;  %v2365_v16 = vadd.f32 %v2364_v27, %v2351_v10  ;;  %v2433_v4 = vadd.f32 %v2432_v1, %v2419_v34  ;;  %v2501_v19 = vadd.f32 %v2500_v38, %v2487_v54  ;;  %v8113_v1 = vld [vmem:[#allocation45_spill] sm:$0xff]  ;;  %v8116_v34 = vld [vmem:[#allocation46_spill] sm:$0xff] }
 0x2dc   :  { %v3111_v20 = vmul.f32 %v8107_v36, %v2929_v14  ;;  %v7423_v58 = vadd.f32 %v2568_v57, %v2555_v46  ;;  %v7425_v63 = vadd.f32 %v2636_v28, %v2623_v53  ;;  %v8110_v33 = vunpack.c.h.bf16 %v8109_v43 }
 0x2dd   :  { %v8112_v37 = vunpack.c.l.bf16 %v8111_v61  ;;  %v2927_v7 = vadd.f32 %v7376_v60, %v2904_v31  ;;  %v7432_v32 = vadd.f32 %v2366_v13, %v2365_v16  ;;  %v7434_v59 = vadd.f32 %v2434_v18, %v2433_v4  ;;  %v7453_v4 = vpop.f32.mrb[104].mxu1 }
 0x2de   :  { %8108 = vst [vmem:[#allocation9_spill] sm:$0xff] %v7425_v63  ;;  %v3179_v49 = vmul.f32 %v8110_v33, %v2929_v14  ;;  %v7436_v40 = vadd.f32 %v2502_v9, %v2501_v19  ;;  %v2930_v27 = vadd.f32 %v7376_v60, %v2907_v21  ;;  %v8114_v38 = vunpack.c.l.bf16 %v8113_v1  ;;  %v8120_v9 = vld [vmem:[#allocation48_spill] sm:$0xff]  ;;  %v7463_v13 = vpop.f32.mrb[105].mxu1 }
 0x2df   :  { %v3247_v2 = vmul.f32 %v8112_v37, %v2929_v14  ;;  %v8115_v28 = vunpack.c.l.bf16 %v8100_v29  ;;  %v8117_v54 = vunpack.c.l.bf16 %v8116_v34  ;;  %v8118_v14 = vld [vmem:[#allocation47_spill] sm:$0xff]  ;;  %v8121_v50 = vunpack.c.l.bf16 %v8120_v9  ;;  %v8123_v29 = vld [vmem:[#allocation49_spill] sm:$0xff] }
 0x2e0   :  { %v2973_v57 = vmul.f32 %v8114_v38, %v2927_v7  ;;  %v8119_v53 = vunpack.c.l.bf16 %v8118_v14  ;;  %v8122_v21 = vunpack.c.h.bf16 %v8102_v45  ;;  %v8124_v19 = vunpack.c.l.bf16 %v8123_v29 }
 0x2e1   :  { %v3041_v10 = vmul.f32 %v8115_v28, %v2927_v7  ;;  %v3109_v46 = vmul.f32 %v8117_v54, %v2927_v7  ;;  %v3245_v36 = vmul.f32 %v8121_v50, %v2927_v7  ;;  %v8125_v37 = vunpack.c.h.bf16 %v8106_v22  ;;  %v8126_v28 = vld [vmem:[#allocation50_spill] sm:$0xff] }
 0x2e2   :  { %v3177_v31 = vmul.f32 %v8119_v53, %v2927_v7  ;;  %v2976_v16 = vmul.f32 %v8122_v21, %v2930_v27  ;;  %v3044_v33 = vmul.f32 %v8124_v19, %v2930_v27  ;;  %v8127_v54 = vunpack.c.l.bf16 %v8126_v28  ;;  %v4598_v21 = vpop.f32.mrb[106].mxu1 }
 0x2e3   :  { %v3112_v38 = vmul.f32 %v8125_v37, %v2930_v27  ;;  %v8128_v53 = vunpack.c.h.bf16 %v8111_v61  ;;  %v2928_v7 = vadd.f32 %v7376_v60, %v2905_v51  ;;  %v2910_v45 = vmax.f32 %v7271_v25, %v7343_v11  ;;  %v7480_v25 = vpop.f32.mrb[107].mxu1  ;;  %v8134_v21 = vld [vmem:[#allocation51_spill] sm:$0xff] }
 0x2e4   :  { %v3180_v14 = vmul.f32 %v8127_v54, %v2930_v27  ;;  %v2908_v50 = vmax.f32 %v7277_v12, %v7347_v23  ;;  %v2911_v22 = vmax.f32 %v7288_v8, %v7354_v56  ;;  %v2909_v19 = vmax.f32 %v7296_v48, %v7359_v30 }
 0x2e5   :  { %v3248_v18 = vmul.f32 %v8128_v53, %v2930_v27  ;;  %v2914_v61 = vmax.f32 %v7323_v41, %v7391_v44  ;;  %v2912_v27 = vmax.f32 %v7333_v35, %v7399_v42  ;;  %v2915_v51 = vmax.f32 %v7345_v52, %v7411_v47 }
 0x2e6   :  { %v8129_v12 = vunpack.c.h.bf16 %v8113_v1  ;;  %v8130_v8 = vunpack.c.l.bf16 %v8104_v55  ;;  %v8131_v56 = vunpack.c.h.bf16 %v8116_v34  ;;  %v8132_v30 = vunpack.c.l.bf16 %v8109_v43 }
 0x2e7   :  { %v8133_v44 = vunpack.c.h.bf16 %v8120_v9  ;;  %v2933_v42 = vadd.f32 %v7376_v60, %v2910_v45  ;;  %v2931_v52 = vadd.f32 %v7376_v60, %v2908_v50  ;;  %v2934_v47 = vadd.f32 %v7376_v60, %v2911_v22  ;;  %v8140_v22 = vld [vmem:[#allocation54_spill] sm:$0xff] }
 0x2e8   :  { %v2974_v11 = vmul.f32 %v8129_v12, %v2928_v7  ;;  %v3042_v23 = vmul.f32 %v8130_v8, %v2928_v7  ;;  %v3110_v48 = vmul.f32 %v8131_v56, %v2928_v7  ;;  %v3178_v41 = vmul.f32 %v8132_v30, %v2928_v7  ;;  %v8136_v8 = vld [vmem:[#allocation52_spill] sm:$0xff]  ;;  %v8138_v30 = vld [vmem:[#allocation53_spill] sm:$0xff] }
 0x2e9   :  { %v3246_v35 = vmul.f32 %v8133_v44, %v2928_v7  ;;  %v8135_v34 = vunpack.c.l.bf16 %v8134_v21  ;;  %v8137_v43 = vunpack.c.h.bf16 %v8136_v8  ;;  %v8139_v9 = vunpack.c.l.bf16 %v8138_v30 }
 0x2ea   :  { %v2988_v1 = vadd.f32 %v2974_v11, %v2973_v57  ;;  %v3056_v37 = vadd.f32 %v3042_v23, %v3041_v10  ;;  %v3124_v54 = vadd.f32 %v3110_v48, %v3109_v46  ;;  %v3192_v55 = vadd.f32 %v3178_v41, %v3177_v31  ;;  %v8142_v46 = vld [vmem:[#allocation55_spill] sm:$0xff]  ;;  %v8144_v11 = vld [vmem:[#allocation56_spill] sm:$0xff] }
 0x2eb   :  { %v3260_v53 = vadd.f32 %v3246_v35, %v3245_v36  ;;  %v2979_v12 = vmul.f32 %v8135_v34, %v2933_v42  ;;  %v3047_v56 = vmul.f32 %v8137_v43, %v2933_v42  ;;  %v3115_v7 = vmul.f32 %v8139_v9, %v2933_v42  ;;  %v8147_v9 = vld [vmem:[#allocation57_spill] sm:$0xff] }
 0x2ec   :  { %v2989_v44 = vadd.f32 %v2988_v1, %v2975_v6  ;;  %v3057_v45 = vadd.f32 %v3056_v37, %v3043_v24  ;;  %v3125_v63 = vadd.f32 %v3124_v54, %v3111_v20  ;;  %v3193_v50 = vadd.f32 %v3192_v55, %v3179_v49  ;;  %v8150_v37 = vld [vmem:[#allocation58_spill] sm:$0xff] }
 0x2ed   :  { %v3261_v0 = vadd.f32 %v3260_v53, %v3247_v2  ;;  %v8141_v57 = vunpack.c.h.bf16 %v8140_v22  ;;  %v8143_v31 = vunpack.c.l.bf16 %v8142_v46  ;;  %v8145_v23 = vunpack.c.l.bf16 %v8144_v11 }
 0x2ee   :  { %v2990_v41 = vadd.f32 %v2989_v44, %v2976_v16  ;;  %v8146_v35 = vunpack.c.h.bf16 %v8123_v29  ;;  %v3058_v43 = vadd.f32 %v3057_v45, %v3044_v33  ;;  %v8148_v6 = vunpack.c.l.bf16 %v8147_v9  ;;  %v8153_v33 = vld [vmem:[#allocation59_spill] sm:$0xff] }
 0x2ef   :  { %v3183_v10 = vmul.f32 %v8141_v57, %v2933_v42  ;;  %v3251_v36 = vmul.f32 %v8143_v31, %v2933_v42  ;;  %v2977_v48 = vmul.f32 %v8145_v23, %v2931_v52  ;;  %v3126_v20 = vadd.f32 %v3125_v63, %v3112_v38 }
 0x2f0   :  { %v3045_v34 = vmul.f32 %v8146_v35, %v2931_v52  ;;  %v3113_v24 = vmul.f32 %v8148_v6, %v2931_v52  ;;  %v8149_v49 = vunpack.c.h.bf16 %v8126_v28  ;;  %v3194_v1 = vadd.f32 %v3193_v50, %v3180_v14  ;;  %v8156_v35 = vld [vmem:[#allocation60_spill] sm:$0xff] }
 0x2f1   :  { %v8151_v54 = vunpack.c.l.bf16 %v8150_v37  ;;  %v2991_v42 = vadd.f32 %v2990_v41, %v2977_v48  ;;  %v3262_v57 = vadd.f32 %v3261_v0, %v3248_v18  ;;  %v8152_v16 = vunpack.c.h.bf16 %v8134_v21 }
 0x2f2   :  { %v3181_v2 = vmul.f32 %v8149_v49, %v2931_v52  ;;  %v3059_v53 = vadd.f32 %v3058_v43, %v3045_v34  ;;  %v3127_v29 = vadd.f32 %v3126_v20, %v3113_v24  ;;  %v8154_v45 = vunpack.c.l.bf16 %v8153_v33  ;;  %v8164_v49 = vld [vmem:[#allocation61_spill] sm:$0xff] }
 0x2f3   :  { %v3249_v55 = vmul.f32 %v8151_v54, %v2931_v52  ;;  %v2980_v44 = vmul.f32 %v8152_v16, %v2934_v47  ;;  %v8155_v63 = vunpack.c.h.bf16 %v8138_v30  ;;  %v8157_v14 = vunpack.c.l.bf16 %v8156_v35 }
 0x2f4   :  { %v3195_v31 = vadd.f32 %v3194_v1, %v3181_v2  ;;  %v3048_v23 = vmul.f32 %v8154_v45, %v2934_v47  ;;  %v8158_v52 = vunpack.c.h.bf16 %v8142_v46  ;;  %v2932_v0 = vadd.f32 %v7376_v60, %v2909_v19  ;;  %v8166_v1 = vld [vmem:[#allocation62_spill] sm:$0xff] }
 0x2f5   :  { %v3116_v38 = vmul.f32 %v8155_v63, %v2934_v47  ;;  %v3263_v28 = vadd.f32 %v3262_v57, %v3249_v55  ;;  %v3184_v50 = vmul.f32 %v8157_v14, %v2934_v47  ;;  %v2937_v18 = vadd.f32 %v7376_v60, %v2914_v61  ;;  %v8170_v63 = vld [vmem:[#allocation64_spill] sm:$0xff] }
 0x2f6   :  { %v3252_v48 = vmul.f32 %v8158_v52, %v2934_v47  ;;  %v2935_v21 = vadd.f32 %v7376_v60, %v2912_v27  ;;  %v2938_v41 = vadd.f32 %v7376_v60, %v2915_v51  ;;  %v2913_v34 = vmax.f32 %v7349_v5, %v7421_v62  ;;  %v8172_v52 = vld [vmem:[#allocation65_spill] sm:$0xff] }
 0x2f7   :  { %v8159_v30 = vunpack.c.h.bf16 %v8144_v11  ;;  %v8160_v6 = vunpack.c.l.bf16 %v8136_v8  ;;  %v8161_v46 = vunpack.c.h.bf16 %v8147_v9  ;;  %v8162_v19 = vunpack.c.l.bf16 %v8140_v22  ;;  %v8168_v11 = vld [vmem:[#allocation63_spill] sm:$0xff] }
 0x2f8   :  { %v8163_v61 = vunpack.c.h.bf16 %v8150_v37  ;;  %v8165_v51 = vunpack.c.l.bf16 %v8164_v49  ;;  %v8167_v5 = vunpack.c.h.bf16 %v8166_v1  ;;  %v8169_v54 = vunpack.c.l.bf16 %v8168_v11 }
 0x2f9   :  { %v2978_v43 = vmul.f32 %v8159_v30, %v2932_v0  ;;  %v3046_v24 = vmul.f32 %v8160_v6, %v2932_v0  ;;  %v3114_v47 = vmul.f32 %v8161_v46, %v2932_v0  ;;  %v3182_v20 = vmul.f32 %v8162_v19, %v2932_v0  ;;  %v8174_v30 = vld [vmem:[#allocation66_spill] sm:$0xff] }
 0x2fa   :  { %v3250_v27 = vmul.f32 %v8163_v61, %v2932_v0  ;;  %v2983_v2 = vmul.f32 %v8165_v51, %v2937_v18  ;;  %v3051_v62 = vmul.f32 %v8167_v5, %v2937_v18  ;;  %v3119_v55 = vmul.f32 %v8169_v54, %v2937_v18  ;;  %v8180_v54 = vld [vmem:[#allocation68_spill] sm:$0xff] }
 0x2fb   :  { %v2992_v8 = vadd.f32 %v2991_v42, %v2978_v43  ;;  %v3060_v57 = vadd.f32 %v3059_v53, %v3046_v24  ;;  %v3128_v16 = vadd.f32 %v3127_v29, %v3114_v47  ;;  %v3196_v9 = vadd.f32 %v3195_v31, %v3182_v20  ;;  %v8177_v29 = vld [vmem:[#allocation67_spill] sm:$0xff] }
 0x2fc   :  { %v3264_v45 = vadd.f32 %v3263_v28, %v3250_v27  ;;  %v8171_v22 = vunpack.c.h.bf16 %v8170_v63  ;;  %v8173_v37 = vunpack.c.l.bf16 %v8172_v52  ;;  %v8175_v6 = vunpack.c.l.bf16 %v8174_v30 }
 0x2fd   :  { %v2993_v19 = vadd.f32 %v2992_v8, %v2979_v12  ;;  %v3061_v61 = vadd.f32 %v3060_v57, %v3047_v56  ;;  %v3129_v51 = vadd.f32 %v3128_v16, %v3115_v7  ;;  %v3197_v5 = vadd.f32 %v3196_v9, %v3183_v10 }
 0x2fe   :  { %v3187_v14 = vmul.f32 %v8171_v22, %v2937_v18  ;;  %v3255_v0 = vmul.f32 %v8173_v37, %v2937_v18  ;;  %v2981_v46 = vmul.f32 %v8175_v6, %v2935_v21  ;;  %v3265_v3 = vadd.f32 %v3264_v45, %v3251_v36  ;;  %v8183_v36 = vld [vmem:[#allocation69_spill] sm:$0xff] }
 0x2ff   :  { %v8176_v42 = vunpack.c.h.bf16 %v8153_v33  ;;  %v8178_v31 = vunpack.c.l.bf16 %v8177_v29  ;;  %v8179_v43 = vunpack.c.h.bf16 %v8156_v35  ;;  %v2994_v47 = vadd.f32 %v2993_v19, %v2980_v44  ;;  %v8189_v19 = vld [vmem:[#allocation5_spill] sm:$0xff] }
 0x300   :  { %v3062_v20 = vadd.f32 %v3061_v61, %v3048_v23  ;;  %v3130_v18 = vadd.f32 %v3129_v51, %v3116_v38  ;;  %v3198_v27 = vadd.f32 %v3197_v5, %v3184_v50  ;;  %v8181_v22 = vunpack.c.l.bf16 %v8180_v54  ;;  %v8186_v38 = vld [vmem:[#allocation70_spill] sm:$0xff]  ;;  %v8191_v5 = vld [vmem:[#allocation4_spill] sm:$0xff] }
 0x301   :  { %v3049_v53 = vmul.f32 %v8176_v42, %v2935_v21  ;;  %v3117_v28 = vmul.f32 %v8178_v31, %v2935_v21  ;;  %v3185_v24 = vmul.f32 %v8179_v43, %v2935_v21  ;;  %v3266_v56 = vadd.f32 %v3265_v3, %v3252_v48  ;;  %v8193_v42 = vld [vmem:[#allocation80_spill] sm:$0xff] }
 0x302   :  { %v3253_v12 = vmul.f32 %v8181_v22, %v2935_v21  ;;  %v8182_v7 = vunpack.c.h.bf16 %v8164_v49  ;;  %v8184_v33 = vunpack.c.l.bf16 %v8183_v36  ;;  %v2995_v57 = vadd.f32 %v2994_v47, %v2981_v46 }
 0x303   :  { %v3063_v16 = vadd.f32 %v3062_v20, %v3049_v53  ;;  %v3131_v9 = vadd.f32 %v3130_v18, %v3117_v28  ;;  %v3199_v45 = vadd.f32 %v3198_v27, %v3185_v24  ;;  %v8185_v44 = vunpack.c.h.bf16 %v8168_v11 }
 0x304   :  { %v2984_v10 = vmul.f32 %v8182_v7, %v2938_v41  ;;  %v3052_v8 = vmul.f32 %v8184_v33, %v2938_v41  ;;  %v3267_v35 = vadd.f32 %v3266_v56, %v3253_v12  ;;  %v8187_v50 = vunpack.c.l.bf16 %v8186_v38  ;;  %v8199_v12 = vld [vmem:[#allocation71_spill] sm:$0xff]  ;;  %v8201_v7 = vld [vmem:[#allocation72_spill] sm:$0xff] }
 0x305   :  { %v3120_v23 = vmul.f32 %v8185_v44, %v2938_v41  ;;  %v8188_v21 = vunpack.c.h.bf16 %v8172_v52  ;;  %v2936_v48 = vadd.f32 %v7376_v60, %v2913_v34  ;;  %v2918_v49 = vmax.f32 %v7383_v15, %v7453_v4  ;;  %v8203_v44 = vld [vmem:[#allocation73_spill] sm:$0xff] }
 0x306   :  { %v3188_v37 = vmul.f32 %v8187_v50, %v2938_v41  ;;  %v2916_v6 = vmax.f32 %v7387_v39, %v7463_v13  ;;  %v2917_v46 = vmax.f32 %v7401_v26, %v7480_v25  ;;  %v1742_v11 = vrot.slane %v7242_v17, 1 }
 0x307   :  { %v3256_v3 = vmul.f32 %v8188_v21, %v2938_v41  ;;  %v8190_v61 = vrot.slane %v8189_v19, 2  ;;  %v1872_v52 = vrot.slane %v8191_v5, 4  ;;  %v8192_v41 = vld [vmem:[#allocation82_spill] sm:$0xff]  ;;  %v8194_v53 = vunpack.c.h.bf16 %v8174_v30 }
 0x308   :  { %v1938_v34 = vadd.f32 %v8193_v42, %v8192_v41  ;;  %v8195_v4 = vunpack.c.l.bf16 %v8166_v1  ;;  %v8196_v13 = vunpack.c.h.bf16 %v8177_v29  ;;  %v8197_v25 = vunpack.c.l.bf16 %v8170_v63 }
 0x309   :  { %v1808_v51 = vadd.f32 %v8190_v61, %v8189_v19  ;;  %v2982_v15 = vmul.f32 %v8194_v53, %v2936_v48  ;;  %v8198_v28 = vunpack.c.h.bf16 %v8180_v54  ;;  %v2941_v24 = vadd.f32 %v7376_v60, %v2918_v49 }
 0x30a   :  { %v3050_v39 = vmul.f32 %v8195_v4, %v2936_v48  ;;  %v3118_v26 = vmul.f32 %v8196_v13, %v2936_v48  ;;  %v3186_v31 = vmul.f32 %v8197_v25, %v2936_v48  ;;  %v2939_v47 = vadd.f32 %v7376_v60, %v2916_v6 }
 0x30b   :  { %v3254_v43 = vmul.f32 %v8198_v28, %v2936_v48  ;;  %v2940_v20 = vadd.f32 %v7376_v60, %v2917_v46  ;;  %v2996_v30 = vadd.f32 %v2995_v57, %v2982_v15  ;;  %v8200_v29 = vunpack.c.l.bf16 %v8199_v12  ;;  %v8207_v46 = vld [vmem:[#allocation75_spill] sm:$0xff]  ;;  %v8212_v15 = vld [vmem:[#allocation77_spill] sm:$0xff] }
 0x30c   :  { %v3064_v18 = vadd.f32 %v3063_v16, %v3050_v39  ;;  %v3132_v27 = vadd.f32 %v3131_v9, %v3118_v26  ;;  %v3200_v1 = vadd.f32 %v3199_v45, %v3186_v31  ;;  %v8202_v63 = vunpack.c.l.bf16 %v8201_v7  ;;  %v8205_v9 = vld [vmem:[#allocation74_spill] sm:$0xff] }
 0x30d   :  { %v3268_v22 = vadd.f32 %v3267_v35, %v3254_v43  ;;  %v2987_v56 = vmul.f32 %v8200_v29, %v2941_v24  ;;  %v8204_v54 = vunpack.c.l.bf16 %v8203_v44  ;;  %v2997_v21 = vadd.f32 %v2996_v30, %v2983_v2  ;;  %v8209_v2 = vld [vmem:[#allocation76_spill] sm:$0xff]  ;;  %v8215_v43 = vld [vmem:[#allocation78_spill] sm:$0xff] }
 0x30e   :  { %v3055_v33 = vmul.f32 %v8202_v63, %v2941_v24  ;;  %v3065_v48 = vadd.f32 %v3064_v18, %v3051_v62  ;;  %v3133_v49 = vadd.f32 %v3132_v27, %v3119_v55  ;;  %v3201_v6 = vadd.f32 %v3200_v1, %v3187_v14 }
 0x30f   :  { %v3123_v50 = vmul.f32 %v8204_v54, %v2941_v24  ;;  %v3269_v19 = vadd.f32 %v3268_v22, %v3255_v0  ;;  %v3001_v60 = vsel %vm1735_vm3, %v2987_v56, 0.0  ;;  %v8206_v45 = vunpack.c.l.bf16 %v8205_v9  ;;  %v8224_v9 = vld [vmem:[#allocation81_spill] sm:$0xff] }
 0x310   :  { %v3069_v57 = vsel %vm1735_vm3, %v3055_v33, 0.0  ;;  %v8208_v61 = vunpack.c.l.bf16 %v8207_v46  ;;  %v8210_v62 = vunpack.c.l.bf16 %v8209_v2  ;;  %v2998_v14 = vadd.f32 %v2997_v21, %v2984_v10 }
 0x311   :  { %v7607_v16 = vsel %vm1735_vm3, %v3123_v50, 0.0  ;;  %v7611_v35 = vmul.f32 %v8206_v45, %v2941_v24  ;;  %v8211_v0 = vunpack.c.h.bf16 %v8183_v36  ;;  %v3066_v53 = vadd.f32 %v3065_v48, %v3052_v8  ;;  %v8218_v8 = vld [vmem:[#allocation79_spill] sm:$0xff] }
 0x312   :  { %v7615_v41 = vmul.f32 %v8208_v61, %v2941_v24  ;;  %v2985_v55 = vmul.f32 %v8210_v62, %v2939_v47  ;;  %v8213_v4 = vunpack.c.l.bf16 %v8212_v15  ;;  %v3134_v13 = vadd.f32 %v3133_v49, %v3120_v23 }
 0x313   :  { %v3053_v42 = vmul.f32 %v8211_v0, %v2939_v47  ;;  %v8214_v25 = vunpack.c.h.bf16 %v8186_v38  ;;  %v3202_v28 = vadd.f32 %v3201_v6, %v3188_v37  ;;  %v8216_v24 = vunpack.c.l.bf16 %v8215_v43  ;;  %v8227_v0 = vld [vmem:[#allocation8_spill] sm:$0xff] }
 0x314   :  { %v3121_v39 = vmul.f32 %v8213_v4, %v2939_v47  ;;  %v2999_v26 = vadd.f32 %v2998_v14, %v2985_v55  ;;  %v3270_v1 = vadd.f32 %v3269_v19, %v3256_v3  ;;  %v8217_v10 = vunpack.c.h.bf16 %v8209_v2  ;;  %v8223_v19 = vld [vmem:[#allocation83_spill] sm:$0xff] }
 0x315   :  { %v3189_v31 = vmul.f32 %v8214_v25, %v2939_v47  ;;  %v3257_v30 = vmul.f32 %v8216_v24, %v2939_v47  ;;  %v3067_v18 = vadd.f32 %v3066_v53, %v3053_v42  ;;  %v8219_v12 = vunpack.c.l.bf16 %v8218_v8 }
 0x316   :  { %v3135_v27 = vadd.f32 %v3134_v13, %v3121_v39  ;;  %v2986_v36 = vmul.f32 %v8217_v10, %v2940_v20  ;;  %v8220_v23 = vunpack.c.h.bf16 %v8212_v15  ;;  %v8221_v38 = vunpack.c.h.bf16 %v8218_v8 }
 0x317   :  { %v3203_v22 = vadd.f32 %v3202_v28, %v3189_v31  ;;  %v3054_v29 = vmul.f32 %v8219_v12, %v2940_v20  ;;  %v7635_v37 = vadd.f32 %v3270_v1, %v3257_v30  ;;  %v8222_v47 = vunpack.c.h.bf16 %v8215_v43 }
 0x318   :  { %v3122_v56 = vmul.f32 %v8220_v23, %v2940_v20  ;;  %v3190_v7 = vmul.f32 %v8221_v38, %v2940_v20  ;;  %v3000_v63 = vadd.f32 %v2999_v26, %v2986_v36  ;;  %v1743_v3 = vadd.f32 %v1742_v11, %v7242_v17 }
 0x319   :  { %v7639_v33 = vmul.f32 %v8222_v47, %v2940_v20  ;;  %v3068_v44 = vadd.f32 %v3067_v18, %v3054_v29  ;;  %v1809_v21 = vrot.slane %v1808_v51, 1  ;;  %v1873_v49 = vadd.f32 %v1872_v52, %v8191_v5 }
 0x31a   :  { %v3136_v54 = vadd.f32 %v3135_v27, %v3122_v56  ;;  %v3204_v50 = vadd.f32 %v3203_v22, %v3190_v7  ;;  %v3002_v48 = vadd.f32 %v3001_v60, %v3000_v63  ;;  %v1939_v6 = vrot.slane %v1938_v34, 4 }
 0x31b   :  { %v2005_v45 = vadd.f32 %v8224_v9, %v8223_v19  ;;  %v3070_v46 = vadd.f32 %v3069_v57, %v3068_v44  ;;  %v1810_v61 = vadd.f32 %v1809_v21, %v1808_v51  ;;  %v8225_v2 = vrot.slane %v7432_v32, 4  ;;  %v8228_v57 = vld [vmem:[#allocation7_spill] sm:$0xff] }
 0x31c   :  { %v8226_v17 = vrot.slane %v7434_v59, 4  ;;  %v1874_v62 = vrot.slane %v1873_v49, 2  ;;  %v1940_v55 = vadd.f32 %v1939_v6, %v1938_v34  ;;  %v2504_v60 = vrot.slane %v7436_v40, 4  ;;  %v8229_v34 = vld [vmem:[#allocation9_spill] sm:$0xff] }
 0x31d   :  { %v2369_v20 = vadd.f32 %v8225_v2, %v7432_v32  ;;  %v2006_v14 = vrot.slane %v2005_v45, 4  ;;  %v2571_v42 = vadd.f32 %v8227_v0, %v7423_v58  ;;  %v2638_v51 = vsel %vm1735_vm3, %v8228_v57, 0.0 }
 0x31e   :  { %v2437_v11 = vadd.f32 %v8226_v17, %v7434_v59  ;;  %v1875_v53 = vadd.f32 %v1874_v62, %v1873_v49  ;;  %v1941_v15 = vrot.slane %v1940_v55, 2  ;;  %v2505_v4 = vadd.f32 %v2504_v60, %v7436_v40 }
 0x31f   :  { %v2370_v5 = vrot.slane %v2369_v20, 2  ;;  %v2007_v32 = vadd.f32 %v2006_v14, %v2005_v45  ;;  %v2572_v13 = vrot.slane %v2571_v42, 4  ;;  %v2639_v26 = vadd.f32 %v2638_v51, %v8229_v34 }
 0x320   :  { %v2438_v52 = vrot.slane %v2437_v11, 2  ;;  %v1876_v25 = vrot.slane %v1875_v53, 1  ;;  %v1942_v31 = vadd.f32 %v1941_v15, %v1940_v55  ;;  %v2506_v43 = vrot.slane %v2505_v4, 2 }
 0x321   :  { %v2371_v39 = vadd.f32 %v2370_v5, %v2369_v20  ;;  %v2008_v28 = vrot.slane %v2007_v32, 2  ;;  %v2573_v58 = vadd.f32 %v2572_v13, %v2571_v42  ;;  %v2640_v18 = vrot.slane %v2639_v26, 4 }
 0x322   :  { %v2439_v59 = vadd.f32 %v2438_v52, %v2437_v11  ;;  %v1877_v27 = vadd.f32 %v1876_v25, %v1875_v53  ;;  %v1943_v1 = vrot.slane %v1942_v31, 1  ;;  %v2507_v36 = vadd.f32 %v2506_v43, %v2505_v4 }
 0x323   :  { %v2372_v24 = vrot.slane %v2371_v39, 1  ;;  %v2009_v10 = vadd.f32 %v2008_v28, %v2007_v32  ;;  %v2574_v40 = vrot.slane %v2573_v58, 2  ;;  %v2641_v12 = vadd.f32 %v2640_v18, %v2639_v26 }
 0x324   :  { %v2440_v30 = vrot.slane %v2439_v59, 1  ;;  %v1944_v29 = vadd.f32 %v1943_v1, %v1942_v31  ;;  %v2508_v56 = vrot.slane %v2507_v36, 1  ;;  %v3003_v38 = vrot.slane %v3002_v48, 4 }
 0x325   :  { %v2373_v22 = vadd.f32 %v2372_v24, %v2371_v39  ;;  %v2010_v23 = vrot.slane %v2009_v10, 1  ;;  %v2575_v47 = vadd.f32 %v2574_v40, %v2573_v58  ;;  %v2642_v44 = vrot.slane %v2641_v12, 2 }
 0x326   :  { %v2441_v8 = vadd.f32 %v2440_v30, %v2439_v59  ;;  %v2509_v49 = vadd.f32 %v2508_v56, %v2507_v36  ;;  %v3004_v6 = vadd.f32 %v3003_v38, %v3002_v48  ;;  %v3071_v19 = vrot.slane %v3070_v46, 4 }
 0x327   :  { %v2374_v7 = vadd.f32 %v2373_v22, %v1743_v3  ;;  %v2011_v21 = vadd.f32 %v2010_v23, %v2009_v10  ;;  %v2576_v9 = vrot.slane %v2575_v47, 1  ;;  %v2643_v45 = vadd.f32 %v2642_v44, %v2641_v12 }
 0x328   :  { %v2442_v63 = vadd.f32 %v2441_v8, %v1810_v61  ;;  %v3138_v2 = vadd.f32 %v7607_v16, %v3136_v54  ;;  %v3205_v20 = vsel %vm1735_vm3, %v7611_v35, 0.0  ;;  %v2510_v17 = vadd.f32 %v2509_v49, %v1877_v27 }
 0x329   :  { %v3005_v11 = vrot.slane %v3004_v6, 2  ;;  %v3072_v62 = vadd.f32 %v3071_v19, %v3070_v46  ;;  %v3206_v55 = vadd.f32 %v3205_v20, %v3204_v50  ;;  %v2577_v14 = vadd.f32 %v2576_v9, %v2575_v47 }
 0x32a   :  { %v2644_v3 = vrot.slane %v2643_v45, 1  ;;  %v3139_v61 = vrot.slane %v3138_v2, 4  ;;  %v3272_v60 = vadd.f32 %v7635_v37, %v7639_v33  ;;  %v3273_v0 = vsel %vm1735_vm3, %v7615_v41, 0.0 }
 0x32b   :  { %v3006_v5 = vadd.f32 %v3005_v11, %v3004_v6  ;;  %v3073_v48 = vrot.slane %v3072_v62, 2  ;;  %v3207_v52 = vrot.slane %v3206_v55, 4  ;;  %v2578_v16 = vadd.f32 %v2577_v14, %v1944_v29  ;;  %v3293_v29 = vld [vmem:[%s7678_s6] sm:$0xff] }
 0x32c   :  { %v2645_v54 = vadd.f32 %v2644_v3, %v2643_v45  ;;  %v3140_v42 = vadd.f32 %v3139_v61, %v3138_v2  ;;  %v3274_v35 = vadd.f32 %v3273_v0, %v3272_v60  ;;  %v4675_v12 = vmov 0  }
 0x32d   :  { %v3007_v57 = vrot.slane %v3006_v5, 1  ;;  %v3074_v51 = vadd.f32 %v3073_v48, %v3072_v62  ;;  %v3208_v46 = vadd.f32 %v3207_v52, %v3206_v55  ;;  %4602 = vset.pattern.permute.xlu0 %v4675_v12 }
 0x32e   :  { %v2646_v50 = vadd.f32 %v2645_v54, %v2011_v21  ;;  %v3141_v53 = vrot.slane %v3140_v42, 2  ;;  %v3275_v15 = vrot.slane %v3274_v35, 4 }
 0x32f   :  { %v3008_v32 = vadd.f32 %v3007_v57, %v3006_v5  ;;  %v3075_v4 = vrot.slane %v3074_v51, 1  ;;  %v3209_v39 = vrot.slane %v3208_v46, 2 }
 0x330   :  { %v3142_v37 = vadd.f32 %v3141_v53, %v3140_v42  ;;  %v3276_v33 = vadd.f32 %v3275_v15, %v3274_v35 }
 0x331   :  { %v3009_v59 = vadd.f32 %v3008_v32, %v2374_v7  ;;  %v3076_v13 = vadd.f32 %v3075_v4, %v3074_v51  ;;  %v3210_v34 = vadd.f32 %v3209_v39, %v3208_v46 }
 0x332   :  { %v3143_v26 = vrot.slane %v3142_v37, 1  ;;  %v3277_v41 = vrot.slane %v3276_v33, 2 }
 0x333   :  { %v3077_v25 = vadd.f32 %v3076_v13, %v2442_v63  ;;  %v3211_v31 = vrot.slane %v3210_v34, 1 }
 0x334   :  { %v3144_v28 = vadd.f32 %v3143_v26, %v3142_v37  ;;  %v3278_v43 = vadd.f32 %v3277_v41, %v3276_v33 }
 0x335   :  { %v3212_v24 = vadd.f32 %v3211_v31, %v3210_v34  ;;  %v3283_v30 = vsel %vm3282_vm4, %v3009_v59, %v3077_v25 }
 0x336   :  { %v3145_v58 = vadd.f32 %v3144_v28, %v2510_v17  ;;  %v3279_v18 = vrot.slane %v3278_v43, 1 }
 0x337   :  { %v3213_v27 = vadd.f32 %v3212_v24, %v2578_v16 }
 0x338   :  { %v3280_v1 = vadd.f32 %v3279_v18, %v3278_v43  ;;  %v3285_v10 = vsel %vm3284_vm6, %v3283_v30, %v3145_v58 }
 0x339   :  { %v3286_v36 = vsel %vm1735_vm3, %v3285_v10, %v3213_v27 }
 0x33a   :  { %v3281_v22 = vadd.f32 %v3280_v1, %v2646_v50 }
 0x33c   :  { %v3288_v8 = vsel %vm3287_vm7, %v3286_v36, %v3281_v22 }
 0x33d   :  { %v3290_v40 = vsel %vm3289_vm8, %v3288_v8, 0.0 }
 0x33e   :  { %3291 = vadd.xlane.f32.xlu0 %v3290_v40 }
 0x3cb   :  { %v3292_v23 = vpop.xlane.xlu0 %3291 }
 0x3cc   :  { %v3294_v56 = vadd.f32 %v3293_v29, %v3292_v23 }
 0x3ce   :  { %3297 = vperm.xlu0 %4602, %v3294_v56  }
 0x44d   :  { %v3298_v38 = vpop.permute.xlu0 %3297 }
 0x44e   :  { %3300 = vst [vmem:[%s7679_s7] sm:$0xff] %v3298_v38 }

</bundles_post_ra>
